<compile_context>
chip_gen: v5e
topology: v5e:2x2
jax: 0.10.0
libtpu: 0.0.40
codegen_flags: <defaults>
</compile_context>

<pallas_src>
import jax
import jax.numpy as jnp
from jax.experimental import pallas as pl
from jax.experimental.pallas import tpu as pltpu


def _make_fused_conv_kernel(W, HW, n_images, n_layers):
    """Fused n_layers x 3x3 'same' conv for a (C, N*HW) channels-on-sublanes tile."""
    NHW = n_images * HW

    def kernel(x_ref, w_ref, b_ref, m_ref, o_ref):
        # x_ref: (N, C, HW)    input, channels on sublanes, flat spatial on lanes
        # w_ref: (L, C, 9*C)   bf16 packed weights, column = (kh*3+kw)*Cin + cin
        # b_ref: (L, C, 1)     f32 biases
        # m_ref: (9, C, N*HW)  f32 boundary masks, pre-broadcast over channels
        #                      (row 4 = center tap, never read)
        # o_ref: (N, C, HW)    output, same layout as input

        # Fold the batch into lanes once: (C, N*HW). Lane concat of 128-aligned
        # tiles -> a few vreg copies, no transposes anywhere.
        act = jnp.concatenate([x_ref[n] for n in range(n_images)],
                              axis=1).astype(jnp.float32)

        # Unrolled layer loop: the activation never leaves the core.
        for l in range(n_layers):
            taps = []
            for kh in range(3):
                for kw in range(3):
                    t = kh * 3 + kw
                    delta = (kh - 1) * W + (kw - 1)   # flat lane offset of this tap
                    if delta == 0:
                        shifted = act
                    else:
                        # XLU lane rotate (jnp.roll semantics).  Wherever the flat
                        # roll wraps across a row / image / array edge, the read is
                        # out of bounds for the conv, and the mask zeroes it.
                        # NOTE: Mosaic's roll requires a non-negative axis -> axis=1.
                        shifted = pltpu.roll(act, shift=(-delta) % NHW, axis=1)
                    if t != 4:                         # center tap needs no mask
                        shifted = shifted * m_ref[t]   # f32 elementwise, no broadcast
                    taps.append(shifted.astype(jnp.bfloat16))
            patch = jnp.concatenate(taps, axis=0)      # (9*C, N*HW) bf16
            # Single K=144 MXU matmul per layer, bf16 operands, f32 accumulation.
            act = jnp.dot(w_ref[l], patch,
                          preferred_element_type=jnp.float32) + b_ref[l]

        # Split back to per-image slabs (lane slices at multiples of 128 -> unmasked vst).
        for n in range(n_images):
            o_ref[n] = act[:, n * HW:(n + 1) * HW].astype(o_ref.dtype)

    return kernel


def fused_conv_stack(x_nchw, params):
    """Runs the whole 4-conv stack in one pallas_call. x is NCHW (matches PyTorch)."""
    N, C, H, W = x_nchw.shape
    HW = H * W
    NHW = N * HW
    L = len(params)

    # Pack weights once: HWIO (3,3,Cin,Cout) -> (Cout, 9*Cin), cast to bf16 for
    # the MXU; biases stay f32 (added after f32 accumulation).
    w_packed = jnp.stack(
        [jnp.transpose(w.reshape(9 * C, C)) for (w, _) in params]
    ).astype(jnp.bfloat16)                                            # (L, C, 9*C)
    b_packed = jnp.stack([b.reshape(C, 1) for (_, b) in params])      # (L, C, 1) f32

    # Precompute the 3x3-tap boundary masks for the batch-folded flat layout.
    # For flat lane q: image-local h = (q % HW) // W, w = q % W.
    q = jnp.arange(NHW, dtype=jnp.int32)
    hh = (q % HW) // W
    ww = q % W
    rows = []
    for kh in range(3):
        for kw in range(3):
            valid = jnp.ones((NHW,), dtype=bool)
            if kh == 0:
                valid = valid & (hh > 0)
            if kh == 2:
                valid = valid & (hh < H - 1)
            if kw == 0:
                valid = valid & (ww > 0)
            if kw == 2:
                valid = valid & (ww < W - 1)
            rows.append(valid)
    masks = jnp.stack(rows).astype(jnp.float32)                        # (9, NHW)
    masks = jnp.broadcast_to(masks[:, None, :], (9, C, NHW))           # pre-broadcast

    # Free contiguous reshape: lanes become the flattened H*W axis (lane-dense).
    x_flat = x_nchw.reshape(N, C, HW)

    kernel = _make_fused_conv_kernel(W, HW, N, L)
    out_flat = pl.pallas_call(
        kernel,
        out_shape=jax.ShapeDtypeStruct((N, C, HW), x_nchw.dtype),
        grid_spec=pltpu.PrefetchScalarGridSpec(
            num_scalar_prefetch=0,
            grid=(1,),                                 # single step: batch is lane-folded
            in_specs=[
                pl.BlockSpec((N, C, HW), lambda i: (0, 0, 0)),
                pl.BlockSpec((L, C, 9 * C), lambda i: (0, 0, 0)),
                pl.BlockSpec((L, C, 1), lambda i: (0, 0, 0)),
                pl.BlockSpec((9, C, NHW), lambda i: (0, 0, 0)),
            ],
            out_specs=pl.BlockSpec((N, C, HW), lambda i: (0, 0, 0)),
        ),
        compiler_params=pltpu.CompilerParams(
            dimension_semantics=("arbitrary",)),
    )(x_flat, w_packed, b_packed, masks)

    return out_flat.reshape(N, C, H, W)


def init_conv_params(key, c=16, n_layers=4):
    """Deterministic synthetic weights for the Conv2d(c, c, 3, padding=1) layers (HWIO)."""
    params = []
    for _ in range(n_layers):
        key, kw_, kb = jax.random.split(key, 3)
        w_hwio = jax.random.normal(kw_, (3, 3, c, c), jnp.float32) * 0.1
        b = jax.random.normal(kb, (c,), jnp.float32) * 0.1
        params.append((w_hwio, b))
    return params


def test_network_forward(x_nchw, params):
    """Matches TestNetwork.forward: x -> conv -> conv -> conv -> conv (3x3, pad=1)."""
    return fused_conv_stack(x_nchw, params)


if __name__ == "__main__":
    key = jax.random.PRNGKey(0)
    kx, kp = jax.random.split(key)

    # small shapes consistent with the module: channels must be 16 for the convs
    N, C, S = 2, 16, 16
    x = jax.random.normal(kx, (N, C, S, S), jnp.float32)   # NCHW like PyTorch
    params = init_conv_params(kp, c=C, n_layers=4)

    out = jax.jit(test_network_forward)(x, params)
    out = jax.block_until_ready(out)
    assert out.shape == (N, C, S, S)

    # Reference check against XLA's f32 conv (NCHW / OIHW), SAME padding + bias.
    # Tolerance accounts for bf16 MXU operands over 4 chained layers
    # (f32 accumulation; observed error is ~1e-2 absolute at |ref| ~ 2).
    ref = x
    for w_hwio, b in params:
        w_oihw = jnp.transpose(w_hwio, (3, 2, 0, 1))
        ref = jax.lax.conv_general_dilated(
            ref, w_oihw, window_strides=(1, 1), padding="SAME",
            dimension_numbers=("NCHW", "OIHW", "NCHW")) + b.reshape(1, -1, 1, 1)
    assert jnp.allclose(out, ref, atol=5e-2, rtol=5e-2), "mismatch vs reference conv"

    print("KERNEL_OK")
</pallas_src>

<mosaic_0001>
module attributes {stable_mosaic.version = 11 : i64} {
  func.func @kernel(%arg0: i32, %arg1: memref<2x16x256xf32, #tpu.memory_space<vmem>>, %arg2: memref<4x16x144xbf16, #tpu.memory_space<vmem>>, %arg3: memref<4x16x1xf32, #tpu.memory_space<vmem>>, %arg4: memref<9x16x512xf32, #tpu.memory_space<vmem>>, %arg5: memref<2x16x256xf32, #tpu.memory_space<vmem>>) attributes {dimension_semantics = [#tpu.dimension_semantics<arbitrary>], iteration_bounds = array<i64: 1>, scalar_prefetch = 0 : i64, scratch_operands = 0 : i64, tpu.core_type = #tpu.core_type<tc>, window_params = [{pipeline_mode = #tpu.pipeline_mode<synchronous>, transform_indices = @transform_0, window_bounds = array<i64: 2, 16, 256>}, {pipeline_mode = #tpu.pipeline_mode<synchronous>, transform_indices = @transform_1, window_bounds = array<i64: 4, 16, 144>}, {pipeline_mode = #tpu.pipeline_mode<synchronous>, transform_indices = @transform_2, window_bounds = array<i64: 4, 16, 1>}, {pipeline_mode = #tpu.pipeline_mode<synchronous>, transform_indices = @transform_3, window_bounds = array<i64: 9, 16, 512>}, {pipeline_mode = #tpu.pipeline_mode<synchronous>, transform_indices = @transform_4, window_bounds = array<i64: 2, 16, 256>}]} {
    %c0 = arith.constant 0 : index
    %c0_0 = arith.constant 0 : index
    %c0_1 = arith.constant 0 : index
    %0 = vector.load %arg1[%c0, %c0_0, %c0_1] : memref<2x16x256xf32, #tpu.memory_space<vmem>>, vector<1x16x256xf32>
    %1 = vector.shape_cast %0 : vector<1x16x256xf32> to vector<16x256xf32>
    %c1 = arith.constant 1 : index
    %c0_2 = arith.constant 0 : index
    %c0_3 = arith.constant 0 : index
    %2 = vector.load %arg1[%c1, %c0_2, %c0_3] : memref<2x16x256xf32, #tpu.memory_space<vmem>>, vector<1x16x256xf32>
    %3 = vector.shape_cast %2 : vector<1x16x256xf32> to vector<16x256xf32>
    %4 = tpu.concatenate %1, %3 in 1 : vector<16x256xf32>, vector<16x256xf32> -> vector<16x512xf32>
    %c17_i32 = arith.constant 17 : i32
    %5 = tpu.dynamic_rotate %4 by %c17_i32 dim 1 : vector<16x512xf32>, i32 -> vector<16x512xf32>
    %c0_4 = arith.constant 0 : index
    %c0_5 = arith.constant 0 : index
    %c0_6 = arith.constant 0 : index
    %6 = vector.load %arg4[%c0_4, %c0_5, %c0_6] : memref<9x16x512xf32, #tpu.memory_space<vmem>>, vector<1x16x512xf32>
    %7 = vector.shape_cast %6 : vector<1x16x512xf32> to vector<16x512xf32>
    %8 = arith.mulf %5, %7 : vector<16x512xf32>
    %9 = arith.truncf %8 : vector<16x512xf32> to vector<16x512xbf16>
    %c16_i32 = arith.constant 16 : i32
    %10 = tpu.dynamic_rotate %4 by %c16_i32 dim 1 : vector<16x512xf32>, i32 -> vector<16x512xf32>
    %c1_7 = arith.constant 1 : index
    %c0_8 = arith.constant 0 : index
    %c0_9 = arith.constant 0 : index
    %11 = vector.load %arg4[%c1_7, %c0_8, %c0_9] : memref<9x16x512xf32, #tpu.memory_space<vmem>>, vector<1x16x512xf32>
    %12 = vector.shape_cast %11 : vector<1x16x512xf32> to vector<16x512xf32>
    %13 = arith.mulf %10, %12 : vector<16x512xf32>
    %14 = arith.truncf %13 : vector<16x512xf32> to vector<16x512xbf16>
    %c15_i32 = arith.constant 15 : i32
    %15 = tpu.dynamic_rotate %4 by %c15_i32 dim 1 : vector<16x512xf32>, i32 -> vector<16x512xf32>
    %c2 = arith.constant 2 : index
    %c0_10 = arith.constant 0 : index
    %c0_11 = arith.constant 0 : index
    %16 = vector.load %arg4[%c2, %c0_10, %c0_11] : memref<9x16x512xf32, #tpu.memory_space<vmem>>, vector<1x16x512xf32>
    %17 = vector.shape_cast %16 : vector<1x16x512xf32> to vector<16x512xf32>
    %18 = arith.mulf %15, %17 : vector<16x512xf32>
    %19 = arith.truncf %18 : vector<16x512xf32> to vector<16x512xbf16>
    %c1_i32 = arith.constant 1 : i32
    %20 = tpu.dynamic_rotate %4 by %c1_i32 dim 1 : vector<16x512xf32>, i32 -> vector<16x512xf32>
    %c3 = arith.constant 3 : index
    %c0_12 = arith.constant 0 : index
    %c0_13 = arith.constant 0 : index
    %21 = vector.load %arg4[%c3, %c0_12, %c0_13] : memref<9x16x512xf32, #tpu.memory_space<vmem>>, vector<1x16x512xf32>
    %22 = vector.shape_cast %21 : vector<1x16x512xf32> to vector<16x512xf32>
    %23 = arith.mulf %20, %22 : vector<16x512xf32>
    %24 = arith.truncf %23 : vector<16x512xf32> to vector<16x512xbf16>
    %25 = arith.truncf %4 : vector<16x512xf32> to vector<16x512xbf16>
    %c511_i32 = arith.constant 511 : i32
    %26 = tpu.dynamic_rotate %4 by %c511_i32 dim 1 : vector<16x512xf32>, i32 -> vector<16x512xf32>
    %c5 = arith.constant 5 : index
    %c0_14 = arith.constant 0 : index
    %c0_15 = arith.constant 0 : index
    %27 = vector.load %arg4[%c5, %c0_14, %c0_15] : memref<9x16x512xf32, #tpu.memory_space<vmem>>, vector<1x16x512xf32>
    %28 = vector.shape_cast %27 : vector<1x16x512xf32> to vector<16x512xf32>
    %29 = arith.mulf %26, %28 : vector<16x512xf32>
    %30 = arith.truncf %29 : vector<16x512xf32> to vector<16x512xbf16>
    %c497_i32 = arith.constant 497 : i32
    %31 = tpu.dynamic_rotate %4 by %c497_i32 dim 1 : vector<16x512xf32>, i32 -> vector<16x512xf32>
    %c6 = arith.constant 6 : index
    %c0_16 = arith.constant 0 : index
    %c0_17 = arith.constant 0 : index
    %32 = vector.load %arg4[%c6, %c0_16, %c0_17] : memref<9x16x512xf32, #tpu.memory_space<vmem>>, vector<1x16x512xf32>
    %33 = vector.shape_cast %32 : vector<1x16x512xf32> to vector<16x512xf32>
    %34 = arith.mulf %31, %33 : vector<16x512xf32>
    %35 = arith.truncf %34 : vector<16x512xf32> to vector<16x512xbf16>
    %c496_i32 = arith.constant 496 : i32
    %36 = tpu.dynamic_rotate %4 by %c496_i32 dim 1 : vector<16x512xf32>, i32 -> vector<16x512xf32>
    %c7 = arith.constant 7 : index
    %c0_18 = arith.constant 0 : index
    %c0_19 = arith.constant 0 : index
    %37 = vector.load %arg4[%c7, %c0_18, %c0_19] : memref<9x16x512xf32, #tpu.memory_space<vmem>>, vector<1x16x512xf32>
    %38 = vector.shape_cast %37 : vector<1x16x512xf32> to vector<16x512xf32>
    %39 = arith.mulf %36, %38 : vector<16x512xf32>
    %40 = arith.truncf %39 : vector<16x512xf32> to vector<16x512xbf16>
    %c495_i32 = arith.constant 495 : i32
    %41 = tpu.dynamic_rotate %4 by %c495_i32 dim 1 : vector<16x512xf32>, i32 -> vector<16x512xf32>
    %c8 = arith.constant 8 : index
    %c0_20 = arith.constant 0 : index
    %c0_21 = arith.constant 0 : index
    %42 = vector.load %arg4[%c8, %c0_20, %c0_21] : memref<9x16x512xf32, #tpu.memory_space<vmem>>, vector<1x16x512xf32>
    %43 = vector.shape_cast %42 : vector<1x16x512xf32> to vector<16x512xf32>
    %44 = arith.mulf %41, %43 : vector<16x512xf32>
    %45 = arith.truncf %44 : vector<16x512xf32> to vector<16x512xbf16>
    %46 = tpu.concatenate %9, %14, %19, %24, %25, %30, %35, %40, %45 in 0 : vector<16x512xbf16>, vector<16x512xbf16>, vector<16x512xbf16>, vector<16x512xbf16>, vector<16x512xbf16>, vector<16x512xbf16>, vector<16x512xbf16>, vector<16x512xbf16>, vector<16x512xbf16> -> vector<144x512xbf16>
    %c0_22 = arith.constant 0 : index
    %c0_23 = arith.constant 0 : index
    %c0_24 = arith.constant 0 : index
    %47 = vector.load %arg2[%c0_22, %c0_23, %c0_24] : memref<4x16x144xbf16, #tpu.memory_space<vmem>>, vector<1x16x144xbf16>
    %48 = vector.shape_cast %47 : vector<1x16x144xbf16> to vector<16x144xbf16>
    %cst = arith.constant dense<0.000000e+00> : vector<16x512xf32>
    %49 = tpu.matmul %48, %46, %cst {dimension_numbers = #tpu.dot_dimension_numbers<[1], [0], [0], [1], [0, 0, 1, 1], [], []>} : vector<16x144xbf16>, vector<144x512xbf16>, vector<16x512xf32> -> vector<16x512xf32>
    %c0_25 = arith.constant 0 : index
    %c0_26 = arith.constant 0 : index
    %c0_27 = arith.constant 0 : index
    %50 = vector.load %arg3[%c0_25, %c0_26, %c0_27] : memref<4x16x1xf32, #tpu.memory_space<vmem>>, vector<1x16x1xf32>
    %51 = vector.shape_cast %50 : vector<1x16x1xf32> to vector<16x1xf32>
    %52 = vector.broadcast %51 : vector<16x1xf32> to vector<16x512xf32>
    %53 = arith.addf %49, %52 : vector<16x512xf32>
    %c17_i32_28 = arith.constant 17 : i32
    %54 = tpu.dynamic_rotate %53 by %c17_i32_28 dim 1 : vector<16x512xf32>, i32 -> vector<16x512xf32>
    %c0_29 = arith.constant 0 : index
    %c0_30 = arith.constant 0 : index
    %c0_31 = arith.constant 0 : index
    %55 = vector.load %arg4[%c0_29, %c0_30, %c0_31] : memref<9x16x512xf32, #tpu.memory_space<vmem>>, vector<1x16x512xf32>
    %56 = vector.shape_cast %55 : vector<1x16x512xf32> to vector<16x512xf32>
    %57 = arith.mulf %54, %56 : vector<16x512xf32>
    %58 = arith.truncf %57 : vector<16x512xf32> to vector<16x512xbf16>
    %c16_i32_32 = arith.constant 16 : i32
    %59 = tpu.dynamic_rotate %53 by %c16_i32_32 dim 1 : vector<16x512xf32>, i32 -> vector<16x512xf32>
    %c1_33 = arith.constant 1 : index
    %c0_34 = arith.constant 0 : index
    %c0_35 = arith.constant 0 : index
    %60 = vector.load %arg4[%c1_33, %c0_34, %c0_35] : memref<9x16x512xf32, #tpu.memory_space<vmem>>, vector<1x16x512xf32>
    %61 = vector.shape_cast %60 : vector<1x16x512xf32> to vector<16x512xf32>
    %62 = arith.mulf %59, %61 : vector<16x512xf32>
    %63 = arith.truncf %62 : vector<16x512xf32> to vector<16x512xbf16>
    %c15_i32_36 = arith.constant 15 : i32
    %64 = tpu.dynamic_rotate %53 by %c15_i32_36 dim 1 : vector<16x512xf32>, i32 -> vector<16x512xf32>
    %c2_37 = arith.constant 2 : index
    %c0_38 = arith.constant 0 : index
    %c0_39 = arith.constant 0 : index
    %65 = vector.load %arg4[%c2_37, %c0_38, %c0_39] : memref<9x16x512xf32, #tpu.memory_space<vmem>>, vector<1x16x512xf32>
    %66 = vector.shape_cast %65 : vector<1x16x512xf32> to vector<16x512xf32>
    %67 = arith.mulf %64, %66 : vector<16x512xf32>
    %68 = arith.truncf %67 : vector<16x512xf32> to vector<16x512xbf16>
    %c1_i32_40 = arith.constant 1 : i32
    %69 = tpu.dynamic_rotate %53 by %c1_i32_40 dim 1 : vector<16x512xf32>, i32 -> vector<16x512xf32>
    %c3_41 = arith.constant 3 : index
    %c0_42 = arith.constant 0 : index
    %c0_43 = arith.constant 0 : index
    %70 = vector.load %arg4[%c3_41, %c0_42, %c0_43] : memref<9x16x512xf32, #tpu.memory_space<vmem>>, vector<1x16x512xf32>
    %71 = vector.shape_cast %70 : vector<1x16x512xf32> to vector<16x512xf32>
    %72 = arith.mulf %69, %71 : vector<16x512xf32>
    %73 = arith.truncf %72 : vector<16x512xf32> to vector<16x512xbf16>
    %74 = arith.truncf %53 : vector<16x512xf32> to vector<16x512xbf16>
    %c511_i32_44 = arith.constant 511 : i32
    %75 = tpu.dynamic_rotate %53 by %c511_i32_44 dim 1 : vector<16x512xf32>, i32 -> vector<16x512xf32>
    %c5_45 = arith.constant 5 : index
    %c0_46 = arith.constant 0 : index
    %c0_47 = arith.constant 0 : index
    %76 = vector.load %arg4[%c5_45, %c0_46, %c0_47] : memref<9x16x512xf32, #tpu.memory_space<vmem>>, vector<1x16x512xf32>
    %77 = vector.shape_cast %76 : vector<1x16x512xf32> to vector<16x512xf32>
    %78 = arith.mulf %75, %77 : vector<16x512xf32>
    %79 = arith.truncf %78 : vector<16x512xf32> to vector<16x512xbf16>
    %c497_i32_48 = arith.constant 497 : i32
    %80 = tpu.dynamic_rotate %53 by %c497_i32_48 dim 1 : vector<16x512xf32>, i32 -> vector<16x512xf32>
    %c6_49 = arith.constant 6 : index
    %c0_50 = arith.constant 0 : index
    %c0_51 = arith.constant 0 : index
    %81 = vector.load %arg4[%c6_49, %c0_50, %c0_51] : memref<9x16x512xf32, #tpu.memory_space<vmem>>, vector<1x16x512xf32>
    %82 = vector.shape_cast %81 : vector<1x16x512xf32> to vector<16x512xf32>
    %83 = arith.mulf %80, %82 : vector<16x512xf32>
    %84 = arith.truncf %83 : vector<16x512xf32> to vector<16x512xbf16>
    %c496_i32_52 = arith.constant 496 : i32
    %85 = tpu.dynamic_rotate %53 by %c496_i32_52 dim 1 : vector<16x512xf32>, i32 -> vector<16x512xf32>
    %c7_53 = arith.constant 7 : index
    %c0_54 = arith.constant 0 : index
    %c0_55 = arith.constant 0 : index
    %86 = vector.load %arg4[%c7_53, %c0_54, %c0_55] : memref<9x16x512xf32, #tpu.memory_space<vmem>>, vector<1x16x512xf32>
    %87 = vector.shape_cast %86 : vector<1x16x512xf32> to vector<16x512xf32>
    %88 = arith.mulf %85, %87 : vector<16x512xf32>
    %89 = arith.truncf %88 : vector<16x512xf32> to vector<16x512xbf16>
    %c495_i32_56 = arith.constant 495 : i32
    %90 = tpu.dynamic_rotate %53 by %c495_i32_56 dim 1 : vector<16x512xf32>, i32 -> vector<16x512xf32>
    %c8_57 = arith.constant 8 : index
    %c0_58 = arith.constant 0 : index
    %c0_59 = arith.constant 0 : index
    %91 = vector.load %arg4[%c8_57, %c0_58, %c0_59] : memref<9x16x512xf32, #tpu.memory_space<vmem>>, vector<1x16x512xf32>
    %92 = vector.shape_cast %91 : vector<1x16x512xf32> to vector<16x512xf32>
    %93 = arith.mulf %90, %92 : vector<16x512xf32>
    %94 = arith.truncf %93 : vector<16x512xf32> to vector<16x512xbf16>
    %95 = tpu.concatenate %58, %63, %68, %73, %74, %79, %84, %89, %94 in 0 : vector<16x512xbf16>, vector<16x512xbf16>, vector<16x512xbf16>, vector<16x512xbf16>, vector<16x512xbf16>, vector<16x512xbf16>, vector<16x512xbf16>, vector<16x512xbf16>, vector<16x512xbf16> -> vector<144x512xbf16>
    %c1_60 = arith.constant 1 : index
    %c0_61 = arith.constant 0 : index
    %c0_62 = arith.constant 0 : index
    %96 = vector.load %arg2[%c1_60, %c0_61, %c0_62] : memref<4x16x144xbf16, #tpu.memory_space<vmem>>, vector<1x16x144xbf16>
    %97 = vector.shape_cast %96 : vector<1x16x144xbf16> to vector<16x144xbf16>
    %cst_63 = arith.constant dense<0.000000e+00> : vector<16x512xf32>
    %98 = tpu.matmul %97, %95, %cst_63 {dimension_numbers = #tpu.dot_dimension_numbers<[1], [0], [0], [1], [0, 0, 1, 1], [], []>} : vector<16x144xbf16>, vector<144x512xbf16>, vector<16x512xf32> -> vector<16x512xf32>
    %c1_64 = arith.constant 1 : index
    %c0_65 = arith.constant 0 : index
    %c0_66 = arith.constant 0 : index
    %99 = vector.load %arg3[%c1_64, %c0_65, %c0_66] : memref<4x16x1xf32, #tpu.memory_space<vmem>>, vector<1x16x1xf32>
    %100 = vector.shape_cast %99 : vector<1x16x1xf32> to vector<16x1xf32>
    %101 = vector.broadcast %100 : vector<16x1xf32> to vector<16x512xf32>
    %102 = arith.addf %98, %101 : vector<16x512xf32>
    %c17_i32_67 = arith.constant 17 : i32
    %103 = tpu.dynamic_rotate %102 by %c17_i32_67 dim 1 : vector<16x512xf32>, i32 -> vector<16x512xf32>
    %c0_68 = arith.constant 0 : index
    %c0_69 = arith.constant 0 : index
    %c0_70 = arith.constant 0 : index
    %104 = vector.load %arg4[%c0_68, %c0_69, %c0_70] : memref<9x16x512xf32, #tpu.memory_space<vmem>>, vector<1x16x512xf32>
    %105 = vector.shape_cast %104 : vector<1x16x512xf32> to vector<16x512xf32>
    %106 = arith.mulf %103, %105 : vector<16x512xf32>
    %107 = arith.truncf %106 : vector<16x512xf32> to vector<16x512xbf16>
    %c16_i32_71 = arith.constant 16 : i32
    %108 = tpu.dynamic_rotate %102 by %c16_i32_71 dim 1 : vector<16x512xf32>, i32 -> vector<16x512xf32>
    %c1_72 = arith.constant 1 : index
    %c0_73 = arith.constant 0 : index
    %c0_74 = arith.constant 0 : index
    %109 = vector.load %arg4[%c1_72, %c0_73, %c0_74] : memref<9x16x512xf32, #tpu.memory_space<vmem>>, vector<1x16x512xf32>
    %110 = vector.shape_cast %109 : vector<1x16x512xf32> to vector<16x512xf32>
    %111 = arith.mulf %108, %110 : vector<16x512xf32>
    %112 = arith.truncf %111 : vector<16x512xf32> to vector<16x512xbf16>
    %c15_i32_75 = arith.constant 15 : i32
    %113 = tpu.dynamic_rotate %102 by %c15_i32_75 dim 1 : vector<16x512xf32>, i32 -> vector<16x512xf32>
    %c2_76 = arith.constant 2 : index
    %c0_77 = arith.constant 0 : index
    %c0_78 = arith.constant 0 : index
    %114 = vector.load %arg4[%c2_76, %c0_77, %c0_78] : memref<9x16x512xf32, #tpu.memory_space<vmem>>, vector<1x16x512xf32>
    %115 = vector.shape_cast %114 : vector<1x16x512xf32> to vector<16x512xf32>
    %116 = arith.mulf %113, %115 : vector<16x512xf32>
    %117 = arith.truncf %116 : vector<16x512xf32> to vector<16x512xbf16>
    %c1_i32_79 = arith.constant 1 : i32
    %118 = tpu.dynamic_rotate %102 by %c1_i32_79 dim 1 : vector<16x512xf32>, i32 -> vector<16x512xf32>
    %c3_80 = arith.constant 3 : index
    %c0_81 = arith.constant 0 : index
    %c0_82 = arith.constant 0 : index
    %119 = vector.load %arg4[%c3_80, %c0_81, %c0_82] : memref<9x16x512xf32, #tpu.memory_space<vmem>>, vector<1x16x512xf32>
    %120 = vector.shape_cast %119 : vector<1x16x512xf32> to vector<16x512xf32>
    %121 = arith.mulf %118, %120 : vector<16x512xf32>
    %122 = arith.truncf %121 : vector<16x512xf32> to vector<16x512xbf16>
    %123 = arith.truncf %102 : vector<16x512xf32> to vector<16x512xbf16>
    %c511_i32_83 = arith.constant 511 : i32
    %124 = tpu.dynamic_rotate %102 by %c511_i32_83 dim 1 : vector<16x512xf32>, i32 -> vector<16x512xf32>
    %c5_84 = arith.constant 5 : index
    %c0_85 = arith.constant 0 : index
    %c0_86 = arith.constant 0 : index
    %125 = vector.load %arg4[%c5_84, %c0_85, %c0_86] : memref<9x16x512xf32, #tpu.memory_space<vmem>>, vector<1x16x512xf32>
    %126 = vector.shape_cast %125 : vector<1x16x512xf32> to vector<16x512xf32>
    %127 = arith.mulf %124, %126 : vector<16x512xf32>
    %128 = arith.truncf %127 : vector<16x512xf32> to vector<16x512xbf16>
    %c497_i32_87 = arith.constant 497 : i32
    %129 = tpu.dynamic_rotate %102 by %c497_i32_87 dim 1 : vector<16x512xf32>, i32 -> vector<16x512xf32>
    %c6_88 = arith.constant 6 : index
    %c0_89 = arith.constant 0 : index
    %c0_90 = arith.constant 0 : index
    %130 = vector.load %arg4[%c6_88, %c0_89, %c0_90] : memref<9x16x512xf32, #tpu.memory_space<vmem>>, vector<1x16x512xf32>
    %131 = vector.shape_cast %130 : vector<1x16x512xf32> to vector<16x512xf32>
    %132 = arith.mulf %129, %131 : vector<16x512xf32>
    %133 = arith.truncf %132 : vector<16x512xf32> to vector<16x512xbf16>
    %c496_i32_91 = arith.constant 496 : i32
    %134 = tpu.dynamic_rotate %102 by %c496_i32_91 dim 1 : vector<16x512xf32>, i32 -> vector<16x512xf32>
    %c7_92 = arith.constant 7 : index
    %c0_93 = arith.constant 0 : index
    %c0_94 = arith.constant 0 : index
    %135 = vector.load %arg4[%c7_92, %c0_93, %c0_94] : memref<9x16x512xf32, #tpu.memory_space<vmem>>, vector<1x16x512xf32>
    %136 = vector.shape_cast %135 : vector<1x16x512xf32> to vector<16x512xf32>
    %137 = arith.mulf %134, %136 : vector<16x512xf32>
    %138 = arith.truncf %137 : vector<16x512xf32> to vector<16x512xbf16>
    %c495_i32_95 = arith.constant 495 : i32
    %139 = tpu.dynamic_rotate %102 by %c495_i32_95 dim 1 : vector<16x512xf32>, i32 -> vector<16x512xf32>
    %c8_96 = arith.constant 8 : index
    %c0_97 = arith.constant 0 : index
    %c0_98 = arith.constant 0 : index
    %140 = vector.load %arg4[%c8_96, %c0_97, %c0_98] : memref<9x16x512xf32, #tpu.memory_space<vmem>>, vector<1x16x512xf32>
    %141 = vector.shape_cast %140 : vector<1x16x512xf32> to vector<16x512xf32>
    %142 = arith.mulf %139, %141 : vector<16x512xf32>
    %143 = arith.truncf %142 : vector<16x512xf32> to vector<16x512xbf16>
    %144 = tpu.concatenate %107, %112, %117, %122, %123, %128, %133, %138, %143 in 0 : vector<16x512xbf16>, vector<16x512xbf16>, vector<16x512xbf16>, vector<16x512xbf16>, vector<16x512xbf16>, vector<16x512xbf16>, vector<16x512xbf16>, vector<16x512xbf16>, vector<16x512xbf16> -> vector<144x512xbf16>
    %c2_99 = arith.constant 2 : index
    %c0_100 = arith.constant 0 : index
    %c0_101 = arith.constant 0 : index
    %145 = vector.load %arg2[%c2_99, %c0_100, %c0_101] : memref<4x16x144xbf16, #tpu.memory_space<vmem>>, vector<1x16x144xbf16>
    %146 = vector.shape_cast %145 : vector<1x16x144xbf16> to vector<16x144xbf16>
    %cst_102 = arith.constant dense<0.000000e+00> : vector<16x512xf32>
    %147 = tpu.matmul %146, %144, %cst_102 {dimension_numbers = #tpu.dot_dimension_numbers<[1], [0], [0], [1], [0, 0, 1, 1], [], []>} : vector<16x144xbf16>, vector<144x512xbf16>, vector<16x512xf32> -> vector<16x512xf32>
    %c2_103 = arith.constant 2 : index
    %c0_104 = arith.constant 0 : index
    %c0_105 = arith.constant 0 : index
    %148 = vector.load %arg3[%c2_103, %c0_104, %c0_105] : memref<4x16x1xf32, #tpu.memory_space<vmem>>, vector<1x16x1xf32>
    %149 = vector.shape_cast %148 : vector<1x16x1xf32> to vector<16x1xf32>
    %150 = vector.broadcast %149 : vector<16x1xf32> to vector<16x512xf32>
    %151 = arith.addf %147, %150 : vector<16x512xf32>
    %c17_i32_106 = arith.constant 17 : i32
    %152 = tpu.dynamic_rotate %151 by %c17_i32_106 dim 1 : vector<16x512xf32>, i32 -> vector<16x512xf32>
    %c0_107 = arith.constant 0 : index
    %c0_108 = arith.constant 0 : index
    %c0_109 = arith.constant 0 : index
    %153 = vector.load %arg4[%c0_107, %c0_108, %c0_109] : memref<9x16x512xf32, #tpu.memory_space<vmem>>, vector<1x16x512xf32>
    %154 = vector.shape_cast %153 : vector<1x16x512xf32> to vector<16x512xf32>
    %155 = arith.mulf %152, %154 : vector<16x512xf32>
    %156 = arith.truncf %155 : vector<16x512xf32> to vector<16x512xbf16>
    %c16_i32_110 = arith.constant 16 : i32
    %157 = tpu.dynamic_rotate %151 by %c16_i32_110 dim 1 : vector<16x512xf32>, i32 -> vector<16x512xf32>
    %c1_111 = arith.constant 1 : index
    %c0_112 = arith.constant 0 : index
    %c0_113 = arith.constant 0 : index
    %158 = vector.load %arg4[%c1_111, %c0_112, %c0_113] : memref<9x16x512xf32, #tpu.memory_space<vmem>>, vector<1x16x512xf32>
    %159 = vector.shape_cast %158 : vector<1x16x512xf32> to vector<16x512xf32>
    %160 = arith.mulf %157, %159 : vector<16x512xf32>
    %161 = arith.truncf %160 : vector<16x512xf32> to vector<16x512xbf16>
    %c15_i32_114 = arith.constant 15 : i32
    %162 = tpu.dynamic_rotate %151 by %c15_i32_114 dim 1 : vector<16x512xf32>, i32 -> vector<16x512xf32>
    %c2_115 = arith.constant 2 : index
    %c0_116 = arith.constant 0 : index
    %c0_117 = arith.constant 0 : index
    %163 = vector.load %arg4[%c2_115, %c0_116, %c0_117] : memref<9x16x512xf32, #tpu.memory_space<vmem>>, vector<1x16x512xf32>
    %164 = vector.shape_cast %163 : vector<1x16x512xf32> to vector<16x512xf32>
    %165 = arith.mulf %162, %164 : vector<16x512xf32>
    %166 = arith.truncf %165 : vector<16x512xf32> to vector<16x512xbf16>
    %c1_i32_118 = arith.constant 1 : i32
    %167 = tpu.dynamic_rotate %151 by %c1_i32_118 dim 1 : vector<16x512xf32>, i32 -> vector<16x512xf32>
    %c3_119 = arith.constant 3 : index
    %c0_120 = arith.constant 0 : index
    %c0_121 = arith.constant 0 : index
    %168 = vector.load %arg4[%c3_119, %c0_120, %c0_121] : memref<9x16x512xf32, #tpu.memory_space<vmem>>, vector<1x16x512xf32>
    %169 = vector.shape_cast %168 : vector<1x16x512xf32> to vector<16x512xf32>
    %170 = arith.mulf %167, %169 : vector<16x512xf32>
    %171 = arith.truncf %170 : vector<16x512xf32> to vector<16x512xbf16>
    %172 = arith.truncf %151 : vector<16x512xf32> to vector<16x512xbf16>
    %c511_i32_122 = arith.constant 511 : i32
    %173 = tpu.dynamic_rotate %151 by %c511_i32_122 dim 1 : vector<16x512xf32>, i32 -> vector<16x512xf32>
    %c5_123 = arith.constant 5 : index
    %c0_124 = arith.constant 0 : index
    %c0_125 = arith.constant 0 : index
    %174 = vector.load %arg4[%c5_123, %c0_124, %c0_125] : memref<9x16x512xf32, #tpu.memory_space<vmem>>, vector<1x16x512xf32>
    %175 = vector.shape_cast %174 : vector<1x16x512xf32> to vector<16x512xf32>
    %176 = arith.mulf %173, %175 : vector<16x512xf32>
    %177 = arith.truncf %176 : vector<16x512xf32> to vector<16x512xbf16>
    %c497_i32_126 = arith.constant 497 : i32
    %178 = tpu.dynamic_rotate %151 by %c497_i32_126 dim 1 : vector<16x512xf32>, i32 -> vector<16x512xf32>
    %c6_127 = arith.constant 6 : index
    %c0_128 = arith.constant 0 : index
    %c0_129 = arith.constant 0 : index
    %179 = vector.load %arg4[%c6_127, %c0_128, %c0_129] : memref<9x16x512xf32, #tpu.memory_space<vmem>>, vector<1x16x512xf32>
    %180 = vector.shape_cast %179 : vector<1x16x512xf32> to vector<16x512xf32>
    %181 = arith.mulf %178, %180 : vector<16x512xf32>
    %182 = arith.truncf %181 : vector<16x512xf32> to vector<16x512xbf16>
    %c496_i32_130 = arith.constant 496 : i32
    %183 = tpu.dynamic_rotate %151 by %c496_i32_130 dim 1 : vector<16x512xf32>, i32 -> vector<16x512xf32>
    %c7_131 = arith.constant 7 : index
    %c0_132 = arith.constant 0 : index
    %c0_133 = arith.constant 0 : index
    %184 = vector.load %arg4[%c7_131, %c0_132, %c0_133] : memref<9x16x512xf32, #tpu.memory_space<vmem>>, vector<1x16x512xf32>
    %185 = vector.shape_cast %184 : vector<1x16x512xf32> to vector<16x512xf32>
    %186 = arith.mulf %183, %185 : vector<16x512xf32>
    %187 = arith.truncf %186 : vector<16x512xf32> to vector<16x512xbf16>
    %c495_i32_134 = arith.constant 495 : i32
    %188 = tpu.dynamic_rotate %151 by %c495_i32_134 dim 1 : vector<16x512xf32>, i32 -> vector<16x512xf32>
    %c8_135 = arith.constant 8 : index
    %c0_136 = arith.constant 0 : index
    %c0_137 = arith.constant 0 : index
    %189 = vector.load %arg4[%c8_135, %c0_136, %c0_137] : memref<9x16x512xf32, #tpu.memory_space<vmem>>, vector<1x16x512xf32>
    %190 = vector.shape_cast %189 : vector<1x16x512xf32> to vector<16x512xf32>
    %191 = arith.mulf %188, %190 : vector<16x512xf32>
    %192 = arith.truncf %191 : vector<16x512xf32> to vector<16x512xbf16>
    %193 = tpu.concatenate %156, %161, %166, %171, %172, %177, %182, %187, %192 in 0 : vector<16x512xbf16>, vector<16x512xbf16>, vector<16x512xbf16>, vector<16x512xbf16>, vector<16x512xbf16>, vector<16x512xbf16>, vector<16x512xbf16>, vector<16x512xbf16>, vector<16x512xbf16> -> vector<144x512xbf16>
    %c3_138 = arith.constant 3 : index
    %c0_139 = arith.constant 0 : index
    %c0_140 = arith.constant 0 : index
    %194 = vector.load %arg2[%c3_138, %c0_139, %c0_140] : memref<4x16x144xbf16, #tpu.memory_space<vmem>>, vector<1x16x144xbf16>
    %195 = vector.shape_cast %194 : vector<1x16x144xbf16> to vector<16x144xbf16>
    %cst_141 = arith.constant dense<0.000000e+00> : vector<16x512xf32>
    %196 = tpu.matmul %195, %193, %cst_141 {dimension_numbers = #tpu.dot_dimension_numbers<[1], [0], [0], [1], [0, 0, 1, 1], [], []>} : vector<16x144xbf16>, vector<144x512xbf16>, vector<16x512xf32> -> vector<16x512xf32>
    %c3_142 = arith.constant 3 : index
    %c0_143 = arith.constant 0 : index
    %c0_144 = arith.constant 0 : index
    %197 = vector.load %arg3[%c3_142, %c0_143, %c0_144] : memref<4x16x1xf32, #tpu.memory_space<vmem>>, vector<1x16x1xf32>
    %198 = vector.shape_cast %197 : vector<1x16x1xf32> to vector<16x1xf32>
    %199 = vector.broadcast %198 : vector<16x1xf32> to vector<16x512xf32>
    %200 = arith.addf %196, %199 : vector<16x512xf32>
    %201 = vector.extract_strided_slice %200 {offsets = [0, 0], sizes = [16, 256], strides = [1, 1]} : vector<16x512xf32> to vector<16x256xf32>
    %c0_145 = arith.constant 0 : index
    %c0_146 = arith.constant 0 : index
    %c0_147 = arith.constant 0 : index
    %202 = vector.load %arg5[%c0_145, %c0_146, %c0_147] : memref<2x16x256xf32, #tpu.memory_space<vmem>>, vector<1x16x256xf32>
    %203 = vector.shape_cast %202 : vector<1x16x256xf32> to vector<16x256xf32>
    %204 = vector.shape_cast %201 : vector<16x256xf32> to vector<1x16x256xf32>
    tpu.vector_store %arg5[%c0_145, %c0_146, %c0_147], %204 {strides = array<i32>} : memref<2x16x256xf32, #tpu.memory_space<vmem>>, vector<1x16x256xf32>,
    %205 = vector.extract_strided_slice %200 {offsets = [0, 256], sizes = [16, 256], strides = [1, 1]} : vector<16x512xf32> to vector<16x256xf32>
    %c1_148 = arith.constant 1 : index
    %c0_149 = arith.constant 0 : index
    %c0_150 = arith.constant 0 : index
    %206 = vector.load %arg5[%c1_148, %c0_149, %c0_150] : memref<2x16x256xf32, #tpu.memory_space<vmem>>, vector<1x16x256xf32>
    %207 = vector.shape_cast %206 : vector<1x16x256xf32> to vector<16x256xf32>
    %208 = vector.shape_cast %205 : vector<16x256xf32> to vector<1x16x256xf32>
    tpu.vector_store %arg5[%c1_148, %c0_149, %c0_150], %208 {strides = array<i32>} : memref<2x16x256xf32, #tpu.memory_space<vmem>>, vector<1x16x256xf32>,
    return
  }
  func.func @transform_0(%arg0: i32) -> (i32, i32, i32) {
    %c0_i32 = arith.constant 0 : i32
    %c0_i32_0 = arith.constant 0 : i32
    %c0_i32_1 = arith.constant 0 : i32
    %c0_i32_2 = arith.constant 0 : i32
    return %c0_i32, %c0_i32_0, %c0_i32_1 : i32, i32, i32
  }
  func.func @transform_1(%arg0: i32) -> (i32, i32, i32) {
    %c0_i32 = arith.constant 0 : i32
    %c0_i32_0 = arith.constant 0 : i32
    %c0_i32_1 = arith.constant 0 : i32
    %c0_i32_2 = arith.constant 0 : i32
    return %c0_i32, %c0_i32_0, %c0_i32_1 : i32, i32, i32
  }
  func.func @transform_2(%arg0: i32) -> (i32, i32, i32) {
    %c0_i32 = arith.constant 0 : i32
    %c0_i32_0 = arith.constant 0 : i32
    %c0_i32_1 = arith.constant 0 : i32
    %c0_i32_2 = arith.constant 0 : i32
    return %c0_i32, %c0_i32_0, %c0_i32_1 : i32, i32, i32
  }
  func.func @transform_3(%arg0: i32) -> (i32, i32, i32) {
    %c0_i32 = arith.constant 0 : i32
    %c0_i32_0 = arith.constant 0 : i32
    %c0_i32_1 = arith.constant 0 : i32
    %c0_i32_2 = arith.constant 0 : i32
    return %c0_i32, %c0_i32_0, %c0_i32_1 : i32, i32, i32
  }
  func.func @transform_4(%arg0: i32) -> (i32, i32, i32) {
    %c0_i32 = arith.constant 0 : i32
    %c0_i32_0 = arith.constant 0 : i32
    %c0_i32_1 = arith.constant 0 : i32
    %c0_i32_2 = arith.constant 0 : i32
    return %c0_i32, %c0_i32_0, %c0_i32_1 : i32, i32, i32
  }
}

</mosaic_0001>

<bundles_post_ra>
// kernel: test_network_forward.1
= control target key start
LH: loop header
LB: loop body
LE: loop exit
PB: predicated region body
PF: predicated region fallthrough
CT: control target
= control target key end

     0   :  { %s2815_s21 = smov 112   ;;  %s2816_s28 = smov 113   ;;  %v43_v11 = vlaneseq  ;;  %vm603_vm6 = vcmask 130048   ;;  %s5838_s0 = inlined_call_operand.vmem [shape: f32[2,16,256], index: 0, kind: input, shape index: {}]   ;;  %s5839_s3 = inlined_call_operand.vmem [shape: f32[9,16,512], index: 3, kind: input, shape index: {}]   ;;  %s5840_s1 = inlined_call_operand.vmem [shape: bf16[4,16,144], index: 1, kind: input, shape index: {}]   ;;  %s5841_s2 = inlined_call_operand.vmem [shape: f32[4,16,1], index: 2, kind: input, shape index: {}]   ;;  %s5842_s4 = inlined_call_operand.vmem [shape: f32[2,16,256], index: 4, kind: output, shape index: {}]  }
   0x1   :  { %v2852_v0 = vld [vmem:[%s5838_s0 + $0x20] sm:$0xff]  ;;  %v2857_v1 = vld [vmem:[%s5838_s0 + $0x8] sm:$0xff]  ;;  %v2873_v3 = vld [vmem:[%s5838_s0 + $0x30] sm:$0xff]  ;;  %s2817_s7 = smov 127   ;;  %s2819_s8 = smov 1  }
   0x2   :  { %v2862_v2 = vld [vmem:[%s5838_s0] sm:$0xff]  ;;  %316 = vrot.lane.b32.xlu2 %v2852_v0, %s2815_s21  ;;  %312 = vrot.lane.b32.xlu1 %v2857_v1, %s2815_s21  ;;  %v2878_v4 = vld [vmem:[%s5838_s0 + $0x18] sm:$0xff]  ;;  %s2820_s9 = smov 15   ;;  %v2977_v12 = vand.u32 127, %v43_v11  ;;  %s2821_s10 = smov 16  }
   0x3   :  { %308 = vrot.lane.b32.xlu0 %v2862_v2, %s2815_s21  ;;  %v2883_v5 = vld [vmem:[%s5838_s0 + $0x10] sm:$0xff]  ;;  %v2906_v6 = vld [vmem:[%s5838_s0 + $0x38] sm:$0xff]  ;;  %v2911_v7 = vld [vmem:[%s5838_s0 + $0x28] sm:$0xff]  ;;  %s2818_s0 = smov 111   ;;  %s2822_s29 = smov 17  }
   0x4   :  { %vm324_vm0 = vcmp.lt.s32.totalorder %v2977_v12, 112  ;;  %v2613_v16 = vld [vmem:[%s5839_s3 + $0x1c8] sm:$0xff]  ;;  %v2612_v18 = vld [vmem:[%s5839_s3 + $0x1c0] sm:$0xff]  ;;  %vm278_vm1 = vcmp.lt.s32.totalorder %v2977_v12, 113  ;;  %v2618_v59 = vld [vmem:[%s5839_s3 + $0x1f0] sm:$0xff]  ;;  %vm232_vm2 = vcmp.lt.s32.totalorder %v2977_v12, 127 }
   0x5   :  { %v2617_v22 = vld [vmem:[%s5839_s3 + $0x1e8] sm:$0xff]  ;;  %v2616_v25 = vld [vmem:[%s5839_s3 + $0x1e0] sm:$0xff]  ;;  %v2619_v60 = vld [vmem:[%s5839_s3 + $0x1f8] sm:$0xff]  ;;  %vm370_vm3 = vcmp.lt.s32.totalorder %v2977_v12, 111  ;;  %vm182_vm4 = vcmp.lt.s32.totalorder %v2977_v12, 1  ;;  %vm136_vm5 = vcmp.lt.s32.totalorder %v2977_v12, 15 }
   0x6   :  { %v2604_v42 = vld [vmem:[%s5839_s3 + $0x180] sm:$0xff]  ;;  %v2605_v44 = vld [vmem:[%s5839_s3 + $0x188] sm:$0xff]  ;;  %v2615_v11 = vld [vmem:[%s5839_s3 + $0x1d8] sm:$0xff]  ;;  %vm90_vm7 = vcmp.lt.s32.totalorder %v2977_v12, 16  ;;  %vm45_vm8 = vcmp.lt.s32.totalorder %v2977_v12, 17 }
   0x7   :  { %v2609_v47 = vld [vmem:[%s5839_s3 + $0x1a8] sm:$0xff]  ;;  %v2608_v49 = vld [vmem:[%s5839_s3 + $0x1a0] sm:$0xff] }
   0xa   :  { %318 = vrot.lane.b32.xlu2 %v2873_v3, %s2815_s21  ;;  %314 = vrot.lane.b32.xlu1 %v2878_v4, %s2815_s21 }
   0xb   :  { %310 = vrot.lane.b32.xlu0 %v2883_v5, %s2815_s21 }
  0x12   :  { %266 = vrot.lane.b32.xlu2 %v2857_v1, %s2816_s28  ;;  %264 = vrot.lane.b32.xlu1 %v2883_v5, %s2816_s28 }
  0x13   :  { %262 = vrot.lane.b32.xlu0 %v2862_v2, %s2816_s28 }
  0x1a   :  { %272 = vrot.lane.b32.xlu2 %v2873_v3, %s2816_s28  ;;  %270 = vrot.lane.b32.xlu1 %v2852_v0, %s2816_s28 }
  0x1b   :  { %268 = vrot.lane.b32.xlu0 %v2878_v4, %s2816_s28 }
  0x22   :  { %322 = vrot.lane.b32.xlu1 %v2906_v6, %s2815_s21  ;;  %216 = vrot.lane.b32.xlu2 %v2862_v2, %s2817_s7 }
  0x23   :  { %320 = vrot.lane.b32.xlu0 %v2911_v7, %s2815_s21 }
  0x2a   :  { %220 = vrot.lane.b32.xlu1 %v2857_v1, %s2817_s7  ;;  %222 = vrot.lane.b32.xlu2 %v2878_v4, %s2817_s7 }
  0x2b   :  { %218 = vrot.lane.b32.xlu0 %v2883_v5, %s2817_s7 }
  0x32   :  { %226 = vrot.lane.b32.xlu1 %v2873_v3, %s2817_s7  ;;  %274 = vrot.lane.b32.xlu2 %v2911_v7, %s2816_s28 }
  0x33   :  { %224 = vrot.lane.b32.xlu0 %v2852_v0, %s2817_s7 }
  0x3a   :  { %354 = vrot.lane.b32.xlu1 %v2862_v2, %s2818_s0  ;;  %356 = vrot.lane.b32.xlu2 %v2883_v5, %s2818_s0 }
  0x3b   :  { %276 = vrot.lane.b32.xlu0 %v2906_v6, %s2816_s28 }
  0x42   :  { %360 = vrot.lane.b32.xlu1 %v2878_v4, %s2818_s0  ;;  %362 = vrot.lane.b32.xlu2 %v2852_v0, %s2818_s0 }
  0x43   :  { %358 = vrot.lane.b32.xlu0 %v2857_v1, %s2818_s0 }
  0x4a   :  { %228 = vrot.lane.b32.xlu1 %v2911_v7, %s2817_s7  ;;  %230 = vrot.lane.b32.xlu2 %v2906_v6, %s2817_s7 }
  0x4b   :  { %364 = vrot.lane.b32.xlu0 %v2873_v3, %s2818_s0 }
  0x52   :  { %168 = vrot.lane.b32.xlu1 %v2883_v5, %s2819_s8  ;;  %170 = vrot.lane.b32.xlu2 %v2857_v1, %s2819_s8 }
  0x53   :  { %166 = vrot.lane.b32.xlu0 %v2862_v2, %s2819_s8 }
  0x5a   :  { %178 = vrot.lane.b32.xlu1 %v2911_v7, %s2819_s8  ;;  %180 = vrot.lane.b32.xlu2 %v2906_v6, %s2819_s8 }
  0x5b   :  { %172 = vrot.lane.b32.xlu0 %v2878_v4, %s2819_s8 }
  0x5c   :  { %v2961_v8 = vpop.permute.xlu2 %316 }
  0x62   :  { %122 = vrot.lane.b32.xlu1 %v2883_v5, %s2820_s9  ;;  %124 = vrot.lane.b32.xlu2 %v2857_v1, %s2820_s9 }
  0x63   :  { %120 = vrot.lane.b32.xlu0 %v2862_v2, %s2820_s9 }
  0x64   :  { %v2969_v9 = vpop.permute.xlu2 %318 }
  0x6a   :  { %132 = vrot.lane.b32.xlu1 %v2911_v7, %s2820_s9  ;;  %134 = vrot.lane.b32.xlu2 %v2906_v6, %s2820_s9 }
  0x6b   :  { %126 = vrot.lane.b32.xlu0 %v2878_v4, %s2820_s9 }
  0x6c   :  { %v267_v10 = vpop.permute.xlu2 %266 }
  0x72   :  { %176 = vrot.lane.b32.xlu1 %v2873_v3, %s2819_s8  ;;  %74 = vrot.lane.b32.xlu2 %v2862_v2, %s2821_s10 }
  0x73   :  { %174 = vrot.lane.b32.xlu0 %v2852_v0, %s2819_s8 }
  0x74   :  { %v2985_v13 = vpop.permute.xlu2 %272  ;;  %v313_v14 = vpop.permute.xlu1 %312 }
  0x75   :  { %v2988_v15 = vpop.permute.xlu0 %308  ;;  %v327_v17 = vsel %vm324_vm0, %v313_v14, %v2961_v8 }
  0x76   :  { %v329_v19 = vsel %vm324_vm0, %v2988_v15, %v313_v14  ;;  %v343_v20 = vmul.f32 %v2613_v16, %v327_v17 }
  0x77   :  { %v342_v21 = vmul.f32 %v2612_v18, %v329_v19 }
  0x79   :  { %v350_v31 = vpack.c.bf16 %v343_v20, %v342_v21 }
  0x7a   :  { %78 = vrot.lane.b32.xlu1 %v2857_v1, %s2821_s10  ;;  %80 = vrot.lane.b32.xlu2 %v2878_v4, %s2821_s10 }
  0x7b   :  { %76 = vrot.lane.b32.xlu0 %v2883_v5, %s2821_s10  ;;  %v544_v33 = vunpack.c.l.b16 %v350_v31  ;;  %v545_v35 = vunpack.c.h.b16 %v350_v31 }
  0x7c   :  { %v315_v23 = vpop.permute.xlu1 %314  ;;  %v3011_v24 = vpop.permute.xlu2 %216 }
  0x7d   :  { %v328_v26 = vsel %vm324_vm0, %v315_v23, %v2969_v9  ;;  %v311_v27 = vpop.permute.xlu0 %310 }
  0x7e   :  { %v347_v28 = vmul.f32 %v2617_v22, %v328_v26  ;;  %v330_v29 = vsel %vm324_vm0, %v311_v27, %v315_v23 }
  0x7f   :  { %v346_v30 = vmul.f32 %v2616_v25, %v330_v29 }
  0x81   :  { %v352_v32 = vpack.c.bf16 %v347_v28, %v346_v30 }
  0x82   :  { %88 = vrot.lane.b32.xlu1 %v2906_v6, %s2821_s10  ;;  %128 = vrot.lane.b32.xlu2 %v2852_v0, %s2820_s9 }
  0x83   :  { %86 = vrot.lane.b32.xlu0 %v2911_v7, %s2821_s10  ;;  %v548_v34 = vunpack.c.l.b16 %v352_v32  ;;  %v549_v36 = vunpack.c.h.b16 %v352_v32 }
  0x84   :  { %v3027_v37 = vpop.permute.xlu1 %264  ;;  %v3029_v38 = vpop.permute.xlu2 %222 }
  0x85   :  { %v3031_v39 = vpop.permute.xlu0 %262  ;;  %v552_v40 = vpack.c.b16 %v548_v34, %v544_v33  ;;  %v3033_v41 = vpack.c.b16 %v549_v36, %v545_v35  ;;  %v2600_v35 = vld [vmem:[%s5839_s3 + $0x160] sm:$0xff] }
  0x86   :  { %v283_v43 = vsel %vm278_vm1, %v3031_v39, %v267_v10 }
  0x87   :  { %607 = vmatpush.bf16.msra.mxu0 %v552_v40  ;;  %v296_v51 = vmul.f32 %v2604_v42, %v283_v43  ;;  %v2601_v40 = vld [vmem:[%s5839_s3 + $0x168] sm:$0xff]  ;;  %v2596_v42 = vld [vmem:[%s5839_s3 + $0x140] sm:$0xff] }
  0x8a   :  { %366 = vrot.lane.b32.xlu1 %v2911_v7, %s2818_s0  ;;  %368 = vrot.lane.b32.xlu2 %v2906_v6, %s2818_s0 }
  0x8b   :  { %130 = vrot.lane.b32.xlu0 %v2873_v3, %s2820_s9 }
  0x8c   :  { %v3051_v45 = vpop.permute.xlu1 %270  ;;  %v3053_v46 = vpop.permute.xlu2 %274 }
  0x8d   :  { %v281_v48 = vsel %vm278_vm1, %v267_v10, %v3051_v45  ;;  %v269_v50 = vpop.permute.xlu0 %268  ;;  %v2614_v10 = vld [vmem:[%s5839_s3 + $0x1d0] sm:$0xff] }
  0x8e   :  { %v297_v52 = vmul.f32 %v2605_v44, %v281_v48  ;;  %v282_v53 = vsel %vm278_vm1, %v269_v50, %v2985_v13  ;;  %v284_v54 = vsel %vm278_vm1, %v3027_v37, %v269_v50  ;;  %v2597_v48 = vld [vmem:[%s5839_s3 + $0x148] sm:$0xff] }
  0x8f   :  { %v301_v55 = vmul.f32 %v2609_v47, %v282_v53  ;;  %v300_v56 = vmul.f32 %v2608_v49, %v284_v54  ;;  %v2606_v54 = vld [vmem:[%s5839_s3 + $0x190] sm:$0xff] }
  0x90   :  { %v3070_v57 = vpack.c.bf16 %v297_v52, %v296_v51 }
  0x91   :  { %v3074_v58 = vpack.c.bf16 %v301_v55, %v300_v56  ;;  %v2607_v55 = vld [vmem:[%s5839_s3 + $0x198] sm:$0xff]  ;;  %v285_v56 = vsel %vm278_vm1, %v3053_v46, %v3031_v39  ;;  %v2610_v39 = vld [vmem:[%s5839_s3 + $0x1b0] sm:$0xff] }
  0x92   :  { %29 = vrot.lane.b32.xlu1 %v2883_v5, %s2822_s29  ;;  %31 = vrot.lane.b32.xlu2 %v2857_v1, %s2822_s29  ;;  %v524_v61 = vunpack.c.l.b16 %v3070_v57 }
  0x93   :  { %27 = vrot.lane.b32.xlu0 %v2862_v2, %s2822_s29  ;;  %v528_v14 = vunpack.c.l.b16 %v3074_v58 }
  0x94   :  { %v323_v62 = vpop.permute.xlu1 %322  ;;  %v3087_v63 = vpop.permute.xlu2 %356 }
  0x95   :  { %v326_v16 = vsel %vm324_vm0, %v2969_v9, %v323_v62  ;;  %v332_v17 = vsel %vm324_vm0, %v323_v62, %v311_v27  ;;  %v321_v18 = vpop.permute.xlu0 %320  ;;  %v532_v26 = vpack.c.b16 %v528_v14, %v524_v61 }
  0x96   :  { %v348_v19 = vmul.f32 %v2618_v59, %v326_v16  ;;  %v349_v20 = vmul.f32 %v2619_v60, %v332_v17  ;;  %v325_v21 = vsel %vm324_vm0, %v2961_v8, %v321_v18  ;;  %v331_v22 = vsel %vm324_vm0, %v321_v18, %v2988_v15 }
  0x97   :  { %v344_v23 = vmul.f32 %v2614_v10, %v325_v21  ;;  %v345_v25 = vmul.f32 %v2615_v11, %v331_v22  ;;  %608 = vmatpush.bf16.msra.mxu0 %v532_v26  ;;  %v299_v11 = vmul.f32 %v2607_v55, %v285_v56  ;;  %v3193_v26 = vpack.c.bf16 %v2857_v1, %v2862_v2  ;;  %v2624_v55 = vld [vmem:[%s5839_s3 + $0x220] sm:$0xff] }
  0x98   :  { %v353_v28 = vpack.c.bf16 %v349_v20, %v348_v19 }
  0x99   :  { %v351_v9 = vpack.c.bf16 %v345_v25, %v344_v23 }
  0x9a   :  { %39 = vrot.lane.b32.xlu1 %v2911_v7, %s2822_s29  ;;  %v550_v27 = vunpack.c.l.b16 %v353_v28  ;;  %v551_v29 = vunpack.c.h.b16 %v353_v28  ;;  %41 = vrot.lane.b32.xlu2 %v2906_v6, %s2822_s29  ;;  %v3197_v28 = vpack.c.bf16 %v2878_v4, %v2883_v5  ;;  %v2602_v5 = vld [vmem:[%s5839_s3 + $0x170] sm:$0xff] }
  0x9b   :  { %33 = vrot.lane.b32.xlu0 %v2878_v4, %s2822_s29  ;;  %v546_v8 = vunpack.c.l.b16 %v351_v9  ;;  %v547_v30 = vunpack.c.h.b16 %v351_v9 }
  0x9c   :  { %v221_v15 = vpop.permute.xlu1 %220  ;;  %v3113_v31 = vpop.permute.xlu2 %362 }
  0x9d   :  { %v3115_v32 = vpop.permute.xlu0 %218  ;;  %v554_v33 = vpack.c.b16 %v550_v27, %v546_v8  ;;  %v3117_v34 = vpack.c.b16 %v551_v29, %v547_v30  ;;  %v237_v43 = vsel %vm232_vm2, %v3011_v24, %v221_v15  ;;  %v484_v27 = vunpack.c.l.b16 %v3193_v26 }
  0x9e   :  { %v238_v36 = vsel %vm232_vm2, %v3115_v32, %v3029_v38  ;;  %v250_v59 = vmul.f32 %v2596_v42, %v237_v43  ;;  %v2620_v43 = vld [vmem:[%s5839_s3 + $0x200] sm:$0xff] }
  0x9f   :  { %663 = vmatpush.bf16.msra.mxu1 %v554_v33  ;;  %v254_v51 = vmul.f32 %v2600_v35, %v238_v36  ;;  %v2603_v36 = vld [vmem:[%s5839_s3 + $0x178] sm:$0xff] }
  0xa2   :  { %84 = vrot.lane.b32.xlu1 %v2873_v3, %s2821_s10  ;;  %35 = vrot.lane.b32.xlu2 %v2852_v0, %s2822_s29 }
  0xa3   :  { %82 = vrot.lane.b32.xlu0 %v2852_v0, %s2821_s10 }
  0xa4   :  { %v227_v44 = vpop.permute.xlu1 %226  ;;  %v231_v47 = vpop.permute.xlu2 %230 }
  0xa5   :  { %v236_v49 = vsel %vm232_vm2, %v3029_v38, %v227_v44  ;;  %v3148_v50 = vpop.permute.xlu0 %224  ;;  %v279_v38 = vsel %vm278_vm1, %v3051_v45, %v3053_v46  ;;  %v2611_v46 = vld [vmem:[%s5839_s3 + $0x1b8] sm:$0xff]  ;;  %v240_v42 = vsel %vm232_vm2, %v231_v47, %v3115_v32 }
  0xa6   :  { %v255_v52 = vmul.f32 %v2601_v40, %v236_v49  ;;  %v235_v53 = vsel %vm232_vm2, %v221_v15, %v3148_v50  ;;  %v298_v10 = vmul.f32 %v2606_v54, %v279_v38  ;;  %v234_v40 = vsel %vm232_vm2, %v227_v44, %v231_v47  ;;  %v2599_v54 = vld [vmem:[%s5839_s3 + $0x158] sm:$0xff] }
  0xa7   :  { %v251_v60 = vmul.f32 %v2597_v48, %v235_v53  ;;  %v2621_v48 = vld [vmem:[%s5839_s3 + $0x208] sm:$0xff]  ;;  %v2598_v53 = vld [vmem:[%s5839_s3 + $0x150] sm:$0xff] }
  0xa8   :  { %v3167_v61 = vpack.c.bf16 %v255_v52, %v254_v51  ;;  %v305_v22 = vpack.c.bf16 %v299_v11, %v298_v10  ;;  %v256_v51 = vmul.f32 %v2602_v5, %v234_v40  ;;  %v257_v52 = vmul.f32 %v2603_v36, %v240_v42 }
  0xa9   :  { %v3169_v62 = vpack.c.bf16 %v251_v60, %v250_v59  ;;  %v2625_v59 = vld [vmem:[%s5839_s3 + $0x228] sm:$0xff]  ;;  %v525_v5 = vunpack.c.h.b16 %v3070_v57  ;;  %v529_v36 = vunpack.c.h.b16 %v3074_v58  ;;  %v3263_v40 = vpack.c.bf16 %v2911_v7, %v2852_v0  ;;  %v2588_v7 = vld [vmem:[%s5839_s3 + $0xc0] sm:$0xff] }
  0xaa   :  { %v508_v14 = vunpack.c.l.b16 %v3167_v61  ;;  %v526_v29 = vunpack.c.l.b16 %v305_v22  ;;  %v527_v30 = vunpack.c.h.b16 %v305_v22  ;;  %v3267_v42 = vpack.c.bf16 %v2906_v6, %v2873_v3 }
  0xab   :  { %37 = vrot.lane.b32.xlu0 %v2873_v3, %s2822_s29  ;;  %v504_v45 = vunpack.c.l.b16 %v3169_v62  ;;  %v533_v58 = vpack.c.b16 %v529_v36, %v525_v5  ;;  %v509_v0 = vunpack.c.h.b16 %v3167_v61  ;;  %v2589_v3 = vld [vmem:[%s5839_s3 + $0xc8] sm:$0xff] }
  0xac   :  { %v3175_v16 = vpop.permute.xlu1 %354  ;;  %v3177_v17 = vpop.permute.xlu2 %170  ;;  %v490_v57 = vunpack.c.l.b16 %v3267_v42 }
  0xad   :  { %v277_v18 = vpop.permute.xlu0 %276  ;;  %v512_v19 = vpack.c.b16 %v508_v14, %v504_v45 }
  0xae   :  { %v280_v20 = vsel %vm278_vm1, %v2985_v13, %v277_v18  ;;  %v286_v21 = vsel %vm278_vm1, %v277_v18, %v3027_v37  ;;  %v488_v13 = vunpack.c.l.b16 %v3197_v28 }
  0xaf   :  { %v302_v23 = vmul.f32 %v2610_v39, %v280_v20  ;;  %v303_v25 = vmul.f32 %v2611_v46, %v286_v21  ;;  %609 = vmatpush.bf16.msra.mxu0 %v512_v19  ;;  %v261_v46 = vpack.c.bf16 %v257_v52, %v256_v51  ;;  %v2593_v51 = vld [vmem:[%s5839_s3 + $0xe8] sm:$0xff]  ;;  %v485_v52 = vunpack.c.h.b16 %v3193_v26 }
  0xb0   :  { %v492_v37 = vpack.c.b16 %v488_v13, %v484_v27 }
  0xb1   :  { %v307_v9 = vpack.c.bf16 %v303_v25, %v302_v23  ;;  %v510_v25 = vunpack.c.l.b16 %v261_v46 }
  0xb3   :  { %v530_v8 = vunpack.c.l.b16 %v307_v9  ;;  %v531_v15 = vunpack.c.h.b16 %v307_v9  ;;  %610 = vmatpush.bf16.msra.mxu0 %v492_v37 }
  0xb4   :  { %v361_v33 = vpop.permute.xlu1 %360  ;;  %v3204_v4 = vpop.permute.xlu2 %180 }
  0xb5   :  { %v359_v35 = vpop.permute.xlu0 %358  ;;  %v534_v1 = vpack.c.b16 %v530_v8, %v526_v29  ;;  %v3202_v2 = vpack.c.b16 %v531_v15, %v527_v30  ;;  %v376_v38 = vsel %vm370_vm3, %v3087_v63, %v361_v33 }
  0xb6   :  { %v373_v49 = vsel %vm370_vm3, %v359_v35, %v3113_v31  ;;  %v375_v44 = vsel %vm370_vm3, %v3175_v16, %v359_v35  ;;  %v392_v18 = vmul.f32 %v2624_v55, %v376_v38 }
  0xb7   :  { %664 = vmatpush.bf16.msra.mxu1 %v534_v1  ;;  %v388_v32 = vmul.f32 %v2620_v43, %v375_v44  ;;  %v389_v47 = vmul.f32 %v2621_v48, %v373_v49  ;;  %v486_v43 = vunpack.c.l.b16 %v3263_v40  ;;  %v505_v49 = vunpack.c.h.b16 %v3169_v62  ;;  %v2592_v44 = vld [vmem:[%s5839_s3 + $0xe0] sm:$0xff] }
  0xb9   :  { %v396_v20 = vpack.c.bf16 %v389_v47, %v388_v32  ;;  %v489_v32 = vunpack.c.h.b16 %v3197_v28 }
  0xbb   :  { %v564_v27 = vunpack.c.l.b16 %v396_v20  ;;  %v565_v29 = vunpack.c.h.b16 %v396_v20 }
  0xbc   :  { %v229_v56 = vpop.permute.xlu1 %228  ;;  %v3255_v21 = vpop.permute.xlu2 %124 }
  0xbd   :  { %v233_v60 = vsel %vm232_vm2, %v3148_v50, %v229_v56  ;;  %v239_v10 = vsel %vm232_vm2, %v229_v56, %v3011_v24  ;;  %v3250_v11 = vpop.permute.xlu0 %364  ;;  %v511_v24 = vunpack.c.h.b16 %v261_v46  ;;  %v513_v56 = vpack.c.b16 %v509_v0, %v505_v49  ;;  %v2595_v49 = vld [vmem:[%s5839_s3 + $0xf8] sm:$0xff] }
  0xbe   :  { %v252_v14 = vmul.f32 %v2598_v53, %v233_v60  ;;  %v253_v45 = vmul.f32 %v2599_v54, %v239_v10  ;;  %v374_v39 = vsel %vm370_vm3, %v361_v33, %v3250_v11  ;;  %v493_v10 = vpack.c.b16 %v489_v32, %v485_v52  ;;  %v3364_v52 = vld [vmem:[%s5839_s3 + $0xd8] sm:$0xff] }
  0xbf   :  { %v393_v19 = vmul.f32 %v2625_v59, %v374_v39 }
  0xc0   :  { %v259_v22 = vpack.c.bf16 %v253_v45, %v252_v14 }
  0xc1   :  { %v398_v50 = vpack.c.bf16 %v393_v19, %v392_v18 }
  0xc2   :  { %v506_v23 = vunpack.c.l.b16 %v259_v22  ;;  %v507_v9 = vunpack.c.h.b16 %v259_v22 }
  0xc3   :  { %v568_v13 = vunpack.c.l.b16 %v398_v50  ;;  %v569_v8 = vunpack.c.h.b16 %v398_v50 }
  0xc4   :  { %v169_v37 = vpop.permute.xlu1 %168  ;;  %v514_v30 = vpack.c.b16 %v510_v25, %v506_v23  ;;  %v3257_v15 = vpack.c.b16 %v511_v24, %v507_v9  ;;  %v3273_v48 = vpop.permute.xlu2 %134  ;;  %v3310_v23 = vld [vmem:[%s5839_s3 + $0x88] sm:$0xff]  ;;  %v3318_v9 = vld [vmem:[%s5839_s3 + $0x80] sm:$0xff] }
  0xc5   :  { %v167_v33 = vpop.permute.xlu0 %166  ;;  %v572_v35 = vpack.c.b16 %v568_v13, %v564_v27  ;;  %v573_v1 = vpack.c.b16 %v569_v8, %v565_v29  ;;  %v190_v61 = vsel %vm182_vm4, %v3204_v4, %v169_v37  ;;  %v2584_v24 = vld [vmem:[%s5839_s3 + $0xa0] sm:$0xff]  ;;  %v2585_v29 = vld [vmem:[%s5839_s3 + $0xa8] sm:$0xff] }
  0xc6   :  { %665 = vmatpush.bf16.msra.mxu1 %v514_v30  ;;  %v187_v6 = vsel %vm182_vm4, %v167_v33, %v3177_v17  ;;  %v204_v59 = vmul.f32 %v2592_v44, %v190_v61 }
  0xc7   :  { %628 = vmatpush.bf16.msra.mxu2 %v572_v35  ;;  %656 = vmatpush.bf16.msra.mxu3 %v573_v1  ;;  %v201_v54 = vmul.f32 %v2589_v3, %v187_v6 }
  0xcb   :  { %635 = vmatpush.bf16.msrb.mxu2 %v3033_v41  ;;  %v494_v41 = vpack.c.b16 %v490_v57, %v486_v43 }
  0xcc   :  { %v3292_v62 = vpop.permute.xlu1 %178  ;;  %v3304_v18 = vpop.permute.xlu2 %74 }
  0xcd   :  { %v189_v47 = vsel %vm182_vm4, %v3292_v62, %v167_v33  ;;  %v173_v53 = vpop.permute.xlu0 %172  ;;  %666 = vmatpush.bf16.msra.mxu1 %v494_v41 }
  0xce   :  { %v200_v55 = vmul.f32 %v2588_v7, %v189_v47  ;;  %v188_v38 = vsel %vm182_vm4, %v169_v37, %v173_v53 }
  0xcf   :  { %636 = vmatpush.bf16.msrb.mxu2 %v533_v58  ;;  %v205_v60 = vmul.f32 %v2593_v51, %v188_v38  ;;  %v3346_v58 = vld [vmem:[%s5839_s3 + $0xf0] sm:$0xff] }
  0xd0   :  { %v208_v14 = vpack.c.bf16 %v201_v54, %v200_v55  ;;  %v3359_v51 = vld [vmem:[%s5839_s3 + $0xd0] sm:$0xff] }
  0xd1   :  { %v210_v26 = vpack.c.bf16 %v205_v60, %v204_v59  ;;  %v2632_v59 = vld [vmem:[%s5840_s1 + $0x8] sm:$0xf0] }
  0xd2   :  { %v464_v45 = vunpack.c.l.b16 %v208_v14  ;;  %v465_v28 = vunpack.c.h.b16 %v208_v14 }
  0xd3   :  { %637 = vmatpush.bf16.msrb.mxu2 %v513_v56  ;;  %v468_v39 = vunpack.c.l.b16 %v210_v26  ;;  %v469_v46 = vunpack.c.h.b16 %v210_v26  ;;  %v2692_v56 = vld [vmem:[%s5840_s1 + $0x4] sm:$0xf] }
  0xd4   :  { %v123_v19 = vpop.permute.xlu1 %122  ;;  %v3336_v30 = vpop.permute.xlu2 %80 }
  0xd5   :  { %v121_v20 = vpop.permute.xlu0 %120  ;;  %v472_v22 = vpack.c.b16 %v468_v39, %v464_v45  ;;  %v473_v50 = vpack.c.b16 %v469_v46, %v465_v28  ;;  %v144_v27 = vsel %vm136_vm5, %v3273_v48, %v123_v19 }
  0xd6   :  { %v141_v25 = vsel %vm136_vm5, %v121_v20, %v3255_v21  ;;  %v158_v5 = vmul.f32 %v2584_v24, %v144_v27  ;;  %v3403_v24 = vld [vmem:[%s5839_s3 + $0x68] sm:$0xff] }
  0xd7   :  { %638 = vmatpush.bf16.msrb.mxu2 %v493_v10  ;;  %611 = vmatpush.bf16.msra.mxu0 %v472_v22  ;;  %v155_v33 = vmul.f32 %v3310_v23, %v141_v25  ;;  %v491_v22 = vunpack.c.h.b16 %v3267_v42  ;;  %v3416_v42 = vld [vmem:[%s5839_s3 + $0x48] sm:$0xff] }
  0xdb   :  { %639 = vmatpush.bf16.msrb.mxu2 %v473_v50 }
  0xdc   :  { %v3326_v13 = vpop.permute.xlu1 %132  ;;  %v129_v60 = vpop.permute.xlu2 %128 }
  0xdd   :  { %v143_v8 = vsel %vm136_vm5, %v3326_v13, %v121_v20  ;;  %v3334_v37 = vpop.permute.xlu0 %126  ;;  %v487_v20 = vunpack.c.h.b16 %v3263_v40  ;;  %v3411_v40 = vld [vmem:[%s5839_s3 + $0x60] sm:$0xff] }
  0xde   :  { %v154_v35 = vmul.f32 %v3318_v9, %v143_v8  ;;  %v142_v1 = vsel %vm136_vm5, %v123_v19, %v3334_v37 }
  0xdf   :  { %v159_v36 = vmul.f32 %v2585_v29, %v142_v1  ;;  %v3398_v50 = vpack.c.b16 %v491_v22, %v487_v20  ;;  %v2627_v1 = vld [vmem:[%s5839_s3 + $0x238] sm:$0xff] }
  0xe0   :  { %v162_v43 = vpack.c.bf16 %v155_v33, %v154_v35  ;;  %v3427_v33 = vld [vmem:[%s5839_s3 + $0x40] sm:$0xff]  ;;  %v2626_v35 = vld [vmem:[%s5839_s3 + $0x230] sm:$0xff] }
  0xe1   :  { %v164_v57 = vpack.c.bf16 %v159_v36, %v158_v5  ;;  %5921 = vst [vmem:[#allocation2_spill] sm:$0xff] %v3427_v33 }
  0xe2   :  { %v444_v0 = vunpack.c.l.b16 %v162_v43  ;;  %v445_v6 = vunpack.c.h.b16 %v162_v43 }
  0xe3   :  { %v448_v3 = vunpack.c.l.b16 %v164_v57  ;;  %v449_v7 = vunpack.c.h.b16 %v164_v57 }
  0xe4   :  { %v177_v41 = vpop.permute.xlu1 %176  ;;  %v369_v25 = vpop.permute.xlu2 %368 }
  0xe5   :  { %v184_v44 = vsel %vm182_vm4, %v177_v41, %v3204_v4  ;;  %v186_v61 = vsel %vm182_vm4, %v173_v53, %v177_v41  ;;  %v175_v32 = vpop.permute.xlu0 %174  ;;  %v452_v55 = vpack.c.b16 %v448_v3, %v444_v0  ;;  %v453_v38 = vpack.c.b16 %v449_v7, %v445_v6  ;;  %v3460_v7 = vld [vmem:[%s5839_s3 + $0x90] sm:$0xff]  ;;  %v3465_v41 = vld [vmem:[%s5839_s3 + $0x98] sm:$0xff] }
  0xe6   :  { %v206_v47 = vmul.f32 %v3346_v58, %v186_v61  ;;  %v207_v54 = vmul.f32 %v2595_v49, %v184_v44  ;;  %v183_v4 = vsel %vm182_vm4, %v175_v32, %v3292_v62  ;;  %v185_v53 = vsel %vm182_vm4, %v3177_v17, %v175_v32  ;;  %5922 = vst [vmem:[#allocation3_spill] sm:$0xff] %v3460_v7 }
  0xe7   :  { %v202_v10 = vmul.f32 %v3359_v51, %v185_v53  ;;  %v203_v14 = vmul.f32 %v3364_v52, %v183_v4  ;;  %612 = vmatpush.bf16.msra.mxu0 %v452_v55  ;;  %640 = vmatpush.bf16.msrb.mxu2 %v453_v38  ;;  %v3383_v17 = vor.u32 %v2692_v56, %v2632_v59  ;;  %v2622_v55 = vld [vmem:[%s5839_s3 + $0x210] sm:$0xff]  ;;  %v2623_v38 = vld [vmem:[%s5839_s3 + $0x218] sm:$0xff] }
  0xe8   :  { %v3381_v62 = vpack.c.bf16 %v207_v54, %v206_v47  ;;  %v372_v5 = vsel %vm370_vm3, %v3250_v11, %v369_v25  ;;  %v378_v36 = vsel %vm370_vm3, %v369_v25, %v3087_v63  ;;  %v137_v11 = vsel %vm136_vm5, %v129_v60, %v3326_v13  ;;  %5923 = vst [vmem:[#allocation4_spill] sm:$0xff] %v3465_v41 }
  0xe9   :  { %v3385_v26 = vpack.c.bf16 %v203_v14, %v202_v10  ;;  %2637 = vmatmul.msk.bf16.vlgmr.msra.gmra.mxu3 %vm603_vm6, %v3383_v17  ;;  %2636 = vmatmul.msk.bf16.vlgmr.msra.gmra.mxu2 %vm603_vm6, %v3383_v17  ;;  %v394_v44 = vmul.f32 %v2626_v35, %v372_v5  ;;  %v395_v13 = vmul.f32 %v2627_v1, %v378_v36  ;;  %v3486_v10 = vld [vmem:[%s5839_s3 + $0xb8] sm:$0xff]  ;;  %v582_v5 = vld [vmem:[%s5841_s2] sm:$0xff] }
  0xea   :  { %v470_v45 = vunpack.c.l.b16 %v3381_v62  ;;  %v157_v53 = vmul.f32 %v3465_v41, %v137_v11  ;;  %5925 = vst [vmem:[#allocation6_spill] sm:$0xff] %v3486_v10 }
  0xeb   :  { %v466_v39 = vunpack.c.l.b16 %v3385_v26  ;;  %v3488_v14 = vpack.c.bf16 %v395_v13, %v394_v44  ;;  %v3525_v13 = vld [vmem:[%s5839_s3 + $0x8] sm:$0xff] }
  0xec   :  { %v3392_v28 = vpop.permute.xlu1 %78  ;;  %v3509_v36 = vpop.permute.xlu2 %31 }
  0xed   :  { %v77_v46 = vpop.permute.xlu0 %76  ;;  %v474_v19 = vpack.c.b16 %v470_v45, %v466_v39  ;;  %v95_v29 = vsel %vm90_vm7, %v3304_v18, %v3392_v28 }
  0xee   :  { %v96_v27 = vsel %vm90_vm7, %v77_v46, %v3336_v30  ;;  %v109_v63 = vmul.f32 %v3416_v42, %v95_v29 }
  0xef   :  { %667 = vmatpush.bf16.msra.mxu1 %v474_v19  ;;  %v113_v49 = vmul.f32 %v3403_v24, %v96_v27 }
  0xf4   :  { %v3422_v8 = vpop.permute.xlu1 %88  ;;  %v3520_v44 = vpop.permute.xlu2 %41 }
  0xf5   :  { %v98_v43 = vsel %vm90_vm7, %v3422_v8, %v77_v46  ;;  %v3444_v57 = vpop.permute.xlu0 %86 }
  0xf6   :  { %v112_v0 = vmul.f32 %v3411_v40, %v98_v43  ;;  %v97_v3 = vsel %vm90_vm7, %v3444_v57, %v3304_v18  ;;  %v139_v18 = vsel %vm136_vm5, %v3255_v21, %v129_v60  ;;  %v3481_v60 = vld [vmem:[%s5839_s3 + $0xb0] sm:$0xff]  ;;  %v2823_v43 = vmov 0  }
  0xf7   :  { %v108_v6 = vmul.f32 %v3427_v33, %v97_v3  ;;  %v156_v4 = vmul.f32 %v3460_v7, %v139_v18  ;;  %5924 = vst [vmem:[#allocation5_spill] sm:$0xff] %v3481_v60  ;;  %2709 = vset.pattern.permute.xlu1 %v2823_v43  ;;  %2710 = vset.pattern.permute.xlu2 %v2823_v43 }
  0xf8   :  { %v118_v61 = vpack.c.bf16 %v113_v49, %v112_v0  ;;  %v570_v49 = vunpack.c.l.b16 %v3488_v14  ;;  %586 = vperm.xlu1 %2709, %v582_v5   ;;  %2711 = vset.pattern.permute.xlu0 %v2823_v43  ;;  %v3587_v43 = vld [vmem:[%s5839_s3 + $0x50] sm:$0xff] }
  0xf9   :  { %v116_v32 = vpack.c.bf16 %v109_v63, %v108_v6  ;;  %5930 = vst [vmem:[#allocation11_spill] sm:$0xff] %v3587_v43 }
  0xfa   :  { %v428_v47 = vunpack.c.l.b16 %v118_v61  ;;  %v429_v54 = vunpack.c.h.b16 %v118_v61 }
  0xfb   :  { %v424_v56 = vunpack.c.l.b16 %v116_v32  ;;  %v425_v21 = vunpack.c.h.b16 %v116_v32  ;;  %v583_v32 = vld [vmem:[%s5841_s2 + $0x8] sm:$0xff] }
  0xfc   :  { %v367_v59 = vpop.permute.xlu1 %366  ;;  %591 = vperm.xlu2 %2710, %v583_v32  }
  0xfd   :  { %v371_v45 = vsel %vm370_vm3, %v3113_v31, %v367_v59  ;;  %v377_v39 = vsel %vm370_vm3, %v367_v59, %v3175_v16  ;;  %v131_v46 = vpop.permute.xlu0 %130  ;;  %v432_v19 = vpack.c.b16 %v428_v47, %v424_v56  ;;  %v433_v20 = vpack.c.b16 %v429_v54, %v425_v21  ;;  %v3542_v47 = vld [vmem:[%s5839_s3 + $0x20] sm:$0xff] }
  0xfe   :  { %v390_v22 = vmul.f32 %v2622_v55, %v371_v45  ;;  %v391_v25 = vmul.f32 %v2623_v38, %v377_v39  ;;  %v138_v27 = vsel %vm136_vm5, %v131_v46, %v3273_v48  ;;  %v140_v29 = vsel %vm136_vm5, %v3334_v37, %v131_v46  ;;  %5927 = vst [vmem:[#allocation8_spill] sm:$0xff] %v3542_v47 }
  0xff   :  { %v160_v35 = vmul.f32 %v3481_v60, %v140_v29  ;;  %v161_v31 = vmul.f32 %v3486_v10, %v138_v27  ;;  %613 = vmatpush.bf16.msra.mxu0 %v432_v19  ;;  %641 = vmatpush.bf16.msrb.mxu2 %v433_v20  ;;  %v3504_v16 = vpack.c.bf16 %v157_v53, %v156_v4  ;;  %v467_v46 = vunpack.c.h.b16 %v3385_v26  ;;  %v2693_v27 = vld [vmem:[%s5840_s1 + $0x4] sm:$0xf0]  ;;  %v2717_v60 = vld [vmem:[%s5839_s3 + $0x180] sm:$0xff] }
 0x100   :  { %v397_v1 = vpack.c.bf16 %v391_v25, %v390_v22  ;;  %v471_v19 = vunpack.c.h.b16 %v3381_v62  ;;  %v2630_v25 = vld [vmem:[%s5840_s1] sm:$0xf]  ;;  %v3582_v62 = vld [vmem:[%s5839_s3 + $0x78] sm:$0xff] }
 0x101   :  { %v3511_v48 = vpack.c.bf16 %v161_v31, %v160_v35  ;;  %v446_v0 = vunpack.c.l.b16 %v3504_v16  ;;  %v571_v31 = vunpack.c.h.b16 %v3488_v14  ;;  %5929 = vst [vmem:[#allocation10_spill] sm:$0xff] %v3582_v62 }
 0x102   :  { %v566_v37 = vunpack.c.l.b16 %v397_v1  ;;  %v567_v20 = vunpack.c.h.b16 %v397_v1  ;;  %v475_v14 = vpack.c.b16 %v471_v19, %v467_v46 }
 0x103   :  { %v450_v3 = vunpack.c.l.b16 %v3511_v48 }
 0x104   :  { %v30_v11 = vpop.permute.xlu1 %29  ;;  %v574_v63 = vpack.c.b16 %v570_v49, %v566_v37  ;;  %v575_v37 = vpack.c.b16 %v571_v31, %v567_v20  ;;  %v2631_v49 = vor.u32 %v2693_v27, %v2630_v25 }
 0x105   :  { %v28_v6 = vpop.permute.xlu0 %27  ;;  %v454_v18 = vpack.c.b16 %v450_v3, %v446_v0  ;;  %v53_v54 = vsel %vm45_vm8, %v3520_v44, %v30_v11  ;;  %v451_v0 = vunpack.c.h.b16 %v3511_v48  ;;  %v36_v3 = vpop.permute.xlu2 %35 }
 0x106   :  { %684 = vmatpush.bf16.msrb.mxu3 %v574_v63  ;;  %v50_v61 = vsel %vm45_vm8, %v28_v6, %v3509_v36  ;;  %v66_v59 = vmul.f32 %v3542_v47, %v53_v54 }
 0x107   :  { %668 = vmatpush.bf16.msra.mxu1 %v454_v18  ;;  %v63_v38 = vmul.f32 %v3525_v13, %v50_v61 }
 0x109   :  { %2638 = vmatmul.msk.bf16.vlgmr.msrb.gmra.mxu3 %vm603_vm6, %v3383_v17 }
 0x10a   :  { %691 = vmatpush.bf16.msra.mxu3 %v3117_v34  ;;  %v3534_v34 = vld [vmem:[%s5839_s3] sm:$0xff] }
 0x10b   :  { %5926 = vst [vmem:[#allocation7_spill] sm:$0xff] %v3534_v34 }
 0x10c   :  { %v40_v4 = vpop.permute.xlu1 %39 }
 0x10d   :  { %v52_v53 = vsel %vm45_vm8, %v40_v4, %v28_v6  ;;  %v3554_v55 = vpop.permute.xlu0 %33 }
 0x10e   :  { %692 = vmatpush.bf16.msra.mxu3 %v3202_v2  ;;  %v3550_v2 = vld [vmem:[%s5839_s3 + $0x28] sm:$0xff]  ;;  %v62_v56 = vmul.f32 %v3534_v34, %v52_v53  ;;  %v51_v21 = vsel %vm45_vm8, %v30_v11, %v3554_v55 }
 0x10f   :  { %v67_v45 = vmul.f32 %v3550_v2, %v51_v21  ;;  %v447_v21 = vunpack.c.h.b16 %v3504_v16  ;;  %v3637_v16 = vld [vmem:[%s5839_s3 + $0x38] sm:$0xff] }
 0x110   :  { %v70_v39 = vpack.c.bf16 %v63_v38, %v62_v56  ;;  %v3619_v56 = vld [vmem:[%s5839_s3 + $0x18] sm:$0xff]  ;;  %5935 = vst [vmem:[#allocation16_spill] sm:$0xff] %v3637_v16 }
 0x111   :  { %v72_v22 = vpack.c.bf16 %v67_v45, %v66_v59  ;;  %5933 = vst [vmem:[#allocation14_spill] sm:$0xff] %v3619_v56 }
 0x112   :  { %693 = vmatpush.bf16.msra.mxu3 %v3257_v15  ;;  %v404_v29 = vunpack.c.l.b16 %v70_v39  ;;  %v405_v35 = vunpack.c.h.b16 %v70_v39  ;;  %v3577_v15 = vld [vmem:[%s5839_s3 + $0x70] sm:$0xff]  ;;  %v455_v39 = vpack.c.b16 %v451_v0, %v447_v21 }
 0x113   :  { %5928 = vst [vmem:[#allocation9_spill] sm:$0xff] %v3577_v15  ;;  %v408_v26 = vunpack.c.l.b16 %v72_v22  ;;  %v409_v1 = vunpack.c.h.b16 %v72_v22 }
 0x114   :  { %v85_v5 = vpop.permute.xlu1 %84 }
 0x115   :  { %v92_v11 = vsel %vm90_vm7, %v85_v5, %v3422_v8  ;;  %v94_v63 = vsel %vm90_vm7, %v3336_v30, %v85_v5  ;;  %v83_v6 = vpop.permute.xlu0 %82  ;;  %v412_v18 = vpack.c.b16 %v408_v26, %v404_v29  ;;  %v413_v61 = vpack.c.b16 %v409_v1, %v405_v35  ;;  %v3614_v30 = vld [vmem:[%s5839_s3 + $0x10] sm:$0xff] }
 0x116   :  { %694 = vmatpush.bf16.msra.mxu3 %v3398_v50  ;;  %v3592_v50 = vld [vmem:[%s5839_s3 + $0x58] sm:$0xff]  ;;  %v114_v32 = vmul.f32 %v3577_v15, %v94_v63  ;;  %v115_v54 = vmul.f32 %v3582_v62, %v92_v11  ;;  %v91_v48 = vsel %vm90_vm7, %v83_v6, %v3444_v57  ;;  %v93_v53 = vsel %vm90_vm7, %v3392_v28, %v83_v6  ;;  %v2716_v62 = vld [vmem:[%s5839_s3 + $0x188] sm:$0xff] }
 0x117   :  { %5931 = vst [vmem:[#allocation12_spill] sm:$0xff] %v3592_v50  ;;  %v110_v8 = vmul.f32 %v3587_v43, %v93_v53  ;;  %v111_v38 = vmul.f32 %v3592_v50, %v91_v48  ;;  %614 = vmatpush.bf16.msra.mxu0 %v412_v18  ;;  %642 = vmatpush.bf16.msrb.mxu2 %v413_v61 }
 0x118   :  { %5932 = vst [vmem:[#allocation13_spill] sm:$0xff] %v3614_v30  ;;  %v46_v57 = vsel %vm45_vm8, %v36_v3, %v40_v4  ;;  %v48_v28 = vsel %vm45_vm8, %v3509_v36, %v36_v3  ;;  %v119_v59 = vpack.c.bf16 %v115_v54, %v114_v32  ;;  %v3632_v36 = vld [vmem:[%s5839_s3 + $0x30] sm:$0xff] }
 0x119   :  { %v117_v45 = vpack.c.bf16 %v111_v38, %v110_v8  ;;  %v64_v20 = vmul.f32 %v3614_v30, %v48_v28  ;;  %v65_v22 = vmul.f32 %v3619_v56, %v46_v57  ;;  %5934 = vst [vmem:[#allocation15_spill] sm:$0xff] %v3632_v36 }
 0x11a   :  { %695 = vmatpush.bf16.msra.mxu3 %v475_v14  ;;  %615 = vmatmul.bf16.vlgmr.msra.gmra.mxu0 %v2631_v49  ;;  %v430_v46 = vunpack.c.l.b16 %v119_v59  ;;  %v431_v19 = vunpack.c.h.b16 %v119_v59 }
 0x11b   :  { %712 = vmatpush.bf16.msrb.mxu0 %v575_v37  ;;  %643 = vmatmul.bf16.vlgmr.msrb.gmra.mxu2 %v2631_v49  ;;  %v426_v4 = vunpack.c.l.b16 %v117_v45  ;;  %v427_v25 = vunpack.c.h.b16 %v117_v45  ;;  %v71_v14 = vpack.c.bf16 %v65_v22, %v64_v20 }
 0x11d   :  { %v38_v27 = vpop.permute.xlu0 %37  ;;  %v434_v29 = vpack.c.b16 %v430_v46, %v426_v4  ;;  %v435_v35 = vpack.c.b16 %v431_v19, %v427_v25  ;;  %v406_v0 = vunpack.c.l.b16 %v71_v14  ;;  %v407_v11 = vunpack.c.h.b16 %v71_v14 }
 0x11e   :  { %696 = vmatpush.bf16.msra.mxu3 %v455_v39  ;;  %v47_v31 = vsel %vm45_vm8, %v38_v27, %v3520_v44  ;;  %v49_v26 = vsel %vm45_vm8, %v3554_v55, %v38_v27 }
 0x11f   :  { %v68_v1 = vmul.f32 %v3632_v36, %v49_v26  ;;  %v69_v5 = vmul.f32 %v3637_v16, %v47_v31  ;;  %669 = vmatpush.bf16.msra.mxu1 %v434_v29  ;;  %v2713_v16 = vld [vmem:[%s5839_s3 + $0x1c0] sm:$0xff] }
 0x121   :  { %v73_v37 = vpack.c.bf16 %v69_v5, %v68_v1 }
 0x122   :  { %697 = vmatpush.bf16.msra.mxu3 %v435_v35 }
 0x123   :  { %v410_v3 = vunpack.c.l.b16 %v73_v37  ;;  %v411_v63 = vunpack.c.h.b16 %v73_v37 }
 0x125   :  { %v414_v6 = vpack.c.b16 %v410_v3, %v406_v0  ;;  %v415_v18 = vpack.c.b16 %v411_v63, %v407_v11 }
 0x127   :  { %670 = vmatpush.bf16.msra.mxu1 %v414_v6  ;;  %698 = vmatpush.bf16.msra.mxu3 %v415_v18 }
 0x12a   :  { %671 = vmatmul.bf16.vlgmr.msra.gmra.mxu1 %v2631_v49  ;;  %699 = vmatmul.bf16.vlgmr.msra.gmra.mxu3 %v2631_v49 }
 0x12b   :  { %2639 = vmatmul.msk.bf16.vlgmr.msrb.gmra.mxu0 %vm603_vm6, %v3383_v17 }
 0x156   :  { %v592_v45 = vpop.permute.xlu2 %591 }
 0x16a   :  { %v587_v61 = vpop.permute.xlu1 %586 }
 0x16c   :  { %v630_v44 = vpop.f32.mrf.mxu2  ;;  %v658_v55 = vpop.f32.mrf.mxu3 }
 0x174   :  { %v632_v48 = vpop.f32.mrf.mxu2  ;;  %v660_v8 = vpop.f32.mrf.mxu3 }
 0x18c   :  { %v686_v28 = vpop.f32.mrf.mxu3 }
 0x194   :  { %v688_v22 = vpop.f32.mrf.mxu3 }
 0x197   :  { %v616_v32 = vpop.f32.mrf.mxu0 }
 0x198   :  { %v617_v54 = vadd.f32 %v616_v32, %v587_v61 }
 0x19a   :  { %v3649_v53 = vadd.f32 %v630_v44, %v617_v54 }
 0x19c   :  { %827 = vrot.lane.b32.xlu2 %v3649_v53, %s2819_s8  ;;  %939 = vrot.lane.b32.xlu0 %v3649_v53, %s2815_s21 }
 0x19e   :  { %v644_v38 = vpop.f32.mrf.mxu2 }
 0x19f   :  { %v645_v17 = vadd.f32 %v644_v38, %v587_v61  ;;  %v618_v39 = vpop.f32.mrf.mxu0 }
 0x1a0   :  { %v619_v19 = vadd.f32 %v618_v39, %v592_v45 }
 0x1a1   :  { %v3659_v21 = vadd.f32 %v658_v55, %v645_v17 }
 0x1a2   :  { %v3693_v4 = vadd.f32 %v632_v48, %v619_v19 }
 0x1a4   :  { %975 = vrot.lane.b32.xlu2 %v3649_v53, %s2818_s0  ;;  %903 = vrot.lane.b32.xlu0 %v3649_v53, %s2816_s28 }
 0x1a6   :  { %v646_v27 = vpop.f32.mrf.mxu2 }
 0x1a7   :  { %v672_v49 = vpop.f32.mrf.mxu1  ;;  %v647_v29 = vadd.f32 %v646_v27, %v592_v45  ;;  %v2643_v27 = vld [vmem:[%s5841_s2 + $0x18] sm:$0xff] }
 0x1a8   :  { %v673_v57 = vadd.f32 %v672_v49, %v587_v61  ;;  %v714_v1 = vpop.f32.mrf.mxu0 }
 0x1a9   :  { %v3703_v35 = vadd.f32 %v660_v8, %v647_v29 }
 0x1aa   :  { %v3661_v59 = vadd.f32 %v686_v28, %v673_v57 }
 0x1ac   :  { %947 = vrot.lane.b32.xlu1 %v3661_v59, %s2815_s21  ;;  %943 = vrot.lane.b32.xlu2 %v3659_v21, %s2815_s21 }
 0x1ad   :  { %867 = vrot.lane.b32.xlu0 %v3649_v53, %s2817_s7  ;;  %v700_v31 = vpop.f32.mrf.mxu3 }
 0x1ae   :  { %v701_v26 = vadd.f32 %v700_v31, %v587_v61 }
 0x1af   :  { %v674_v46 = vpop.f32.mrf.mxu1 }
 0x1b0   :  { %v675_v20 = vadd.f32 %v674_v46, %v592_v45  ;;  %v3723_v5 = vadd.f32 %v714_v1, %v701_v26  ;;  %v716_v63 = vpop.f32.mrf.mxu0 }
 0x1b2   :  { %v3695_v25 = vadd.f32 %v688_v22, %v675_v20 }
 0x1b4   :  { %911 = vrot.lane.b32.xlu1 %v3661_v59, %s2816_s28  ;;  %907 = vrot.lane.b32.xlu2 %v3659_v21, %s2816_s28 }
 0x1b5   :  { %755 = vrot.lane.b32.xlu0 %v3649_v53, %s2821_s10  ;;  %v702_v0 = vpop.f32.mrf.mxu3 }
 0x1b6   :  { %v703_v3 = vadd.f32 %v702_v0, %v592_v45 }
 0x1b8   :  { %v3747_v6 = vadd.f32 %v716_v63, %v703_v3  ;;  %v2712_v3 = vld [vmem:[%s5839_s3 + $0x1c8] sm:$0xff] }
 0x1bc   :  { %875 = vrot.lane.b32.xlu1 %v3661_v59, %s2817_s7  ;;  %871 = vrot.lane.b32.xlu2 %v3659_v21, %s2817_s7 }
 0x1bd   :  { %719 = vrot.lane.b32.xlu0 %v3649_v53, %s2822_s29 }
 0x1c4   :  { %791 = vrot.lane.b32.xlu1 %v3649_v53, %s2820_s9  ;;  %759 = vrot.lane.b32.xlu2 %v3659_v21, %s2821_s10 }
 0x1c5   :  { %835 = vrot.lane.b32.xlu0 %v3661_v59, %s2819_s8 }
 0x1cc   :  { %831 = vrot.lane.b32.xlu1 %v3659_v21, %s2819_s8  ;;  %723 = vrot.lane.b32.xlu2 %v3659_v21, %s2822_s29 }
 0x1cd   :  { %795 = vrot.lane.b32.xlu0 %v3659_v21, %s2820_s9 }
 0x1d4   :  { %941 = vrot.lane.b32.xlu1 %v3693_v4, %s2815_s21  ;;  %949 = vrot.lane.b32.xlu2 %v3695_v25, %s2815_s21 }
 0x1d5   :  { %829 = vrot.lane.b32.xlu0 %v3693_v4, %s2819_s8 }
 0x1dc   :  { %905 = vrot.lane.b32.xlu1 %v3693_v4, %s2816_s28  ;;  %913 = vrot.lane.b32.xlu2 %v3695_v25, %s2816_s28 }
 0x1dd   :  { %945 = vrot.lane.b32.xlu0 %v3703_v35, %s2815_s21 }
 0x1e4   :  { %869 = vrot.lane.b32.xlu1 %v3693_v4, %s2817_s7  ;;  %877 = vrot.lane.b32.xlu2 %v3695_v25, %s2817_s7 }
 0x1e5   :  { %909 = vrot.lane.b32.xlu0 %v3703_v35, %s2816_s28 }
 0x1ec   :  { %757 = vrot.lane.b32.xlu1 %v3693_v4, %s2821_s10  ;;  %793 = vrot.lane.b32.xlu2 %v3693_v4, %s2820_s9 }
 0x1ed   :  { %873 = vrot.lane.b32.xlu0 %v3703_v35, %s2817_s7 }
 0x1f4   :  { %721 = vrot.lane.b32.xlu1 %v3693_v4, %s2822_s29  ;;  %833 = vrot.lane.b32.xlu2 %v3703_v35, %s2819_s8 }
 0x1f5   :  { %951 = vrot.lane.b32.xlu0 %v3723_v5, %s2815_s21 }
 0x1f6   :  { %v3731_v14 = vpop.permute.xlu2 %827 }
 0x1fc   :  { %837 = vrot.lane.b32.xlu1 %v3695_v25, %s2819_s8  ;;  %915 = vrot.lane.b32.xlu2 %v3723_v5, %s2816_s28 }
 0x1fd   :  { %839 = vrot.lane.b32.xlu0 %v3723_v5, %s2819_s8 }
 0x1fe   :  { %v3739_v37 = vpop.permute.xlu2 %975 }
 0x1ff   :  { %5936 = vst [vmem:[#allocation17_spill] sm:$0xff] %v3739_v37 }
 0x204   :  { %797 = vrot.lane.b32.xlu1 %v3703_v35, %s2820_s9  ;;  %803 = vrot.lane.b32.xlu2 %v3723_v5, %s2820_s9 }
 0x205   :  { %761 = vrot.lane.b32.xlu0 %v3703_v35, %s2821_s10 }
 0x206   :  { %v944_v11 = vpop.permute.xlu2 %943 }
 0x20c   :  { %879 = vrot.lane.b32.xlu1 %v3723_v5, %s2817_s7  ;;  %881 = vrot.lane.b32.xlu2 %v3747_v6, %s2817_s7 }
 0x20d   :  { %725 = vrot.lane.b32.xlu0 %v3703_v35, %s2822_s29 }
 0x20e   :  { %v3755_v18 = vpop.permute.xlu2 %907  ;;  %v3757_v44 = vpop.permute.xlu0 %939 }
 0x20f   :  { %v959_v0 = vsel %vm324_vm0, %v3757_v44, %v944_v11 }
 0x210   :  { %v963_v36 = vmul.f32 %v2713_v16, %v959_v0  ;;  %v2715_v0 = vld [vmem:[%s5839_s3 + $0x1e8] sm:$0xff] }
 0x214   :  { %767 = vrot.lane.b32.xlu1 %v3723_v5, %s2821_s10  ;;  %769 = vrot.lane.b32.xlu2 %v3747_v6, %s2821_s10 }
 0x215   :  { %917 = vrot.lane.b32.xlu0 %v3747_v6, %s2816_s28 }
 0x216   :  { %v3765_v55 = vpop.permute.xlu2 %871  ;;  %v3767_v61 = vpop.permute.xlu0 %903 }
 0x21c   :  { %731 = vrot.lane.b32.xlu1 %v3723_v5, %s2822_s29  ;;  %733 = vrot.lane.b32.xlu2 %v3747_v6, %s2822_s29 }
 0x21d   :  { %805 = vrot.lane.b32.xlu0 %v3747_v6, %s2820_s9 }
 0x21e   :  { %v3775_v32 = vpop.permute.xlu1 %947  ;;  %v3777_v54 = vpop.permute.xlu2 %759 }
 0x21f   :  { %v3779_v48 = vpop.permute.xlu0 %867  ;;  %v957_v26 = vsel %vm324_vm0, %v944_v11, %v3775_v32 }
 0x220   :  { %v964_v63 = vmul.f32 %v2712_v3, %v957_v26  ;;  %v2714_v3 = vld [vmem:[%s5839_s3 + $0x1e0] sm:$0xff] }
 0x222   :  { %v971_v50 = vpack.c.bf16 %v964_v63, %v963_v36  ;;  %v923_v36 = vsel %vm278_vm1, %v3767_v61, %v3755_v18 }
 0x223   :  { %v927_v37 = vmul.f32 %v2717_v60, %v923_v36  ;;  %v3903_v60 = vld [vmem:[%s5839_s3 + $0x1a8] sm:$0xff] }
 0x224   :  { %953 = vrot.lane.b32.xlu1 %v3747_v6, %s2815_s21  ;;  %981 = vrot.lane.b32.xlu2 %v3703_v35, %s2818_s0  ;;  %v1156_v15 = vunpack.c.h.b16 %v971_v50  ;;  %5937 = vst [vmem:[#allocation18_spill] sm:$0xff] %v3903_v60 }
 0x225   :  { %977 = vrot.lane.b32.xlu0 %v3693_v4, %s2818_s0 }
 0x226   :  { %v3787_v8 = vpop.permute.xlu1 %911  ;;  %v3789_v38 = vpop.permute.xlu2 %723 }
 0x227   :  { %v3791_v17 = vpop.permute.xlu0 %755  ;;  %v921_v26 = vsel %vm278_vm1, %v3755_v18, %v3787_v8 }
 0x22c   :  { %841 = vrot.lane.b32.xlu1 %v3747_v6, %s2819_s8  ;;  %799 = vrot.lane.b32.xlu2 %v3661_v59, %s2820_s9 }
 0x22d   :  { %983 = vrot.lane.b32.xlu0 %v3661_v59, %s2818_s0 }
 0x22e   :  { %v3799_v49 = vpop.permute.xlu1 %875  ;;  %v3801_v57 = vpop.permute.xlu2 %949 }
 0x22f   :  { %v3803_v28 = vpop.permute.xlu0 %719 }
 0x234   :  { %979 = vrot.lane.b32.xlu1 %v3659_v21, %s2818_s0  ;;  %765 = vrot.lane.b32.xlu2 %v3695_v25, %s2821_s10 }
 0x235   :  { %801 = vrot.lane.b32.xlu0 %v3695_v25, %s2820_s9 }
 0x236   :  { %v3811_v45 = vpop.permute.xlu1 %791  ;;  %v3813_v39 = vpop.permute.xlu2 %913 }
 0x237   :  { %v3815_v46 = vpop.permute.xlu0 %835 }
 0x23c   :  { %985 = vrot.lane.b32.xlu1 %v3695_v25, %s2818_s0  ;;  %987 = vrot.lane.b32.xlu2 %v3723_v5, %s2818_s0 }
 0x23d   :  { %727 = vrot.lane.b32.xlu0 %v3661_v59, %s2822_s29 }
 0x23e   :  { %v3823_v19 = vpop.permute.xlu1 %831  ;;  %v3827_v22 = vpop.permute.xlu2 %877 }
 0x23f   :  { %v3825_v20 = vpop.permute.xlu0 %795 }
 0x244   :  { %763 = vrot.lane.b32.xlu1 %v3661_v59, %s2821_s10  ;;  %1204 = vperm.xlu2 %2710, %v2643_v27  }
 0x245   :  { %989 = vrot.lane.b32.xlu0 %v3747_v6, %s2818_s0 }
 0x246   :  { %v3836_v29 = vpop.permute.xlu1 %941  ;;  %v3843_v1 = vpop.permute.xlu2 %793 }
 0x247   :  { %v3838_v31 = vpop.permute.xlu0 %829 }
 0x24c   :  { %729 = vrot.lane.b32.xlu1 %v3695_v25, %s2822_s29 }
 0x24e   :  { %v3853_v27 = vpop.permute.xlu1 %905  ;;  %v3884_v10 = vpop.permute.xlu2 %833 }
 0x24f   :  { %v946_v56 = vpop.permute.xlu0 %945 }
 0x250   :  { %v958_v11 = vsel %vm324_vm0, %v946_v56, %v3801_v57  ;;  %v960_v30 = vsel %vm324_vm0, %v3836_v29, %v946_v56  ;;  %v2642_v56 = vld [vmem:[%s5841_s2 + $0x10] sm:$0xff] }
 0x251   :  { %v967_v16 = vmul.f32 %v2714_v3, %v960_v30  ;;  %v968_v43 = vmul.f32 %v2715_v0, %v958_v11  ;;  %v928_v30 = vmul.f32 %v2716_v62, %v921_v26  ;;  %v1155_v3 = vunpack.c.l.b16 %v971_v50  ;;  %v2718_v26 = vld [vmem:[%s5839_s3 + $0x1a0] sm:$0xff] }
 0x253   :  { %v973_v63 = vpack.c.bf16 %v968_v43, %v967_v16  ;;  %v935_v7 = vpack.c.bf16 %v928_v30, %v927_v37  ;;  %v885_v37 = vsel %vm232_vm2, %v3765_v55, %v3799_v49 }
 0x254   :  { %1199 = vperm.xlu1 %2709, %v2642_v56  }
 0x255   :  { %v1159_v11 = vunpack.c.l.b16 %v973_v63  ;;  %v1160_v0 = vunpack.c.h.b16 %v973_v63  ;;  %v887_v63 = vsel %vm232_vm2, %v3779_v48, %v3765_v55  ;;  %v1135_v30 = vunpack.c.l.b16 %v935_v7 }
 0x256   :  { %v3889_v41 = vpop.permute.xlu1 %869 }
 0x257   :  { %v910_v43 = vpop.permute.xlu0 %909  ;;  %v1163_v18 = vpack.c.b16 %v1159_v11, %v1155_v3  ;;  %v1164_v16 = vpack.c.b16 %v1160_v0, %v1156_v15  ;;  %v2720_v3 = vld [vmem:[%s5839_s3 + $0x148] sm:$0xff] }
 0x258   :  { %v922_v62 = vsel %vm278_vm1, %v910_v43, %v3813_v39  ;;  %v924_v50 = vsel %vm278_vm1, %v3853_v27, %v910_v43  ;;  %v892_v11 = vmul.f32 %v2720_v3, %v885_v37  ;;  %v1136_v43 = vunpack.c.h.b16 %v935_v7 }
 0x259   :  { %v931_v56 = vmul.f32 %v2718_v26, %v924_v50  ;;  %v932_v15 = vmul.f32 %v3903_v60, %v922_v62  ;;  %1219 = vmatpush.bf16.msra.mxu2 %v1163_v18  ;;  %1247 = vmatpush.bf16.msra.mxu0 %v1164_v16  ;;  %v2721_v62 = vld [vmem:[%s5839_s3 + $0x140] sm:$0xff]  ;;  %v916_v26 = vpop.permute.xlu2 %915 }
 0x25a   :  { %v891_v50 = vmul.f32 %v2721_v62, %v887_v63  ;;  %v2723_v63 = vld [vmem:[%s5839_s3 + $0x168] sm:$0xff] }
 0x25b   :  { %v937_v36 = vpack.c.bf16 %v932_v15, %v931_v56 }
 0x25c   :  { %v899_v37 = vpack.c.bf16 %v892_v11, %v891_v50 }
 0x25d   :  { %v1139_v0 = vunpack.c.l.b16 %v937_v36  ;;  %v1140_v18 = vunpack.c.h.b16 %v937_v36  ;;  %v2722_v36 = vld [vmem:[%s5839_s3 + $0x160] sm:$0xff] }
 0x25e   :  { %v3917_v16 = vpop.permute.xlu1 %757  ;;  %v1115_v11 = vunpack.c.l.b16 %v899_v37  ;;  %v1116_v50 = vunpack.c.h.b16 %v899_v37 }
 0x25f   :  { %v874_v56 = vpop.permute.xlu0 %873  ;;  %v1143_v15 = vpack.c.b16 %v1139_v0, %v1135_v30  ;;  %v1144_v55 = vpack.c.b16 %v1140_v18, %v1136_v43  ;;  %v865_v43 = vpack.c.bf16 %v3703_v35, %v3693_v4  ;;  %v863_v18 = vpack.c.bf16 %v3659_v21, %v3649_v53 }
 0x260   :  { %v886_v60 = vsel %vm232_vm2, %v874_v56, %v3827_v22  ;;  %v888_v7 = vsel %vm232_vm2, %v3889_v41, %v874_v56 }
 0x261   :  { %v895_v3 = vmul.f32 %v2722_v36, %v888_v7  ;;  %v896_v30 = vmul.f32 %v2723_v63, %v886_v60  ;;  %1220 = vmatpush.bf16.msra.mxu2 %v1143_v15  ;;  %1248 = vmatpush.bf16.msra.mxu0 %v1144_v55  ;;  %v1099_v33 = vunpack.c.l.b16 %v865_v43  ;;  %v1100_v60 = vunpack.c.h.b16 %v865_v43  ;;  %v3940_v15 = vpop.permute.xlu2 %803 }
 0x262   :  { %v1095_v55 = vunpack.c.l.b16 %v863_v18  ;;  %v1096_v4 = vunpack.c.h.b16 %v863_v18 }
 0x263   :  { %v901_v0 = vpack.c.bf16 %v896_v30, %v895_v3 }
 0x264   :  { %v1103_v35 = vpack.c.b16 %v1099_v33, %v1095_v55  ;;  %v1104_v3 = vpack.c.b16 %v1100_v60, %v1096_v4  ;;  %v775_v4 = vsel %vm90_vm7, %v3791_v17, %v3777_v54 }
 0x265   :  { %v1119_v62 = vunpack.c.l.b16 %v901_v0  ;;  %v1120_v56 = vunpack.c.h.b16 %v901_v0 }
 0x266   :  { %v3938_v34 = vpop.permute.xlu1 %721 }
 0x267   :  { %v952_v7 = vpop.permute.xlu0 %951  ;;  %v1123_v36 = vpack.c.b16 %v1119_v62, %v1115_v11  ;;  %v1124_v47 = vpack.c.b16 %v1120_v56, %v1116_v50  ;;  %v3962_v62 = vpack.c.bf16 %v3723_v5, %v3661_v59  ;;  %v919_v50 = vsel %vm278_vm1, %v3787_v8, %v916_v26 }
 0x268   :  { %v925_v56 = vsel %vm278_vm1, %v916_v26, %v3767_v61  ;;  %v811_v59 = vsel %vm136_vm5, %v3811_v45, %v3825_v20  ;;  %v3991_v26 = vpack.c.bf16 %v3747_v6, %v3695_v25  ;;  %v845_v25 = vsel %vm182_vm4, %v3823_v19, %v3815_v46  ;;  %v4014_v6 = vld [vmem:[%s5839_s3 + $0x190] sm:$0xff] }
 0x269   :  { %1221 = vmatpush.bf16.msra.mxu2 %v1123_v36  ;;  %1249 = vmatpush.bf16.msra.mxu0 %v1124_v47  ;;  %v882_v37 = vpop.permute.xlu2 %881  ;;  %v813_v36 = vsel %vm136_vm5, %v3940_v15, %v3811_v45  ;;  %v739_v45 = vsel %vm45_vm8, %v3803_v28, %v3789_v38  ;;  %5938 = vst [vmem:[#allocation19_spill] sm:$0xff] %v4014_v6 }
 0x26a   :  { %v884_v5 = vsel %vm232_vm2, %v3827_v22, %v882_v37  ;;  %v890_v61 = vsel %vm232_vm2, %v882_v37, %v3889_v41  ;;  %v955_v41 = vsel %vm324_vm0, %v3775_v32, %v952_v7  ;;  %v961_v22 = vsel %vm324_vm0, %v952_v7, %v3757_v44  ;;  %v4020_v32 = vld [vmem:[%s5839_s3 + $0x198] sm:$0xff] }
 0x26b   :  { %v815_v44 = vmul.f32 %v3318_v9, %v813_v36  ;;  %v847_v37 = vsel %vm182_vm4, %v3731_v14, %v3823_v19  ;;  %v816_v55 = vmul.f32 %v3310_v23, %v811_v59  ;;  %v4040_v9 = vld [vmem:[%s5839_s3 + $0x178] sm:$0xff]  ;;  %v2728_v19 = vld [vmem:[%s5839_s3 + $0x1d0] sm:$0xff] }
 0x26c   :  { %5940 = vst [vmem:[#allocation21_spill] sm:$0xff] %v4040_v9  ;;  %v965_v36 = vmul.f32 %v2728_v19, %v955_v41  ;;  %v2729_v23 = vld [vmem:[%s5839_s3 + $0x1d8] sm:$0xff]  ;;  %v848_v41 = vsel %vm182_vm4, %v3838_v31, %v3884_v10 }
 0x26d   :  { %1222 = vmatpush.bf16.msra.mxu2 %v1103_v35  ;;  %1250 = vmatpush.bf16.msra.mxu0 %v1104_v3  ;;  %v929_v35 = vmul.f32 %v4014_v6, %v919_v50  ;;  %v930_v3 = vmul.f32 %v4020_v32, %v925_v56  ;;  %v4034_v50 = vld [vmem:[%s5839_s3 + $0x170] sm:$0xff]  ;;  %v898_v56 = vmul.f32 %v4040_v9, %v890_v61 }
 0x26e   :  { %v3942_v53 = vpop.permute.xlu1 %837  ;;  %5939 = vst [vmem:[#allocation20_spill] sm:$0xff] %v4034_v50  ;;  %v897_v6 = vmul.f32 %v4034_v50, %v884_v5  ;;  %v966_v59 = vmul.f32 %v2729_v23, %v961_v22  ;;  %v4056_v61 = vmul.f32 %v3416_v42, %v775_v4  ;;  %v4059_v9 = vmul.f32 %v739_v45, %v3525_v13  ;;  %v2731_v45 = vld [vmem:[%s5839_s3 + $0x1b0] sm:$0xff] }
 0x26f   :  { %v3944_v21 = vpop.permute.xlu0 %839  ;;  %v4072_v42 = vpack.c.bf16 %v930_v3, %v929_v35 }
 0x270   :  { %v4076_v13 = vpack.c.bf16 %v898_v56, %v897_v6  ;;  %v849_v4 = vsel %vm182_vm4, %v3944_v21, %v3731_v14  ;;  %v4091_v3 = vpack.c.bf16 %v966_v59, %v965_v36 }
 0x271   :  { %v3950_v0 = vpop.permute.xlu2 %769 }
 0x276   :  { %v3946_v63 = vpop.permute.xlu1 %797 }
 0x277   :  { %v3948_v30 = vpop.permute.xlu0 %761 }
 0x279   :  { %v3958_v33 = vpop.permute.xlu2 %733 }
 0x27e   :  { %v3952_v43 = vpop.permute.xlu1 %879 }
 0x27f   :  { %v3954_v47 = vpop.permute.xlu0 %725  ;;  %v889_v56 = vsel %vm232_vm2, %v3952_v43, %v3779_v48  ;;  %v2736_v48 = vld [vmem:[%s5839_s3 + $0xc0] sm:$0xff] }
 0x281   :  { %v4024_v7 = vpop.permute.xlu2 %981 }
 0x286   :  { %v3956_v18 = vpop.permute.xlu1 %767 }
 0x287   :  { %v918_v11 = vpop.permute.xlu0 %917 }
 0x288   :  { %v920_v5 = vsel %vm278_vm1, %v3813_v39, %v918_v11  ;;  %v926_v50 = vsel %vm278_vm1, %v918_v11, %v3853_v27  ;;  %v2730_v39 = vld [vmem:[%s5839_s3 + $0xc8] sm:$0xff]  ;;  %v4070_v27 = vmul.f32 %v3359_v51, %v845_v25  ;;  %v4074_v11 = vpack.c.bf16 %v816_v55, %v815_v44  ;;  %v2732_v51 = vld [vmem:[%s5839_s3 + $0x1b8] sm:$0xff] }
 0x289   :  { %v852_v19 = vmul.f32 %v2730_v39, %v847_v37  ;;  %v933_v23 = vmul.f32 %v2731_v45, %v920_v5  ;;  %v934_v25 = vmul.f32 %v2732_v51, %v926_v50  ;;  %v2733_v55 = vld [vmem:[%s5839_s3 + $0xe8] sm:$0xff]  ;;  %v883_v50 = vsel %vm232_vm2, %v3799_v49, %v3952_v43 }
 0x28a   :  { %v856_v6 = vmul.f32 %v2733_v55, %v848_v41  ;;  %v843_v49 = vsel %vm182_vm4, %v3815_v46, %v3944_v21  ;;  %v851_v43 = vmul.f32 %v2736_v48, %v849_v4  ;;  %v1137_v5 = vunpack.c.l.b16 %v4072_v42  ;;  %v4140_v46 = vld [vmem:[%s5839_s3 + $0x150] sm:$0xff]  ;;  %v4146_v4 = vld [vmem:[%s5839_s3 + $0x158] sm:$0xff] }
 0x28b   :  { %v4130_v39 = vpack.c.bf16 %v934_v25, %v933_v23  ;;  %v1157_v55 = vunpack.c.l.b16 %v4091_v3  ;;  %v893_v21 = vmul.f32 %v4140_v46, %v883_v50  ;;  %v894_v23 = vmul.f32 %v4146_v4, %v889_v56  ;;  %v800_v25 = vpop.permute.xlu2 %799 }
 0x28c   :  { %v778_v50 = vsel %vm90_vm7, %v3950_v0, %v3917_v16  ;;  %v812_v48 = vsel %vm136_vm5, %v3843_v1, %v3946_v63 }
 0x28d   :  { %v1141_v22 = vunpack.c.l.b16 %v4130_v39  ;;  %v783_v41 = vmul.f32 %v3411_v40, %v778_v50  ;;  %v4185_v51 = vpack.c.bf16 %v894_v23, %v893_v21 }
 0x28e   :  { %v3974_v60 = vpop.permute.xlu1 %731 }
 0x28f   :  { %v3987_v8 = vpop.permute.xlu0 %805 }
 0x296   :  { %v954_v35 = vpop.permute.xlu1 %953 }
 0x297   :  { %v956_v14 = vsel %vm324_vm0, %v3801_v57, %v954_v35  ;;  %v962_v44 = vsel %vm324_vm0, %v954_v35, %v3836_v29  ;;  %v4099_v37 = vpop.permute.xlu0 %977  ;;  %v4112_v57 = vld [vmem:[%s5839_s3 + $0x1f0] sm:$0xff]  ;;  %v4118_v29 = vld [vmem:[%s5839_s3 + $0x1f8] sm:$0xff]  ;;  %v740_v35 = vsel %vm45_vm8, %v3938_v34, %v3954_v47 }
 0x298   :  { %5941 = vst [vmem:[#allocation22_spill] sm:$0xff] %v4112_v57  ;;  %v969_v36 = vmul.f32 %v4112_v57, %v956_v14  ;;  %v970_v59 = vmul.f32 %v4118_v29, %v962_v44  ;;  %v814_v14 = vsel %vm136_vm5, %v3987_v8, %v3843_v1  ;;  %v846_v44 = vsel %vm182_vm4, %v3884_v10, %v3942_v53 }
 0x299   :  { %5942 = vst [vmem:[#allocation23_spill] sm:$0xff] %v4118_v29  ;;  %v776_v10 = vsel %vm90_vm7, %v3917_v16, %v3948_v30  ;;  %v857_v16 = vmul.f32 %v3346_v58, %v846_v44  ;;  %v742_v58 = vsel %vm45_vm8, %v3958_v33, %v3938_v34  ;;  %v748_v44 = vmul.f32 %v740_v35, %v3550_v2  ;;  %v5943_v34 = vld [vmem:[#allocation2_spill] sm:$0xff] }
 0x29a   :  { %v4132_v45 = vpack.c.bf16 %v970_v59, %v969_v36  ;;  %v854_v36 = vmul.f32 %v3364_v52, %v843_v49  ;;  %v859_v59 = vpack.c.bf16 %v852_v19, %v851_v43  ;;  %v777_v52 = vsel %vm90_vm7, %v3956_v18, %v3791_v17  ;;  %v2739_v19 = vld [vmem:[%s5839_s3 + $0xa0] sm:$0xff] }
 0x29b   :  { %v819_v1 = vmul.f32 %v2739_v19, %v814_v14  ;;  %v2740_v14 = vld [vmem:[%s5839_s3 + $0xa8] sm:$0xff]  ;;  %v784_v23 = vmul.f32 %v3403_v24, %v776_v10  ;;  %v779_v50 = vmul.f32 %v5943_v34, %v777_v52  ;;  %v1117_v2 = vunpack.c.l.b16 %v4185_v51 }
 0x29c   :  { %v1161_v56 = vunpack.c.l.b16 %v4132_v45  ;;  %v820_v19 = vmul.f32 %v2740_v14, %v812_v48  ;;  %v4209_v21 = vpack.c.bf16 %v854_v36, %v4070_v27  ;;  %v5944_v14 = vld [vmem:[#allocation8_spill] sm:$0xff]  ;;  %v2742_v27 = vld [vmem:[%s5839_s3 + $0xf8] sm:$0xff]  ;;  %v807_v52 = vsel %vm136_vm5, %v800_v25, %v3940_v15  ;;  %v5946_v34 = vld [vmem:[#allocation3_spill] sm:$0xff] }
 0x29d   :  { %v747_v57 = vmul.f32 %v742_v58, %v5944_v14  ;;  %v789_v36 = vpack.c.bf16 %v784_v23, %v783_v41 }
 0x29e   :  { %v842_v49 = vpop.permute.xlu1 %841  ;;  %v1165_v43 = vpack.c.b16 %v1161_v56, %v1157_v55  ;;  %v825_v56 = vpack.c.bf16 %v820_v19, %v819_v1  ;;  %v766_v1 = vpop.permute.xlu2 %765 }
 0x29f   :  { %v850_v29 = vsel %vm182_vm4, %v842_v49, %v3838_v31  ;;  %v4190_v17 = vpop.permute.xlu0 %983  ;;  %v844_v40 = vsel %vm182_vm4, %v3942_v53, %v842_v49  ;;  %v4205_v31 = vld [vmem:[%s5839_s3 + $0xe0] sm:$0xff]  ;;  %v1145_v53 = vpack.c.b16 %v1141_v22, %v1137_v5  ;;  %v1075_v49 = vunpack.c.l.b16 %v859_v59 }
 0x2a0   :  { %v855_v55 = vmul.f32 %v4205_v31, %v850_v29  ;;  %1275 = vmatpush.bf16.msrb.mxu3 %v1165_v43  ;;  %v741_v29 = vsel %vm45_vm8, %v3974_v60, %v3803_v28  ;;  %v858_v24 = vmul.f32 %v2742_v27, %v844_v40  ;;  %v1076_v5 = vunpack.c.h.b16 %v859_v59  ;;  %v5945_v43 = vld [vmem:[#allocation7_spill] sm:$0xff] }
 0x2a1   :  { %v4226_v10 = vpack.c.bf16 %v748_v44, %v747_v57  ;;  %v787_v28 = vpack.c.bf16 %v4056_v61, %v779_v50  ;;  %v743_v19 = vmul.f32 %v741_v29, %v5945_v43  ;;  %v5947_v57 = vunpack.c.l.b16 %v4076_v13  ;;  %v5948_v44 = vld [vmem:[#allocation4_spill] sm:$0xff]  ;;  %v5951_v29 = vld [vmem:[#allocation6_spill] sm:$0xff] }
 0x2a2   :  { %v861_v48 = vpack.c.bf16 %v856_v6, %v855_v55  ;;  %v809_v6 = vsel %vm136_vm5, %v3825_v20, %v800_v25  ;;  %v1059_v20 = vunpack.c.l.b16 %v825_v56  ;;  %v4234_v59 = vpack.c.bf16 %v858_v24, %v857_v16 }
 0x2a3   :  { %v1125_v23 = vpack.c.b16 %v5947_v57, %v1117_v2  ;;  %v1060_v61 = vunpack.c.h.b16 %v825_v56  ;;  %v818_v50 = vmul.f32 %v5948_v44, %v807_v52  ;;  %v5950_v56 = vld [vmem:[#allocation5_spill] sm:$0xff]  ;;  %v1035_v24 = vunpack.c.l.b16 %v787_v28 }
 0x2a4   :  { %1276 = vmatpush.bf16.msrb.mxu3 %v1145_v53  ;;  %v1079_v22 = vunpack.c.l.b16 %v861_v48  ;;  %v1080_v35 = vunpack.c.h.b16 %v861_v48  ;;  %v817_v53 = vmul.f32 %v5946_v34, %v809_v6  ;;  %v5949_v48 = vld [vmem:[#allocation17_spill] sm:$0xff]  ;;  %v751_v2 = vpack.c.bf16 %v4059_v9, %v743_v19  ;;  %v4268_v9 = vld [vmem:[%s5839_s3 + $0x200] sm:$0xff] }
 0x2a5   :  { %v5955_v43 = vunpack.c.h.b16 %v4074_v11  ;;  %v1077_v34 = vunpack.c.l.b16 %v4209_v21  ;;  %v996_v57 = vsel %vm370_vm3, %v4099_v37, %v4024_v7  ;;  %v772_v44 = vsel %vm90_vm7, %v766_v1, %v3950_v0  ;;  %v4298_v0 = vld [vmem:[%s5839_s3 + $0x220] sm:$0xff] }
 0x2a6   :  { %v980_v58 = vpop.permute.xlu1 %979  ;;  %v1083_v40 = vpack.c.b16 %v1079_v22, %v1075_v49  ;;  %v1084_v55 = vpack.c.b16 %v1080_v35, %v1076_v5  ;;  %v5953_v22 = vunpack.c.l.b16 %v3962_v62  ;;  %v1036_v35 = vunpack.c.h.b16 %v787_v28 }
 0x2a7   :  { %v802_v41 = vpop.permute.xlu0 %801  ;;  %v993_v15 = vsel %vm370_vm3, %v980_v58, %v4190_v17  ;;  %v995_v49 = vsel %vm370_vm3, %v5949_v48, %v980_v58  ;;  %v1064_v58 = vpack.c.b16 %v1060_v61, %v5955_v43  ;;  %v1019_v61 = vunpack.c.l.b16 %v4226_v10 }
 0x2a8   :  { %v808_v25 = vsel %vm136_vm5, %v802_v41, %v3987_v8  ;;  %v810_v16 = vsel %vm136_vm5, %v3946_v63, %v802_v41  ;;  %1223 = vmatpush.bf16.msra.mxu2 %v1083_v40  ;;  %1251 = vmatpush.bf16.msra.mxu0 %v1084_v55  ;;  %v5952_v8 = vunpack.c.l.b16 %v4074_v11  ;;  %v5954_v63 = vunpack.c.l.b16 %v3991_v26 }
 0x2a9   :  { %v821_v14 = vmul.f32 %v5950_v56, %v810_v16  ;;  %v822_v27 = vmul.f32 %v5951_v29, %v808_v25  ;;  %1277 = vmatpush.bf16.msrb.mxu3 %v1125_v23  ;;  %v1039_v40 = vunpack.c.l.b16 %v789_v36  ;;  %v1081_v55 = vunpack.c.l.b16 %v4234_v59  ;;  %v988_v25 = vpop.permute.xlu2 %987 }
 0x2aa   :  { %v1063_v6 = vpack.c.b16 %v1059_v20, %v5952_v8  ;;  %v1105_v5 = vpack.c.b16 %v5954_v63, %v5953_v22  ;;  %v999_v19 = vmul.f32 %v4268_v9, %v995_v49  ;;  %v4274_v20 = vld [vmem:[%s5839_s3 + $0x208] sm:$0xff]  ;;  %v1040_v11 = vunpack.c.h.b16 %v789_v36  ;;  %v2695_v8 = vld [vmem:[%s5840_s1 + $0x14] sm:$0xf0] }
 0x2ab   :  { %v4260_v52 = vpack.c.bf16 %v822_v27, %v821_v14  ;;  %v1000_v28 = vmul.f32 %v4274_v20, %v993_v15  ;;  %v4278_v41 = vpack.c.bf16 %v818_v50, %v817_v53  ;;  %v1043_v23 = vpack.c.b16 %v1039_v40, %v1035_v24 }
 0x2ac   :  { %1224 = vmatpush.bf16.msra.mxu2 %v1063_v6  ;;  %1252 = vmatpush.bf16.msra.mxu0 %v1064_v58  ;;  %v774_v36 = vsel %vm90_vm7, %v3948_v30, %v766_v1  ;;  %v1044_v50 = vpack.c.b16 %v1040_v11, %v1036_v35  ;;  %v1015_v15 = vunpack.c.l.b16 %v751_v2  ;;  %v1085_v56 = vpack.c.b16 %v1081_v55, %v1077_v34  ;;  %v5956_v6 = vld [vmem:[#allocation9_spill] sm:$0xff]  ;;  %v2747_v55 = vld [vmem:[%s5839_s3 + $0x210] sm:$0xff] }
 0x2ad   :  { %1278 = vmatpush.bf16.msrb.mxu3 %v1105_v5  ;;  %v1016_v14 = vunpack.c.h.b16 %v751_v2  ;;  %v1061_v29 = vunpack.c.l.b16 %v4260_v52  ;;  %v1003_v30 = vmul.f32 %v4298_v0, %v996_v57  ;;  %v991_v1 = vsel %vm370_vm3, %v4190_v17, %v988_v25  ;;  %v2646_v2 = vld [vmem:[%s5840_s1 + $0x10] sm:$0xf]  ;;  %v5957_v5 = vld [vmem:[#allocation10_spill] sm:$0xff] }
 0x2ae   :  { %v986_v53 = vpop.permute.xlu1 %985  ;;  %v1007_v27 = vpack.c.bf16 %v1000_v28, %v999_v19  ;;  %v785_v22 = vmul.f32 %v5956_v6, %v774_v36  ;;  %v1020_v17 = vunpack.c.h.b16 %v4226_v10  ;;  %v1057_v63 = vunpack.c.l.b16 %v4278_v41 }
 0x2af   :  { %v994_v16 = vsel %vm370_vm3, %v4024_v7, %v986_v53  ;;  %v728_v49 = vpop.permute.xlu0 %727  ;;  %v4307_v7 = vld [vmem:[%s5839_s3 + $0x228] sm:$0xff]  ;;  %v786_v35 = vmul.f32 %v5957_v5, %v772_v44  ;;  %v997_v43 = vsel %vm370_vm3, %v988_v25, %v5949_v48  ;;  %v1023_v40 = vpack.c.b16 %v1019_v61, %v1015_v15  ;;  %v2694_v48 = vld [vmem:[%s5840_s1 + $0x14] sm:$0xf]  ;;  %v2648_v61 = vld [vmem:[%s5840_s1 + $0x18] sm:$0xf0] }
 0x2b0   :  { %v1004_v24 = vmul.f32 %v4307_v7, %v994_v16  ;;  %1225 = vmatpush.bf16.msra.mxu2 %v1043_v23  ;;  %1253 = vmatpush.bf16.msra.mxu0 %v1044_v50  ;;  %v1001_v19 = vmul.f32 %v2747_v55, %v991_v1  ;;  %v1024_v28 = vpack.c.b16 %v1020_v17, %v1016_v14  ;;  %v1176_v10 = vunpack.c.h.b16 %v1007_v27  ;;  %v2748_v50 = vld [vmem:[%s5839_s3 + $0x218] sm:$0xff]  ;;  %v5961_v55 = vld [vmem:[#allocation14_spill] sm:$0xff] }
 0x2b1   :  { %1279 = vmatpush.bf16.msrb.mxu3 %v1085_v56  ;;  %v1065_v11 = vpack.c.b16 %v1061_v29, %v1057_v63  ;;  %v4326_v34 = vor.u32 %v2695_v8, %v2646_v2  ;;  %v1175_v23 = vunpack.c.l.b16 %v1007_v27  ;;  %v1158_v36 = vunpack.c.h.b16 %v4091_v3  ;;  %v5958_v2 = vld [vmem:[#allocation11_spill] sm:$0xff]  ;;  %v2749_v63 = vld [vmem:[%s5839_s3 + $0x230] sm:$0xff] }
 0x2b2   :  { %v1009_v58 = vpack.c.bf16 %v1004_v24, %v1003_v30  ;;  %v1002_v15 = vmul.f32 %v2748_v50, %v997_v43  ;;  %v4338_v25 = vpack.c.bf16 %v786_v35, %v785_v22  ;;  %v1162_v16 = vunpack.c.h.b16 %v4132_v45  ;;  %v5959_v45 = vld [vmem:[#allocation12_spill] sm:$0xff] }
 0x2b3   :  { %v4348_v24 = vor.u32 %v2694_v48, %v2648_v61  ;;  %v737_v17 = vsel %vm45_vm8, %v3789_v38, %v728_v49  ;;  %v1142_v43 = vunpack.c.h.b16 %v4130_v39  ;;  %v5960_v38 = vld [vmem:[#allocation13_spill] sm:$0xff] }
 0x2b4   :  { %v1180_v57 = vunpack.c.h.b16 %v1009_v58  ;;  %1226 = vmatpush.bf16.msra.mxu2 %v1023_v40  ;;  %v1179_v44 = vunpack.c.l.b16 %v1009_v58  ;;  %1254 = vmatpush.bf16.msra.mxu0 %v1024_v28  ;;  %v1008_v30 = vpack.c.bf16 %v1002_v15, %v1001_v19  ;;  %v1166_v58 = vpack.c.b16 %v1162_v16, %v1158_v36 }
 0x2b5   :  { %1280 = vmatpush.bf16.msrb.mxu3 %v1065_v11  ;;  %v1138_v40 = vunpack.c.h.b16 %v4072_v42  ;;  %v1041_v11 = vunpack.c.l.b16 %v4338_v25  ;;  %v1118_v42 = vunpack.c.h.b16 %v4185_v51  ;;  %v1122_v51 = vunpack.c.h.b16 %v4076_v13 }
 0x2b6   :  { %v764_v56 = vpop.permute.xlu1 %763  ;;  %v1183_v14 = vpack.c.b16 %v1179_v44, %v1175_v23  ;;  %v1184_v29 = vpack.c.b16 %v1180_v57, %v1176_v10  ;;  %v1177_v10 = vunpack.c.l.b16 %v1008_v30  ;;  %v1178_v57 = vunpack.c.h.b16 %v1008_v30  ;;  %v5963_v30 = vld [vmem:[#allocation16_spill] sm:$0xff] }
 0x2b7   :  { %v771_v1 = vsel %vm90_vm7, %v764_v56, %v3956_v18  ;;  %v773_v3 = vsel %vm90_vm7, %v3777_v54, %v764_v56  ;;  %v990_v27 = vpop.permute.xlu0 %989  ;;  %1227 = vmatmul.bf16.vlgmr.msra.gmra.mxu2 %v4326_v34  ;;  %1255 = vmatmul.bf16.vlgmr.msra.gmra.mxu0 %v4326_v34  ;;  %v735_v54 = vsel %vm45_vm8, %v728_v49, %v3974_v60  ;;  %v1078_v13 = vunpack.c.h.b16 %v4209_v21 }
 0x2b8   :  { %v781_v8 = vmul.f32 %v5958_v2, %v773_v3  ;;  %v782_v6 = vmul.f32 %v5959_v45, %v771_v1  ;;  %v992_v22 = vsel %vm370_vm3, %v986_v53, %v990_v27  ;;  %v998_v18 = vsel %vm370_vm3, %v990_v27, %v4099_v37  ;;  %v2750_v53 = vld [vmem:[%s5839_s3 + $0x238] sm:$0xff]  ;;  %1240 = vmatpush.bf16.msrb.mxu1 %v1183_v14  ;;  %v5962_v14 = vld [vmem:[#allocation15_spill] sm:$0xff] }
 0x2b9   :  { %v1005_v5 = vmul.f32 %v2749_v63, %v992_v22  ;;  %v1006_v37 = vmul.f32 %v2750_v53, %v998_v18  ;;  %v745_v49 = vmul.f32 %v737_v17, %v5960_v38  ;;  %v746_v19 = vmul.f32 %v735_v54, %v5961_v55 }
 0x2ba   :  { %v788_v35 = vpack.c.bf16 %v782_v6, %v781_v8  ;;  %v1146_v61 = vpack.c.b16 %v1142_v43, %v1138_v40  ;;  %v1126_v27 = vpack.c.b16 %v1122_v51, %v1118_v42  ;;  %v1082_v22 = vunpack.c.h.b16 %v4234_v59 }
 0x2bb   :  { %v1010_v60 = vpack.c.bf16 %v1006_v37, %v1005_v5  ;;  %2652 = vmatmul.msk.bf16.vlgmr.msrb.gmra.mxu1 %vm603_vm6, %v4348_v24  ;;  %v752_v56 = vpack.c.bf16 %v746_v19, %v745_v49  ;;  %v1062_v18 = vunpack.c.h.b16 %v4260_v52  ;;  %v1042_v17 = vunpack.c.h.b16 %v4338_v25  ;;  %v1205_v49 = vpop.permute.xlu2 %1204 }
 0x2bc   :  { %1268 = vmatpush.bf16.msra.mxu1 %v1184_v29  ;;  %v1037_v28 = vunpack.c.l.b16 %v788_v35  ;;  %v1038_v54 = vunpack.c.h.b16 %v788_v35 }
 0x2bd   :  { %v1181_v23 = vunpack.c.l.b16 %v1010_v60  ;;  %v1182_v44 = vunpack.c.h.b16 %v1010_v60  ;;  %v1017_v2 = vunpack.c.l.b16 %v752_v56  ;;  %v1018_v21 = vunpack.c.h.b16 %v752_v56 }
 0x2be   :  { %v730_v39 = vpop.permute.xlu1 %729  ;;  %v1045_v48 = vpack.c.b16 %v1041_v11, %v1037_v28  ;;  %v1046_v63 = vpack.c.b16 %v1042_v17, %v1038_v54 }
 0x2bf   :  { %v736_v36 = vsel %vm45_vm8, %v730_v39, %v3958_v33  ;;  %v738_v50 = vsel %vm45_vm8, %v3954_v47, %v730_v39  ;;  %v1185_v15 = vpack.c.b16 %v1181_v23, %v1177_v10  ;;  %v1186_v16 = vpack.c.b16 %v1182_v44, %v1178_v57 }
 0x2c0   :  { %1303 = vmatpush.bf16.msrb.mxu1 %v1166_v58  ;;  %v749_v29 = vmul.f32 %v738_v50, %v5962_v14  ;;  %v750_v1 = vmul.f32 %v736_v36, %v5963_v30  ;;  %1281 = vmatpush.bf16.msrb.mxu3 %v1045_v48  ;;  %v1102_v33 = vunpack.c.h.b16 %v3991_v26  ;;  %v1098_v47 = vunpack.c.h.b16 %v3962_v62 }
 0x2c1   :  { %1296 = vmatpush.bf16.msrb.mxu2 %v1185_v15  ;;  %1324 = vmatpush.bf16.msrb.mxu0 %v1186_v16  ;;  %v1086_v26 = vpack.c.b16 %v1082_v22, %v1078_v13  ;;  %v1058_v62 = vunpack.c.h.b16 %v4278_v41 }
 0x2c2   :  { %v754_v3 = vpack.c.bf16 %v750_v1, %v749_v29  ;;  %v1106_v6 = vpack.c.b16 %v1102_v33, %v1098_v47 }
 0x2c3   :  { %v1066_v59 = vpack.c.b16 %v1062_v18, %v1058_v62 }
 0x2c4   :  { %1304 = vmatpush.bf16.msrb.mxu1 %v1146_v61  ;;  %v1021_v8 = vunpack.c.l.b16 %v754_v3  ;;  %v1022_v5 = vunpack.c.h.b16 %v754_v3 }
 0x2c6   :  { %v1025_v45 = vpack.c.b16 %v1021_v8, %v1017_v2  ;;  %v1026_v53 = vpack.c.b16 %v1022_v5, %v1018_v21 }
 0x2c7   :  { %2654 = vmatmul.msk.bf16.vlgmr.msrb.gmra.mxu2 %vm603_vm6, %v4348_v24  ;;  %2655 = vmatmul.msk.bf16.vlgmr.msrb.gmra.mxu0 %vm603_vm6, %v4348_v24 }
 0x2c8   :  { %1305 = vmatpush.bf16.msrb.mxu1 %v1126_v27  ;;  %1282 = vmatpush.bf16.msrb.mxu3 %v1025_v45 }
 0x2cb   :  { %1283 = vmatmul.bf16.vlgmr.msrb.gmra.mxu3 %v4326_v34  ;;  %2653 = vmatmul.msk.bf16.vlgmr.msra.gmra.mxu1 %vm603_vm6, %v4348_v24  ;;  %v1200_v24 = vpop.permute.xlu1 %1199 }
 0x2cc   :  { %1306 = vmatpush.bf16.msrb.mxu1 %v1106_v6 }
 0x2d0   :  { %1307 = vmatpush.bf16.msrb.mxu1 %v1086_v26 }
 0x2d4   :  { %1308 = vmatpush.bf16.msrb.mxu1 %v1066_v59 }
 0x2d8   :  { %1309 = vmatpush.bf16.msrb.mxu1 %v1046_v63 }
 0x2dc   :  { %1310 = vmatpush.bf16.msrb.mxu1 %v1026_v53 }
 0x2df   :  { %1311 = vmatmul.bf16.vlgmr.msrb.gmra.mxu1 %v4326_v34 }
 0x334   :  { %v1256_v60 = vpop.f32.mrf.mxu0 }
 0x335   :  { %v1257_v41 = vadd.f32 %v1256_v60, %v1200_v24 }
 0x338   :  { %v1242_v52 = vpop.f32.mrf.mxu1 }
 0x33a   :  { %v1228_v43 = vpop.f32.mrf.mxu2 }
 0x33b   :  { %v1229_v58 = vadd.f32 %v1228_v43, %v1200_v24 }
 0x33c   :  { %v1258_v34 = vpop.f32.mrf.mxu0 }
 0x33d   :  { %v1243_v35 = vadd.f32 %v1242_v52, %v1229_v58  ;;  %v1259_v19 = vadd.f32 %v1258_v34, %v1205_v49 }
 0x340   :  { %v1244_v37 = vpop.f32.mrf.mxu1 }
 0x342   :  { %v1230_v11 = vpop.f32.mrf.mxu2 }
 0x343   :  { %v1231_v10 = vadd.f32 %v1230_v11, %v1205_v49 }
 0x344   :  { %v1326_v39 = vpop.f32.mrf.mxu0 }
 0x345   :  { %v4416_v57 = vadd.f32 %v1244_v37, %v1231_v10  ;;  %v4607_v10 = vld [vmem:[%s5839_s3 + $0x80] sm:$0xff] }
 0x346   :  { %5969 = vst [vmem:[#allocation17_spill] sm:$0xff] %v4607_v10 }
 0x348   :  { %v1270_v40 = vpop.f32.mrf.mxu1 }
 0x349   :  { %v1271_v38 = vadd.f32 %v1270_v40, %v1257_v41  ;;  %v2658_v41 = vld [vmem:[%s5841_s2 + $0x20] sm:$0xff]  ;;  %v2659_v40 = vld [vmem:[%s5841_s2 + $0x28] sm:$0xff] }
 0x34a   :  { %v1298_v50 = vpop.f32.mrf.mxu2 }
 0x34b   :  { %1407 = vrot.lane.b32.xlu0 %v1271_v38, %s2820_s9  ;;  %1443 = vrot.lane.b32.xlu1 %v1271_v38, %s2819_s8  ;;  %v4404_v25 = vpack.c.bf16 %v1271_v38, %v1243_v35 }
 0x34c   :  { %1555 = vrot.lane.b32.xlu2 %v1271_v38, %s2815_s21  ;;  %v1328_v16 = vpop.f32.mrf.mxu0 }
 0x34e   :  { %v1284_v61 = vpop.f32.mrf.mxu3 }
 0x34f   :  { %v1285_v36 = vadd.f32 %v1284_v61, %v1200_v24 }
 0x350   :  { %v1272_v55 = vpop.f32.mrf.mxu1 }
 0x351   :  { %v4410_v28 = vadd.f32 %v1272_v55, %v1259_v19  ;;  %v4460_v56 = vadd.f32 %v1298_v50, %v1285_v36  ;;  %v4601_v19 = vld [vmem:[%s5839_s3 + $0x88] sm:$0xff] }
 0x352   :  { %v1300_v3 = vpop.f32.mrf.mxu2  ;;  %5968 = vst [vmem:[#allocation4_spill] sm:$0xff] %v4601_v19 }
 0x353   :  { %1403 = vrot.lane.b32.xlu1 %v1243_v35, %s2820_s9  ;;  %1551 = vrot.lane.b32.xlu0 %v1243_v35, %s2815_s21 }
 0x354   :  { %1519 = vrot.lane.b32.xlu2 %v1271_v38, %s2816_s28 }
 0x356   :  { %v1286_v30 = vpop.f32.mrf.mxu3 }
 0x357   :  { %v1287_v1 = vadd.f32 %v1286_v30, %v1205_v49 }
 0x359   :  { %v4480_v27 = vadd.f32 %v1300_v3, %v1287_v1 }
 0x35b   :  { %1409 = vrot.lane.b32.xlu1 %v4410_v28, %s2820_s9  ;;  %1515 = vrot.lane.b32.xlu0 %v1243_v35, %s2816_s28 }
 0x35c   :  { %1483 = vrot.lane.b32.xlu2 %v1271_v38, %s2817_s7  ;;  %v1312_v23 = vpop.f32.mrf.mxu1 }
 0x35d   :  { %v1313_v44 = vadd.f32 %v1312_v23, %v1200_v24 }
 0x35f   :  { %v4430_v48 = vadd.f32 %v1326_v39, %v1313_v44 }
 0x363   :  { %1553 = vrot.lane.b32.xlu1 %v4416_v57, %s2815_s21  ;;  %1479 = vrot.lane.b32.xlu0 %v1243_v35, %s2817_s7 }
 0x364   :  { %1371 = vrot.lane.b32.xlu2 %v1271_v38, %s2821_s10  ;;  %v1314_v42 = vpop.f32.mrf.mxu1 }
 0x365   :  { %v1315_v15 = vadd.f32 %v1314_v42, %v1205_v49 }
 0x367   :  { %v4462_v14 = vadd.f32 %v1328_v16, %v1315_v15 }
 0x36b   :  { %1517 = vrot.lane.b32.xlu1 %v4416_v57, %s2816_s28  ;;  %1367 = vrot.lane.b32.xlu0 %v1243_v35, %s2821_s10 }
 0x36c   :  { %1591 = vrot.lane.b32.xlu2 %v1271_v38, %s2818_s0 }
 0x373   :  { %1481 = vrot.lane.b32.xlu1 %v4416_v57, %s2817_s7  ;;  %1587 = vrot.lane.b32.xlu0 %v1243_v35, %s2818_s0 }
 0x374   :  { %1335 = vrot.lane.b32.xlu2 %v1271_v38, %s2822_s29 }
 0x37b   :  { %1491 = vrot.lane.b32.xlu1 %v4430_v48, %s2817_s7  ;;  %1331 = vrot.lane.b32.xlu0 %v1243_v35, %s2822_s29 }
 0x37c   :  { %1439 = vrot.lane.b32.xlu2 %v1243_v35, %s2819_s8 }
 0x383   :  { %1369 = vrot.lane.b32.xlu1 %v4416_v57, %s2821_s10  ;;  %1557 = vrot.lane.b32.xlu0 %v4410_v28, %s2815_s21 }
 0x384   :  { %1445 = vrot.lane.b32.xlu2 %v4410_v28, %s2819_s8 }
 0x38b   :  { %1379 = vrot.lane.b32.xlu1 %v4430_v48, %s2821_s10  ;;  %1521 = vrot.lane.b32.xlu0 %v4410_v28, %s2816_s28 }
 0x38c   :  { %1527 = vrot.lane.b32.xlu2 %v4430_v48, %s2816_s28 }
 0x393   :  { %1589 = vrot.lane.b32.xlu1 %v4416_v57, %s2818_s0  ;;  %1485 = vrot.lane.b32.xlu0 %v4410_v28, %s2817_s7 }
 0x394   :  { %1405 = vrot.lane.b32.xlu2 %v4416_v57, %s2820_s9 }
 0x39b   :  { %1333 = vrot.lane.b32.xlu1 %v4416_v57, %s2822_s29  ;;  %1373 = vrot.lane.b32.xlu0 %v4410_v28, %s2821_s10 }
 0x39c   :  { %1415 = vrot.lane.b32.xlu2 %v4430_v48, %s2820_s9 }
 0x3a3   :  { %1559 = vrot.lane.b32.xlu1 %v4460_v56, %s2815_s21  ;;  %1593 = vrot.lane.b32.xlu0 %v4410_v28, %s2818_s0 }
 0x3a4   :  { %1493 = vrot.lane.b32.xlu2 %v4462_v14, %s2817_s7 }
 0x3a6   :  { %v4470_v29 = vpop.permute.xlu2 %1555 }
 0x3ab   :  { %1523 = vrot.lane.b32.xlu1 %v4460_v56, %s2816_s28  ;;  %1337 = vrot.lane.b32.xlu0 %v4410_v28, %s2822_s29 }
 0x3ac   :  { %1381 = vrot.lane.b32.xlu2 %v4462_v14, %s2821_s10 }
 0x3ae   :  { %v4478_v51 = vpop.permute.xlu2 %1519 }
 0x3b3   :  { %1487 = vrot.lane.b32.xlu1 %v4460_v56, %s2817_s7  ;;  %1563 = vrot.lane.b32.xlu0 %v4430_v48, %s2815_s21 }
 0x3b4   :  { %1561 = vrot.lane.b32.xlu2 %v4480_v27, %s2815_s21 }
 0x3b6   :  { %v4488_v33 = vpop.permute.xlu2 %1483 }
 0x3bb   :  { %1595 = vrot.lane.b32.xlu1 %v4460_v56, %s2818_s0  ;;  %1441 = vrot.lane.b32.xlu0 %v4416_v57, %s2819_s8 }
 0x3bc   :  { %1525 = vrot.lane.b32.xlu2 %v4480_v27, %s2816_s28 }
 0x3bd   :  { %v4496_v2 = vpop.permute.xlu0 %1407  ;;  %v4498_v8 = vpop.permute.xlu1 %1443 }
 0x3be   :  { %5964 = vst [vmem:[#allocation2_spill] sm:$0xff] %v4496_v2  ;;  %v4500_v47 = vpop.permute.xlu2 %1371 }
 0x3bf   :  { %5965 = vst [vmem:[#allocation8_spill] sm:$0xff] %v4500_v47 }
 0x3c3   :  { %1565 = vrot.lane.b32.xlu1 %v4462_v14, %s2815_s21  ;;  %1451 = vrot.lane.b32.xlu0 %v4430_v48, %s2819_s8 }
 0x3c4   :  { %1489 = vrot.lane.b32.xlu2 %v4480_v27, %s2817_s7 }
 0x3c5   :  { %v1404_v45 = vpop.permute.xlu1 %1403  ;;  %v4508_v6 = vpop.permute.xlu0 %1551 }
 0x3c6   :  { %v4510_v22 = vpop.permute.xlu2 %1591  ;;  %v1423_v35 = vsel %vm136_vm5, %v1404_v45, %v4496_v2 }
 0x3c7   :  { %v1428_v11 = vmul.f32 %v4601_v19, %v1423_v35 }
 0x3cb   :  { %1453 = vrot.lane.b32.xlu1 %v4462_v14, %s2819_s8  ;;  %1529 = vrot.lane.b32.xlu0 %v4462_v14, %s2816_s28 }
 0x3cc   :  { %1345 = vrot.lane.b32.xlu2 %v4462_v14, %s2822_s29 }
 0x3cd   :  { %v4518_v13 = vpop.permute.xlu1 %1409  ;;  %v4520_v26 = vpop.permute.xlu0 %1515 }
 0x3ce   :  { %v4522_v18 = vpop.permute.xlu2 %1335 }
 0x3cf   :  { %5966 = vst [vmem:[#allocation7_spill] sm:$0xff] %v4522_v18 }
 0x3d3   :  { %1343 = vrot.lane.b32.xlu1 %v4430_v48, %s2822_s29  ;;  %1417 = vrot.lane.b32.xlu0 %v4462_v14, %s2820_s9 }
 0x3d4   :  { %1597 = vrot.lane.b32.xlu2 %v4480_v27, %s2818_s0 }
 0x3d5   :  { %v4530_v62 = vpop.permute.xlu1 %1553  ;;  %v4532_v59 = vpop.permute.xlu0 %1479 }
 0x3d6   :  { %v4534_v54 = vpop.permute.xlu2 %1439 }
 0x3db   :  { %1449 = vrot.lane.b32.xlu1 %v4480_v27, %s2819_s8  ;;  %1447 = vrot.lane.b32.xlu0 %v4460_v56, %s2819_s8 }
 0x3dc   :  { %1411 = vrot.lane.b32.xlu2 %v4460_v56, %s2820_s9 }
 0x3dd   :  { %v4542_v17 = vpop.permute.xlu1 %1517  ;;  %v1368_v63 = vpop.permute.xlu0 %1367 }
 0x3de   :  { %v4544_v5 = vpop.permute.xlu2 %1445  ;;  %v1387_v3 = vsel %vm90_vm7, %v1368_v63, %v4500_v47 }
 0x3e3   :  { %1375 = vrot.lane.b32.xlu1 %v4460_v56, %s2821_s10  ;;  %1413 = vrot.lane.b32.xlu0 %v4480_v27, %s2820_s9 }
 0x3e4   :  { %1377 = vrot.lane.b32.xlu2 %v4480_v27, %s2821_s10 }
 0x3e5   :  { %v4552_v21 = vpop.permute.xlu1 %1481  ;;  %v4554_v53 = vpop.permute.xlu0 %1587 }
 0x3e6   :  { %v4556_v52 = vpop.permute.xlu2 %1527 }
 0x3e7   :  { %v4562_v37 = vsel %vm278_vm1, %v4556_v52, %v4520_v26 }
 0x3eb   :  { %1341 = vrot.lane.b32.xlu1 %v4480_v27, %s2822_s29  ;;  %1339 = vrot.lane.b32.xlu0 %v4460_v56, %s2822_s29 }
 0x3ec   :  { %1599 = vrot.lane.b32.xlu2 %v4430_v48, %s2818_s0 }
 0x3ed   :  { %v4570_v43 = vpop.permute.xlu1 %1491  ;;  %v4572_v24 = vpop.permute.xlu0 %1331 }
 0x3ee   :  { %v4578_v60 = vsel %vm232_vm2, %v4570_v43, %v4532_v59  ;;  %v4580_v58 = vpop.permute.xlu2 %1405 }
 0x3f3   :  { %1811 = vperm.xlu1 %2709, %v2658_v41   ;;  %1601 = vrot.lane.b32.xlu0 %v4462_v14, %s2818_s0 }
 0x3f4   :  { %1816 = vperm.xlu2 %2710, %v2659_v40   ;;  %v4646_v40 = vld [vmem:[%s5839_s3 + $0x48] sm:$0xff] }
 0x3f5   :  { %v1370_v38 = vpop.permute.xlu1 %1369  ;;  %v1558_v34 = vpop.permute.xlu0 %1557  ;;  %5973 = vst [vmem:[#allocation10_spill] sm:$0xff] %v4646_v40  ;;  %v1392_v35 = vmul.f32 %v4646_v40, %v1387_v3  ;;  %v4667_v3 = vld [vmem:[%s5839_s3 + $0x68] sm:$0xff] }
 0x3f6   :  { %v4593_v49 = vpop.permute.xlu2 %1415  ;;  %5975 = vst [vmem:[#allocation12_spill] sm:$0xff] %v4667_v3 }
 0x3f7   :  { %5967 = vst [vmem:[#allocation3_spill] sm:$0xff] %v4593_v49  ;;  %v1425_v55 = vsel %vm136_vm5, %v4593_v49, %v1404_v45  ;;  %v4640_v45 = vld [vmem:[%s5839_s3 + $0x40] sm:$0xff] }
 0x3f8   :  { %v1427_v23 = vmul.f32 %v4607_v10, %v1425_v55  ;;  %5972 = vst [vmem:[#allocation9_spill] sm:$0xff] %v4640_v45  ;;  %v4709_v49 = vld [vmem:[%s5839_s3 + $0x1c0] sm:$0xff] }
 0x3f9   :  { %5980 = vst [vmem:[#allocation24_spill] sm:$0xff] %v4709_v49 }
 0x3fa   :  { %v4610_v44 = vpack.c.bf16 %v1428_v11, %v1427_v23 }
 0x3fc   :  { %5970 = vst [vmem:[#allocation5_spill] sm:$0xff] %v4610_v44 }
 0x3fd   :  { %v4612_v39 = vpop.permute.xlu1 %1379  ;;  %v1522_v61 = vpop.permute.xlu0 %1521 }
 0x3fe   :  { %5971 = vst [vmem:[#allocation6_spill] sm:$0xff] %v4612_v39  ;;  %v4614_v42 = vpop.permute.xlu2 %1493  ;;  %v1389_v30 = vsel %vm90_vm7, %v4612_v39, %v1368_v63 }
 0x3ff   :  { %v4620_v36 = vsel %vm232_vm2, %v4614_v42, %v4552_v21  ;;  %v1391_v41 = vmul.f32 %v4640_v45, %v1389_v30  ;;  %v4661_v30 = vld [vmem:[%s5839_s3 + $0x60] sm:$0xff] }
 0x400   :  { %5974 = vst [vmem:[#allocation11_spill] sm:$0xff] %v4661_v30 }
 0x401   :  { %v1399_v23 = vpack.c.bf16 %v1392_v35, %v1391_v41 }
 0x403   :  { %v1647_v19 = vunpack.c.l.b16 %v1399_v23  ;;  %v1648_v39 = vunpack.c.h.b16 %v1399_v23 }
 0x405   :  { %v4622_v50 = vpop.permute.xlu1 %1589  ;;  %v4624_v15 = vpop.permute.xlu0 %1485 }
 0x406   :  { %v4626_v16 = vpop.permute.xlu2 %1381 }
 0x407   :  { %v1390_v1 = vsel %vm90_vm7, %v4626_v16, %v1370_v38 }
 0x408   :  { %v1395_v45 = vmul.f32 %v4661_v30, %v1390_v1  ;;  %v4679_v1 = vld [vmem:[%s5839_s3 + $0x1e8] sm:$0xff] }
 0x409   :  { %5976 = vst [vmem:[#allocation13_spill] sm:$0xff] %v4679_v1 }
 0x40d   :  { %v4649_v55 = vpop.permute.xlu1 %1333  ;;  %v4651_v11 = vpop.permute.xlu0 %1373 }
 0x40e   :  { %v4653_v63 = vpop.permute.xlu2 %1561  ;;  %v1388_v10 = vsel %vm90_vm7, %v1370_v38, %v4651_v11  ;;  %v1572_v38 = vsel %vm324_vm0, %v4530_v62, %v1558_v34 }
 0x40f   :  { %v1396_v41 = vmul.f32 %v4667_v3, %v1388_v10  ;;  %v1570_v35 = vsel %vm324_vm0, %v1558_v34, %v4653_v63  ;;  %v4689_v34 = vld [vmem:[%s5839_s3 + $0x1e0] sm:$0xff] }
 0x410   :  { %v1580_v30 = vmul.f32 %v4679_v1, %v1570_v35  ;;  %5977 = vst [vmem:[#allocation14_spill] sm:$0xff] %v4689_v34 }
 0x411   :  { %v1401_v40 = vpack.c.bf16 %v1396_v41, %v1395_v45  ;;  %v1571_v45 = vsel %vm324_vm0, %v4508_v6, %v4470_v29  ;;  %v1579_v41 = vmul.f32 %v4689_v34, %v1572_v38 }
 0x412   :  { %v1575_v38 = vmul.f32 %v4709_v49, %v1571_v45  ;;  %v5982_v45 = vld [vmem:[#allocation18_spill] sm:$0xff] }
 0x413   :  { %v1651_v47 = vunpack.c.l.b16 %v1401_v40  ;;  %v1652_v10 = vunpack.c.h.b16 %v1401_v40  ;;  %v1585_v34 = vpack.c.bf16 %v1580_v30, %v1579_v41  ;;  %v1535_v30 = vsel %vm278_vm1, %v4520_v26, %v4478_v51 }
 0x415   :  { %v4692_v3 = vpop.permute.xlu1 %1559  ;;  %v4694_v2 = vpop.permute.xlu0 %1593  ;;  %v4696_v35 = vpack.c.b16 %v1651_v47, %v1647_v19  ;;  %v4698_v23 = vpack.c.b16 %v1652_v10, %v1648_v39  ;;  %v4715_v47 = vld [vmem:[%s5839_s3 + $0x1c8] sm:$0xff]  ;;  %v1536_v39 = vsel %vm278_vm1, %v4542_v17, %v1522_v61  ;;  %v1771_v49 = vunpack.c.l.b16 %v1585_v34 }
 0x416   :  { %v1569_v40 = vsel %vm324_vm0, %v4470_v29, %v4692_v3  ;;  %v4704_v1 = vpop.permute.xlu2 %1525  ;;  %5981 = vst [vmem:[#allocation25_spill] sm:$0xff] %v4715_v47 }
 0x417   :  { %5978 = vst [vmem:[#allocation15_spill] sm:$0xff] %v4696_v35  ;;  %v1576_v19 = vmul.f32 %v4715_v47, %v1569_v40  ;;  %v1534_v29 = vsel %vm278_vm1, %v1522_v61, %v4704_v1  ;;  %v4732_v47 = vld [vmem:[%s5839_s3 + $0x1a0] sm:$0xff] }
 0x418   :  { %5979 = vst [vmem:[#allocation16_spill] sm:$0xff] %v4698_v23  ;;  %v1544_v41 = vmul.f32 %v5982_v45, %v1534_v29  ;;  %v1772_v23 = vunpack.c.h.b16 %v1585_v34  ;;  %v1543_v44 = vmul.f32 %v4732_v47, %v1536_v39  ;;  %v4738_v61 = vld [vmem:[%s5839_s3 + $0x180] sm:$0xff] }
 0x419   :  { %v1583_v10 = vpack.c.bf16 %v1576_v19, %v1575_v38  ;;  %5983 = vst [vmem:[#allocation18_spill] sm:$0xff] %v4732_v47  ;;  %v1539_v26 = vmul.f32 %v4738_v61, %v1535_v30  ;;  %v4754_v30 = vld [vmem:[%s5839_s3 + $0x188] sm:$0xff] }
 0x41a   :  { %v1549_v45 = vpack.c.bf16 %v1544_v41, %v1543_v44  ;;  %v5986_v44 = vld [vmem:[#allocation20_spill] sm:$0xff] }
 0x41b   :  { %v1767_v35 = vunpack.c.l.b16 %v1583_v10  ;;  %v1768_v40 = vunpack.c.h.b16 %v1583_v10  ;;  %v1542_v10 = vmul.f32 %v4020_v32, %v4562_v37 }
 0x41d   :  { %v1524_v38 = vpop.permute.xlu1 %1523  ;;  %v4741_v19 = vpop.permute.xlu0 %1337  ;;  %v1775_v34 = vpack.c.b16 %v1771_v49, %v1767_v35  ;;  %v1776_v29 = vpack.c.b16 %v1772_v23, %v1768_v40  ;;  %v5984_v35 = vld [vmem:[#allocation19_spill] sm:$0xff] }
 0x41e   :  { %v1531_v39 = vsel %vm278_vm1, %v1524_v38, %v4556_v52  ;;  %v1533_v47 = vsel %vm278_vm1, %v4478_v51, %v1524_v38  ;;  %v1490_v18 = vpop.permute.xlu2 %1489  ;;  %v5985_v51 = vld [vmem:[#allocation21_spill] sm:$0xff] }
 0x41f   :  { %v1540_v49 = vmul.f32 %v4754_v30, %v1533_v47  ;;  %v1541_v23 = vmul.f32 %v5984_v35, %v1531_v39  ;;  %v1496_v32 = vsel %vm232_vm2, %v1490_v18, %v4614_v42  ;;  %v1498_v52 = vsel %vm232_vm2, %v4624_v15, %v1490_v18  ;;  %1831 = vmatpush.bf16.msra.mxu2 %v1775_v34  ;;  %v4776_v42 = vld [vmem:[%s5839_s3 + $0x168] sm:$0xff] }
 0x420   :  { %v1510_v37 = vmul.f32 %v5985_v51, %v4620_v36  ;;  %v1509_v41 = vmul.f32 %v5986_v44, %v1496_v32  ;;  %1859 = vmatpush.bf16.msra.mxu0 %v1776_v29  ;;  %v1500_v47 = vsel %vm232_vm2, %v4552_v21, %v4624_v15  ;;  %v1508_v18 = vmul.f32 %v4776_v42, %v1498_v52  ;;  %v4786_v15 = vld [vmem:[%s5839_s3 + $0x160] sm:$0xff] }
 0x421   :  { %v1547_v40 = vpack.c.bf16 %v1540_v49, %v1539_v26  ;;  %v4771_v38 = vpack.c.bf16 %v1542_v10, %v1541_v23  ;;  %v1751_v39 = vunpack.c.l.b16 %v1549_v45  ;;  %v1752_v29 = vunpack.c.h.b16 %v1549_v45 }
 0x422   :  { %v1514_v34 = vpack.c.bf16 %v1510_v37, %v1509_v41  ;;  %v1499_v21 = vsel %vm232_vm2, %v4532_v59, %v4488_v33  ;;  %v1507_v26 = vmul.f32 %v4786_v15, %v1500_v47  ;;  %v4800_v37 = vld [vmem:[%s5839_s3 + $0x140] sm:$0xff]  ;;  %v1506_v41 = vmul.f32 %v4146_v4, %v4578_v60 }
 0x423   :  { %v1747_v36 = vunpack.c.l.b16 %v1547_v40  ;;  %v1748_v35 = vunpack.c.h.b16 %v1547_v40  ;;  %v1503_v44 = vmul.f32 %v4800_v37, %v1499_v21  ;;  %v1477_v40 = vpack.c.bf16 %v4410_v28, %v4416_v57 }
 0x424   :  { %v1513_v52 = vpack.c.bf16 %v1508_v18, %v1507_v26  ;;  %v1734_v4 = vunpack.c.h.b16 %v1514_v34  ;;  %v1608_v28 = vsel %vm370_vm3, %v4622_v50, %v4694_v2 }
 0x425   :  { %v1488_v10 = vpop.permute.xlu1 %1487  ;;  %v1564_v49 = vpop.permute.xlu0 %1563  ;;  %v1755_v23 = vpack.c.b16 %v1751_v39, %v1747_v36  ;;  %v1756_v32 = vpack.c.b16 %v1752_v29, %v1748_v35  ;;  %v1733_v29 = vunpack.c.l.b16 %v1514_v34  ;;  %v1711_v57 = vunpack.c.l.b16 %v1477_v40 }
 0x426   :  { %v1495_v45 = vsel %vm232_vm2, %v1488_v10, %v4570_v43  ;;  %v1497_v59 = vsel %vm232_vm2, %v4488_v33, %v1488_v10  ;;  %v4795_v51 = vpop.permute.xlu2 %1345  ;;  %v4808_v43 = vld [vmem:[%s5839_s3 + $0x148] sm:$0xff]  ;;  %v1731_v39 = vunpack.c.l.b16 %v1513_v52  ;;  %v1732_v35 = vunpack.c.h.b16 %v1513_v52 }
 0x427   :  { %v1504_v47 = vmul.f32 %v4808_v43, %v1497_v59  ;;  %v1505_v33 = vmul.f32 %v4140_v46, %v1495_v45  ;;  %1832 = vmatpush.bf16.msra.mxu2 %v1755_v23  ;;  %1860 = vmatpush.bf16.msra.mxu0 %v1756_v32  ;;  %v1607_v46 = vsel %vm370_vm3, %v4554_v53, %v4510_v22  ;;  %v1712_v23 = vunpack.c.h.b16 %v1477_v40 }
 0x428   :  { %v1611_v40 = vmul.f32 %v4268_v9, %v1607_v46  ;;  %v1573_v9 = vsel %vm324_vm0, %v1564_v49, %v4508_v6 }
 0x429   :  { %v1511_v18 = vpack.c.bf16 %v1504_v47, %v1503_v44  ;;  %v1512_v36 = vpack.c.bf16 %v1506_v41, %v1505_v33  ;;  %v1707_v33 = vunpack.c.l.b16 %v4404_v25 }
 0x42b   :  { %v1727_v60 = vunpack.c.l.b16 %v1511_v18  ;;  %v1728_v21 = vunpack.c.h.b16 %v1511_v18  ;;  %v1729_v26 = vunpack.c.l.b16 %v1512_v36  ;;  %v1730_v10 = vunpack.c.h.b16 %v1512_v36 }
 0x42d   :  { %v4822_v32 = vpop.permute.xlu1 %1595  ;;  %v4824_v52 = vpop.permute.xlu0 %1441  ;;  %v1735_v34 = vpack.c.b16 %v1731_v39, %v1727_v60  ;;  %v1736_v45 = vpack.c.b16 %v1732_v35, %v1728_v21  ;;  %v4826_v59 = vpack.c.b16 %v1733_v29, %v1729_v26  ;;  %v4828_v44 = vpack.c.b16 %v1734_v4, %v1730_v10 }
 0x42e   :  { %v1605_v41 = vsel %vm370_vm3, %v4510_v22, %v4822_v32  ;;  %v4834_v47 = vpop.permute.xlu2 %1597  ;;  %v1708_v39 = vunpack.c.h.b16 %v4404_v25  ;;  %v1615_v35 = vmul.f32 %v4298_v0, %v1608_v28  ;;  %v1567_v22 = vsel %vm324_vm0, %v4692_v3, %v1564_v49  ;;  %v4855_v25 = vld [vmem:[%s5839_s3 + $0x1d0] sm:$0xff]  ;;  %v4861_v3 = vld [vmem:[%s5839_s3 + $0x1d8] sm:$0xff] }
 0x42f   :  { %v1612_v18 = vmul.f32 %v4274_v20, %v1605_v41  ;;  %v1606_v36 = vsel %vm370_vm3, %v4694_v2, %v4834_v47  ;;  %1833 = vmatpush.bf16.msra.mxu2 %v1735_v34  ;;  %1861 = vmatpush.bf16.msra.mxu0 %v1736_v45  ;;  %v1715_v4 = vpack.c.b16 %v1711_v57, %v1707_v33  ;;  %v2696_v45 = vld [vmem:[%s5840_s1 + $0x24] sm:$0xf]  ;;  %v2664_v41 = vld [vmem:[%s5840_s1 + $0x28] sm:$0xf0] }
 0x430   :  { %v1616_v20 = vmul.f32 %v4307_v7, %v1606_v36  ;;  %v1716_v60 = vpack.c.b16 %v1712_v23, %v1708_v39  ;;  %v1577_v0 = vmul.f32 %v4855_v25, %v1567_v22  ;;  %v1578_v6 = vmul.f32 %v4861_v3, %v1573_v9  ;;  %v5988_v36 = vld [vmem:[#allocation23_spill] sm:$0xff] }
 0x431   :  { %v1619_v29 = vpack.c.bf16 %v1612_v18, %v1611_v40  ;;  %v5987_v40 = vld [vmem:[#allocation22_spill] sm:$0xff]  ;;  %v4890_v9 = vor.u32 %v2696_v45, %v2664_v41 }
 0x432   :  { %v1621_v2 = vpack.c.bf16 %v1616_v20, %v1615_v35  ;;  %v1584_v33 = vpack.c.bf16 %v1578_v6, %v1577_v0  ;;  %v1459_v35 = vsel %vm182_vm4, %v4534_v54, %v4498_v8  ;;  %v1460_v20 = vsel %vm182_vm4, %v4824_v52, %v4544_v5  ;;  %v4907_v6 = vld [vmem:[%s5839_s3 + $0xc8] sm:$0xff] }
 0x433   :  { %v1787_v49 = vunpack.c.l.b16 %v1619_v29  ;;  %1834 = vmatpush.bf16.msra.mxu2 %v1715_v4  ;;  %1862 = vmatpush.bf16.msra.mxu0 %v1716_v60  ;;  %v1788_v7 = vunpack.c.h.b16 %v1619_v29  ;;  %v4899_v29 = vld [vmem:[%s5839_s3 + $0xc0] sm:$0xff] }
 0x434   :  { %v1791_v21 = vunpack.c.l.b16 %v1621_v2  ;;  %v1792_v26 = vunpack.c.h.b16 %v1621_v2  ;;  %v1769_v60 = vunpack.c.l.b16 %v1584_v33  ;;  %v1770_v2 = vunpack.c.h.b16 %v1584_v33 }
 0x435   :  { %v1566_v10 = vpop.permute.xlu1 %1565  ;;  %v4864_v46 = vpop.permute.xlu0 %1451 }
 0x436   :  { %v1568_v28 = vsel %vm324_vm0, %v4653_v63, %v1566_v10  ;;  %v1574_v57 = vsel %vm324_vm0, %v1566_v10, %v4530_v62  ;;  %v4872_v23 = vpop.permute.xlu2 %1411  ;;  %v1795_v34 = vpack.c.b16 %v1791_v21, %v1787_v49  ;;  %v1461_v62 = vsel %vm182_vm4, %v4864_v46, %v4534_v54 }
 0x437   :  { %v1581_v18 = vmul.f32 %v5987_v40, %v1568_v28  ;;  %v1582_v63 = vmul.f32 %v5988_v36, %v1574_v57  ;;  %v1796_v39 = vpack.c.b16 %v1792_v26, %v1788_v7  ;;  %v1463_v4 = vmul.f32 %v4899_v29, %v1461_v62  ;;  %v4913_v7 = vld [vmem:[%s5839_s3 + $0xe8] sm:$0xff]  ;;  %v4958_v62 = vld [vmem:[%s5839_s3 + $0x1b8] sm:$0xff] }
 0x438   :  { %1852 = vmatpush.bf16.msra.mxu3 %v1795_v34  ;;  %v1464_v49 = vmul.f32 %v4907_v6, %v1459_v35  ;;  %v1468_v21 = vmul.f32 %v4913_v7, %v1460_v20  ;;  %5989 = vst [vmem:[#allocation19_spill] sm:$0xff] %v4958_v62 }
 0x439   :  { %v1586_v22 = vpack.c.bf16 %v1582_v63, %v1581_v18  ;;  %1880 = vmatpush.bf16.msra.mxu1 %v1796_v39 }
 0x43a   :  { %v1471_v34 = vpack.c.bf16 %v1464_v49, %v1463_v4 }
 0x43b   :  { %v1773_v0 = vunpack.c.l.b16 %v1586_v22  ;;  %v1774_v54 = vunpack.c.h.b16 %v1586_v22  ;;  %2668 = vmatmul.msk.bf16.vlgmr.msra.gmra.mxu3 %vm603_vm6, %v4890_v9  ;;  %v1424_v22 = vsel %vm136_vm5, %v4580_v58, %v4518_v13 }
 0x43c   :  { %2669 = vmatmul.msk.bf16.vlgmr.msra.gmra.mxu1 %vm603_vm6, %v4890_v9 }
 0x43d   :  { %v4916_v26 = vpop.permute.xlu1 %1453  ;;  %v1530_v10 = vpop.permute.xlu0 %1529  ;;  %v1777_v28 = vpack.c.b16 %v1773_v0, %v1769_v60  ;;  %v1778_v57 = vpack.c.b16 %v1774_v54, %v1770_v2  ;;  %v1478_v60 = vpack.c.bf16 %v4462_v14, %v4480_v27  ;;  %v1687_v2 = vunpack.c.l.b16 %v1471_v34 }
 0x43e   :  { %v1462_v45 = vsel %vm182_vm4, %v4916_v26, %v4824_v52  ;;  %v1378_v41 = vpop.permute.xlu2 %1377  ;;  %v1532_v33 = vsel %vm278_vm1, %v4704_v1, %v1530_v10  ;;  %v1538_v40 = vsel %vm278_vm1, %v1530_v10, %v4542_v17  ;;  %v4940_v52 = vld [vmem:[%s5839_s3 + $0x1b0] sm:$0xff]  ;;  %v1688_v54 = vunpack.c.h.b16 %v1471_v34 }
 0x43f   :  { %v1467_v18 = vmul.f32 %v4205_v31, %v1462_v45  ;;  %v1384_v36 = vsel %vm90_vm7, %v1378_v41, %v4626_v16  ;;  %v1386_v63 = vsel %vm90_vm7, %v4651_v11, %v1378_v41  ;;  %v1545_v1 = vmul.f32 %v4940_v52, %v1532_v33  ;;  %1887 = vmatpush.bf16.msrb.mxu3 %v1777_v28  ;;  %v4946_v31 = vld [vmem:[%s5839_s3 + $0x70] sm:$0xff]  ;;  %v4952_v16 = vld [vmem:[%s5839_s3 + $0x78] sm:$0xff] }
 0x440   :  { %v1397_v17 = vmul.f32 %v4946_v31, %v1386_v63  ;;  %v1398_v11 = vmul.f32 %v4952_v16, %v1384_v36  ;;  %v1546_v39 = vmul.f32 %v4958_v62, %v1538_v40  ;;  %1915 = vmatpush.bf16.msrb.mxu1 %v1778_v57  ;;  %v1749_v10 = vunpack.c.l.b16 %v4771_v38  ;;  %v4992_v63 = vld [vmem:[%s5839_s3 + $0xa8] sm:$0xff] }
 0x441   :  { %v1473_v35 = vpack.c.bf16 %v1468_v21, %v1467_v18  ;;  %v1750_v21 = vunpack.c.h.b16 %v4771_v38  ;;  %v1354_v45 = vsel %vm45_vm8, %v4795_v51, %v4649_v55  ;;  %v1476_v34 = vpack.c.bf16 %v4430_v48, %v4460_v56  ;;  %5990 = vst [vmem:[#allocation21_spill] sm:$0xff] %v4992_v63  ;;  %v5991_v48 = vld [vmem:[#allocation7_spill] sm:$0xff] }
 0x442   :  { %v4965_v20 = vpack.c.bf16 %v1398_v11, %v1397_v17  ;;  %v1550_v4 = vpack.c.bf16 %v1546_v39, %v1545_v1  ;;  %v1432_v1 = vmul.f32 %v4992_v63, %v1424_v22  ;;  %v1351_v56 = vsel %vm45_vm8, %v4572_v24, %v5991_v48  ;;  %v5012_v39 = vld [vmem:[%s5839_s3 + $0x20] sm:$0xff] }
 0x443   :  { %v1691_v0 = vunpack.c.l.b16 %v1473_v35  ;;  %v1692_v49 = vunpack.c.h.b16 %v1473_v35  ;;  %v1352_v17 = vsel %vm45_vm8, %v4649_v55, %v4741_v19  ;;  %5993 = vst [vmem:[#allocation22_spill] sm:$0xff] %v5012_v39  ;;  %v1713_v35 = vunpack.c.l.b16 %v1478_v60  ;;  %v5018_v55 = vld [vmem:[%s5839_s3] sm:$0xff] }
 0x444   :  { %v1753_v28 = vunpack.c.l.b16 %v1550_v4  ;;  %v1754_v57 = vunpack.c.h.b16 %v1550_v4  ;;  %v1714_v22 = vunpack.c.h.b16 %v1478_v60  ;;  %5994 = vst [vmem:[#allocation23_spill] sm:$0xff] %v5018_v55  ;;  %v5030_v60 = vld [vmem:[%s5839_s3 + $0x28] sm:$0xff] }
 0x445   :  { %v4975_v41 = vpop.permute.xlu1 %1343  ;;  %v4977_v33 = vpop.permute.xlu0 %1417  ;;  %v1695_v14 = vpack.c.b16 %v1691_v0, %v1687_v2  ;;  %v1696_v27 = vpack.c.b16 %v1692_v49, %v1688_v54  ;;  %v5024_v0 = vld [vmem:[%s5839_s3 + $0x8] sm:$0xff]  ;;  %5996 = vst [vmem:[#allocation26_spill] sm:$0xff] %v5030_v60  ;;  %v1360_v49 = vmul.f32 %v5030_v60, %v1352_v17  ;;  %v6034_v60 = vld [vmem:[#allocation17_spill] sm:$0xff] }
 0x446   :  { %v1353_v38 = vsel %vm45_vm8, %v4975_v41, %v4572_v24  ;;  %v1426_v40 = vsel %vm136_vm5, %v4977_v33, %v4580_v58  ;;  %v1757_v18 = vpack.c.b16 %v1753_v28, %v1749_v10  ;;  %v1758_v36 = vpack.c.b16 %v1754_v57, %v1750_v21  ;;  %v5006_v58 = vld [vmem:[%s5839_s3 + $0xa0] sm:$0xff]  ;;  %5995 = vst [vmem:[#allocation7_spill] sm:$0xff] %v5024_v0  ;;  %v5997_v21 = vld [vmem:[#allocation5_spill] sm:$0xff] }
 0x447   :  { %5992 = vst [vmem:[#allocation20_spill] sm:$0xff] %v5006_v58  ;;  %v1431_v11 = vmul.f32 %v5006_v58, %v1426_v40  ;;  %1835 = vmatpush.bf16.msra.mxu2 %v1695_v14  ;;  %v1359_v24 = vmul.f32 %v5012_v39, %v1354_v45  ;;  %1863 = vmatpush.bf16.msra.mxu0 %v1696_v27  ;;  %v1709_v10 = vunpack.c.l.b16 %v1476_v34  ;;  %v1710_v28 = vunpack.c.h.b16 %v1476_v34  ;;  %v5998_v40 = vld [vmem:[#allocation3_spill] sm:$0xff] }
 0x448   :  { %1888 = vmatpush.bf16.msrb.mxu3 %v1757_v18  ;;  %v1355_v4 = vmul.f32 %v5018_v55, %v1353_v38  ;;  %1916 = vmatpush.bf16.msrb.mxu1 %v1758_v36  ;;  %v1356_v54 = vmul.f32 %v5024_v0, %v1351_v56  ;;  %v1667_v57 = vunpack.c.l.b16 %v5997_v21  ;;  %v1668_v14 = vunpack.c.h.b16 %v5997_v21  ;;  %v5999_v56 = vld [vmem:[#allocation2_spill] sm:$0xff] }
 0x449   :  { %v1437_v2 = vpack.c.bf16 %v1432_v1, %v1431_v11  ;;  %v1365_v38 = vpack.c.bf16 %v1360_v49, %v1359_v24  ;;  %v1419_v18 = vsel %vm136_vm5, %v4872_v23, %v5998_v40  ;;  %v1717_v36 = vpack.c.b16 %v1713_v35, %v1709_v10  ;;  %v5084_v10 = vld [vmem:[%s5839_s3 + $0x90] sm:$0xff] }
 0x44a   :  { %v1718_v1 = vpack.c.b16 %v1714_v22, %v1710_v28  ;;  %v1421_v34 = vsel %vm136_vm5, %v5999_v56, %v4872_v23  ;;  %v1363_v17 = vpack.c.bf16 %v1356_v54, %v1355_v4  ;;  %v5060_v23 = vld [vmem:[%s5839_s3 + $0xf0] sm:$0xff]  ;;  %v5078_v4 = vld [vmem:[%s5839_s3 + $0xd8] sm:$0xff]  ;;  %6004 = vst [vmem:[#allocation28_spill] sm:$0xff] %v5084_v10 }
 0x44b   :  { %v1671_v45 = vunpack.c.l.b16 %v1437_v2  ;;  %v1672_v27 = vunpack.c.h.b16 %v1437_v2  ;;  %6000 = vst [vmem:[#allocation5_spill] sm:$0xff] %v5060_v23  ;;  %v1429_v28 = vmul.f32 %v5084_v10, %v1421_v34  ;;  %v2697_v34 = vld [vmem:[%s5840_s1 + $0x24] sm:$0xf0]  ;;  %v6008_v10 = vld [vmem:[#allocation6_spill] sm:$0xff] }
 0x44c   :  { %1889 = vmatpush.bf16.msrb.mxu3 %v4826_v59  ;;  %1917 = vmatpush.bf16.msrb.mxu1 %v4828_v44  ;;  %6003 = vst [vmem:[#allocation27_spill] sm:$0xff] %v5078_v4  ;;  %v1627_v40 = vunpack.c.l.b16 %v1363_v17  ;;  %v1628_v56 = vunpack.c.h.b16 %v1363_v17 }
 0x44d   :  { %v1450_v11 = vpop.permute.xlu1 %1449  ;;  %v1448_v2 = vpop.permute.xlu0 %1447  ;;  %v1675_v24 = vpack.c.b16 %v1671_v45, %v1667_v57  ;;  %v1676_v49 = vpack.c.b16 %v1672_v27, %v1668_v14  ;;  %v5090_v57 = vld [vmem:[%s5839_s3 + $0x98] sm:$0xff] }
 0x44e   :  { %v1456_v21 = vsel %vm182_vm4, %v1450_v11, %v4916_v26  ;;  %v1458_v59 = vsel %vm182_vm4, %v4544_v5, %v1450_v11  ;;  %v1455_v35 = vsel %vm182_vm4, %v1448_v2, %v4864_v46  ;;  %v1457_v44 = vsel %vm182_vm4, %v4498_v8, %v1448_v2  ;;  %v5066_v26 = vld [vmem:[%s5839_s3 + $0xf8] sm:$0xff]  ;;  %v5072_v46 = vld [vmem:[%s5839_s3 + $0xd0] sm:$0xff]  ;;  %6005 = vst [vmem:[#allocation29_spill] sm:$0xff] %v5090_v57  ;;  %v2662_v11 = vld [vmem:[%s5840_s1 + $0x20] sm:$0xf] }
 0x44f   :  { %v1469_v22 = vmul.f32 %v5060_v23, %v1458_v59  ;;  %6001 = vst [vmem:[#allocation3_spill] sm:$0xff] %v5066_v26  ;;  %v1470_v5 = vmul.f32 %v5066_v26, %v1456_v21  ;;  %v1465_v8 = vmul.f32 %v5072_v46, %v1457_v44  ;;  %v1466_v54 = vmul.f32 %v5078_v4, %v1455_v35  ;;  %v6006_v21 = vld [vmem:[#allocation15_spill] sm:$0xff]  ;;  %v6033_v26 = vld [vmem:[#allocation4_spill] sm:$0xff] }
 0x450   :  { %6002 = vst [vmem:[#allocation2_spill] sm:$0xff] %v5072_v46  ;;  %1836 = vmatpush.bf16.msra.mxu2 %v1675_v24  ;;  %v1430_v45 = vmul.f32 %v5090_v57, %v1419_v18  ;;  %1864 = vmatpush.bf16.msra.mxu0 %v1676_v49  ;;  %v1631_v2 = vunpack.c.l.b16 %v1365_v38  ;;  %v1632_v24 = vunpack.c.h.b16 %v1365_v38  ;;  %v5101_v17 = vor.u32 %v2697_v34, %v2662_v11  ;;  %v5136_v11 = vld [vmem:[%s5839_s3 + $0xb8] sm:$0xff] }
 0x451   :  { %1890 = vmatpush.bf16.msrb.mxu3 %v1717_v36  ;;  %v1474_v14 = vpack.c.bf16 %v1470_v5, %v1469_v22  ;;  %v1472_v27 = vpack.c.bf16 %v1466_v54, %v1465_v8  ;;  %1918 = vmatpush.bf16.msrb.mxu1 %v1718_v1  ;;  %v6007_v1 = vld [vmem:[#allocation16_spill] sm:$0xff] }
 0x452   :  { %v1436_v35 = vpack.c.bf16 %v1430_v45, %v1429_v28  ;;  %v1635_v5 = vpack.c.b16 %v1631_v2, %v1627_v40  ;;  %v1636_v8 = vpack.c.b16 %v1632_v24, %v1628_v56  ;;  %v1600_v2 = vpop.permute.xlu2 %1599 }
 0x453   :  { %v1689_v18 = vunpack.c.l.b16 %v1472_v27  ;;  %v1693_v49 = vunpack.c.l.b16 %v1474_v14  ;;  %v1690_v36 = vunpack.c.h.b16 %v1472_v27  ;;  %v1694_v59 = vunpack.c.h.b16 %v1474_v14  ;;  %v5118_v14 = vld [vmem:[%s5839_s3 + $0x50] sm:$0xff] }
 0x454   :  { %1837 = vmatpush.bf16.msra.mxu2 %v6006_v21  ;;  %1865 = vmatpush.bf16.msra.mxu0 %v6007_v1  ;;  %v6009_v21 = vld [vmem:[#allocation8_spill] sm:$0xff]  ;;  %6010 = vst [vmem:[#allocation15_spill] sm:$0xff] %v5118_v14 }
 0x455   :  { %v1376_v44 = vpop.permute.xlu1 %1375  ;;  %v1414_v22 = vpop.permute.xlu0 %1413  ;;  %v1697_v54 = vpack.c.b16 %v1693_v49, %v1689_v18  ;;  %v1698_v57 = vpack.c.b16 %v1694_v59, %v1690_v36  ;;  %6013 = vst [vmem:[#allocation8_spill] sm:$0xff] %v5136_v11  ;;  %v1669_v49 = vunpack.c.l.b16 %v1436_v35  ;;  %v1670_v59 = vunpack.c.h.b16 %v1436_v35 }
 0x456   :  { %v1383_v38 = vsel %vm90_vm7, %v1376_v44, %v6008_v10  ;;  %v1385_v27 = vsel %vm90_vm7, %v6009_v21, %v1376_v44  ;;  %v1420_v28 = vsel %vm136_vm5, %v1414_v22, %v4977_v33  ;;  %v1422_v45 = vsel %vm136_vm5, %v4518_v13, %v1414_v22  ;;  %v5124_v10 = vld [vmem:[%s5839_s3 + $0x58] sm:$0xff]  ;;  %v5130_v33 = vld [vmem:[%s5839_s3 + $0xb0] sm:$0xff] }
 0x457   :  { %v1393_v40 = vmul.f32 %v5118_v14, %v1385_v27  ;;  %6011 = vst [vmem:[#allocation16_spill] sm:$0xff] %v5124_v10  ;;  %v1394_v56 = vmul.f32 %v5124_v10, %v1383_v38  ;;  %v1433_v13 = vmul.f32 %v5130_v33, %v1422_v45  ;;  %v1434_v34 = vmul.f32 %v5136_v11, %v1420_v28  ;;  %v5163_v45 = vld [vmem:[%s5839_s3 + $0x30] sm:$0xff]  ;;  %v2675_v11 = vld [vmem:[%s5841_s2 + $0x38] sm:$0xff] }
 0x458   :  { %6012 = vst [vmem:[#allocation6_spill] sm:$0xff] %v5130_v33  ;;  %1838 = vmatpush.bf16.msra.mxu2 %v1635_v5  ;;  %1866 = vmatpush.bf16.msra.mxu0 %v1636_v8  ;;  %v1603_v44 = vsel %vm370_vm3, %v4822_v32, %v1600_v2  ;;  %v1609_v22 = vsel %vm370_vm3, %v1600_v2, %v4554_v53  ;;  %v1653_v5 = vunpack.c.l.b16 %v4965_v20 }
 0x459   :  { %1891 = vmatpush.bf16.msrb.mxu3 %v1697_v54  ;;  %v1400_v24 = vpack.c.bf16 %v1394_v56, %v1393_v40  ;;  %v1438_v18 = vpack.c.bf16 %v1434_v34, %v1433_v13  ;;  %1919 = vmatpush.bf16.msrb.mxu1 %v1698_v57  ;;  %6014 = vst [vmem:[#allocation30_spill] sm:$0xff] %v5163_v45  ;;  %v5181_v56 = vld [vmem:[%s5839_s3 + $0x18] sm:$0xff]  ;;  %v1654_v34 = vunpack.c.h.b16 %v4965_v20 }
 0x45a   :  { %6017 = vst [vmem:[#allocation33_spill] sm:$0xff] %v5181_v56 }
 0x45b   :  { %1839 = vmatmul.bf16.vlgmr.msra.gmra.mxu2 %v5101_v17  ;;  %1867 = vmatmul.bf16.vlgmr.msra.gmra.mxu0 %v5101_v17  ;;  %v1673_v36 = vunpack.c.l.b16 %v1438_v18  ;;  %v1674_v1 = vunpack.c.h.b16 %v1438_v18  ;;  %v1649_v21 = vunpack.c.l.b16 %v1400_v24  ;;  %v1650_v27 = vunpack.c.h.b16 %v1400_v24 }
 0x45d   :  { %v1342_v8 = vpop.permute.xlu1 %1341  ;;  %v1340_v57 = vpop.permute.xlu0 %1339  ;;  %v1677_v54 = vpack.c.b16 %v1673_v36, %v1669_v49  ;;  %v1678_v38 = vpack.c.b16 %v1674_v1, %v1670_v59  ;;  %v1657_v18 = vpack.c.b16 %v1653_v5, %v1649_v21  ;;  %v5188_v49 = vld [vmem:[%s5839_s3 + $0x210] sm:$0xff]  ;;  %v5194_v59 = vld [vmem:[%s5839_s3 + $0x218] sm:$0xff] }
 0x45e   :  { %v1348_v35 = vsel %vm45_vm8, %v1342_v8, %v4795_v51  ;;  %v1350_v32 = vsel %vm45_vm8, %v4741_v19, %v1342_v8  ;;  %v1347_v53 = vsel %vm45_vm8, %v1340_v57, %v4975_v41  ;;  %v1349_v28 = vsel %vm45_vm8, %v5991_v48, %v1340_v57  ;;  %v5169_v51 = vld [vmem:[%s5839_s3 + $0x38] sm:$0xff]  ;;  %v5175_v41 = vld [vmem:[%s5839_s3 + $0x10] sm:$0xff]  ;;  %6018 = vst [vmem:[#allocation34_spill] sm:$0xff] %v5188_v49 }
 0x45f   :  { %v1361_v40 = vmul.f32 %v5163_v45, %v1350_v32  ;;  %6015 = vst [vmem:[#allocation31_spill] sm:$0xff] %v5169_v51  ;;  %v1362_v19 = vmul.f32 %v5169_v51, %v1348_v35  ;;  %v1357_v48 = vmul.f32 %v5175_v41, %v1349_v28  ;;  %v1358_v13 = vmul.f32 %v5181_v56, %v1347_v53  ;;  %v5212_v28 = vld [vmem:[%s5839_s3 + $0x238] sm:$0xff]  ;;  %v2674_v45 = vld [vmem:[%s5841_s2 + $0x30] sm:$0xff] }
 0x460   :  { %6016 = vst [vmem:[#allocation32_spill] sm:$0xff] %v5175_v41  ;;  %1892 = vmatpush.bf16.msrb.mxu3 %v1677_v54  ;;  %1920 = vmatpush.bf16.msrb.mxu1 %v1678_v38  ;;  %v1613_v36 = vmul.f32 %v5188_v49, %v1603_v44  ;;  %v1614_v1 = vmul.f32 %v5194_v59, %v1609_v22  ;;  %v5206_v22 = vld [vmem:[%s5839_s3 + $0x230] sm:$0xff] }
 0x461   :  { %v1366_v2 = vpack.c.bf16 %v1362_v19, %v1361_v40  ;;  %v1364_v24 = vpack.c.bf16 %v1358_v13, %v1357_v48  ;;  %6019 = vst [vmem:[#allocation35_spill] sm:$0xff] %v5194_v59  ;;  %v1658_v8 = vpack.c.b16 %v1654_v34, %v1650_v27 }
 0x462   :  { %v1620_v53 = vpack.c.bf16 %v1614_v1, %v1613_v36  ;;  %6020 = vst [vmem:[#allocation36_spill] sm:$0xff] %v5206_v22 }
 0x463   :  { %v1629_v20 = vunpack.c.l.b16 %v1364_v24  ;;  %v1633_v57 = vunpack.c.l.b16 %v1366_v2  ;;  %v1630_v54 = vunpack.c.h.b16 %v1364_v24  ;;  %v1634_v5 = vunpack.c.h.b16 %v1366_v2  ;;  %6021 = vst [vmem:[#allocation37_spill] sm:$0xff] %v5212_v28 }
 0x464   :  { %1893 = vmatpush.bf16.msrb.mxu3 %v1657_v18  ;;  %1921 = vmatpush.bf16.msrb.mxu1 %v1658_v8  ;;  %v1790_v19 = vunpack.c.h.b16 %v1620_v53 }
 0x465   :  { %v1602_v38 = vpop.permute.xlu0 %1601  ;;  %v1637_v21 = vpack.c.b16 %v1633_v57, %v1629_v20  ;;  %v1638_v35 = vpack.c.b16 %v1634_v5, %v1630_v54  ;;  %v1812_v24 = vpop.permute.xlu1 %1811 }
 0x466   :  { %v1604_v44 = vsel %vm370_vm3, %v4834_v47, %v1602_v38  ;;  %v1610_v32 = vsel %vm370_vm3, %v1602_v38, %v4622_v50  ;;  %v1789_v50 = vunpack.c.l.b16 %v1620_v53 }
 0x467   :  { %v1617_v27 = vmul.f32 %v5206_v22, %v1604_v44  ;;  %v1618_v40 = vmul.f32 %v5212_v28, %v1610_v32 }
 0x468   :  { %1894 = vmatpush.bf16.msrb.mxu3 %v1637_v21  ;;  %1922 = vmatpush.bf16.msrb.mxu1 %v1638_v35 }
 0x469   :  { %v1622_v47 = vpack.c.bf16 %v1618_v40, %v1617_v27 }
 0x46b   :  { %1895 = vmatmul.bf16.vlgmr.msrb.gmra.mxu3 %v5101_v17  ;;  %v1793_v48 = vunpack.c.l.b16 %v1622_v47  ;;  %v1794_v13 = vunpack.c.h.b16 %v1622_v47  ;;  %1923 = vmatmul.bf16.vlgmr.msrb.gmra.mxu1 %v5101_v17 }
 0x46d   :  { %v1797_v34 = vpack.c.b16 %v1793_v48, %v1789_v50  ;;  %v1798_v2 = vpack.c.b16 %v1794_v13, %v1790_v19 }
 0x46f   :  { %1908 = vmatpush.bf16.msrb.mxu2 %v1797_v34  ;;  %1936 = vmatpush.bf16.msrb.mxu0 %v1798_v2 }
 0x472   :  { %2670 = vmatmul.msk.bf16.vlgmr.msrb.gmra.mxu2 %vm603_vm6, %v4890_v9  ;;  %2671 = vmatmul.msk.bf16.vlgmr.msrb.gmra.mxu0 %vm603_vm6, %v4890_v9  ;;  %v1817_v9 = vpop.permute.xlu2 %1816 }
 0x4b9   :  { %v1882_v1 = vpop.f32.mrf.mxu1 }
 0x4be   :  { %v1854_v57 = vpop.f32.mrf.mxu3 }
 0x4c1   :  { %v1884_v35 = vpop.f32.mrf.mxu1 }
 0x4c6   :  { %v1856_v27 = vpop.f32.mrf.mxu3 }
 0x4d8   :  { %v1868_v18 = vpop.f32.mrf.mxu0 }
 0x4d9   :  { %v1869_v36 = vadd.f32 %v1868_v18, %v1812_v24 }
 0x4db   :  { %v1883_v8 = vadd.f32 %v1882_v1, %v1869_v36 }
 0x4dd   :  { %2019 = vrot.lane.b32.xlu0 %v1883_v8, %s2820_s9  ;;  %2055 = vrot.lane.b32.xlu1 %v1883_v8, %s2819_s8 }
 0x4de   :  { %v1840_v17 = vpop.f32.mrf.mxu2  ;;  %2167 = vrot.lane.b32.xlu2 %v1883_v8, %s2815_s21 }
 0x4df   :  { %v1841_v20 = vadd.f32 %v1840_v17, %v1812_v24 }
 0x4e0   :  { %v1870_v38 = vpop.f32.mrf.mxu0 }
 0x4e1   :  { %v1855_v54 = vadd.f32 %v1854_v57, %v1841_v20  ;;  %v1871_v21 = vadd.f32 %v1870_v38, %v1817_v9 }
 0x4e3   :  { %v5224_v5 = vpack.c.bf16 %v1883_v8, %v1855_v54  ;;  %v5229_v44 = vadd.f32 %v1884_v35, %v1871_v21 }
 0x4e5   :  { %2015 = vrot.lane.b32.xlu1 %v1855_v54, %s2820_s9  ;;  %2163 = vrot.lane.b32.xlu0 %v1855_v54, %s2815_s21 }
 0x4e6   :  { %2131 = vrot.lane.b32.xlu2 %v1883_v8, %s2816_s28  ;;  %v1842_v32 = vpop.f32.mrf.mxu2 }
 0x4e7   :  { %v1843_v53 = vadd.f32 %v1842_v32, %v1817_v9 }
 0x4e8   :  { %v1924_v47 = vpop.f32.mrf.mxu1 }
 0x4e9   :  { %v5235_v40 = vadd.f32 %v1856_v27, %v1843_v53  ;;  %v1925_v19 = vadd.f32 %v1924_v47, %v1812_v24 }
 0x4ed   :  { %2021 = vrot.lane.b32.xlu1 %v5229_v44, %s2820_s9  ;;  %2127 = vrot.lane.b32.xlu0 %v1855_v54, %s2816_s28 }
 0x4ee   :  { %2095 = vrot.lane.b32.xlu2 %v1883_v8, %s2817_s7  ;;  %v1896_v13 = vpop.f32.mrf.mxu3 }
 0x4ef   :  { %v1938_v50 = vpop.f32.mrf.mxu0  ;;  %v1897_v18 = vadd.f32 %v1896_v13, %v1812_v24 }
 0x4f0   :  { %v5249_v48 = vadd.f32 %v1938_v50, %v1925_v19  ;;  %v1926_v34 = vpop.f32.mrf.mxu1 }
 0x4f1   :  { %v1927_v1 = vadd.f32 %v1926_v34, %v1817_v9 }
 0x4f2   :  { %6022 = vst [vmem:[#allocation38_spill] sm:$0xff] %v5249_v48 }
 0x4f5   :  { %2165 = vrot.lane.b32.xlu1 %v5235_v40, %s2815_s21  ;;  %2091 = vrot.lane.b32.xlu0 %v1855_v54, %s2817_s7  ;;  %v1910_v2 = vpop.f32.mrf.mxu2 }
 0x4f6   :  { %1983 = vrot.lane.b32.xlu2 %v1883_v8, %s2821_s10  ;;  %v1898_v24 = vpop.f32.mrf.mxu3 }
 0x4f7   :  { %v1940_v36 = vpop.f32.mrf.mxu0  ;;  %v1899_v38 = vadd.f32 %v1898_v24, %v1817_v9 }
 0x4f8   :  { %v5281_v17 = vadd.f32 %v1940_v36, %v1927_v1 }
 0x4fa   :  { %6024 = vst [vmem:[#allocation40_spill] sm:$0xff] %v5281_v17 }
 0x4fd   :  { %2129 = vrot.lane.b32.xlu1 %v5235_v40, %s2816_s28  ;;  %1979 = vrot.lane.b32.xlu0 %v1855_v54, %s2821_s10 }
 0x4fe   :  { %2203 = vrot.lane.b32.xlu2 %v1883_v8, %s2818_s0 }
 0x505   :  { %2093 = vrot.lane.b32.xlu1 %v5235_v40, %s2817_s7  ;;  %2199 = vrot.lane.b32.xlu0 %v1855_v54, %s2818_s0 }
 0x506   :  { %1947 = vrot.lane.b32.xlu2 %v1883_v8, %s2822_s29  ;;  %v5279_v8 = vadd.f32 %v1910_v2, %v1897_v18 }
 0x508   :  { %6023 = vst [vmem:[#allocation39_spill] sm:$0xff] %v5279_v8 }
 0x50d   :  { %2103 = vrot.lane.b32.xlu1 %v5249_v48, %s2817_s7  ;;  %1943 = vrot.lane.b32.xlu0 %v1855_v54, %s2822_s29 }
 0x50e   :  { %2051 = vrot.lane.b32.xlu2 %v1855_v54, %s2819_s8  ;;  %v1912_v54 = vpop.f32.mrf.mxu2 }
 0x50f   :  { %v5299_v21 = vadd.f32 %v1912_v54, %v1899_v38 }
 0x511   :  { %6025 = vst [vmem:[#allocation41_spill] sm:$0xff] %v5299_v21 }
 0x515   :  { %1981 = vrot.lane.b32.xlu1 %v5235_v40, %s2821_s10  ;;  %2169 = vrot.lane.b32.xlu0 %v5229_v44, %s2815_s21 }
 0x516   :  { %2057 = vrot.lane.b32.xlu2 %v5229_v44, %s2819_s8 }
 0x51d   :  { %1991 = vrot.lane.b32.xlu1 %v5249_v48, %s2821_s10  ;;  %2133 = vrot.lane.b32.xlu0 %v5229_v44, %s2816_s28 }
 0x51e   :  { %2139 = vrot.lane.b32.xlu2 %v5249_v48, %s2816_s28 }
 0x525   :  { %2201 = vrot.lane.b32.xlu1 %v5235_v40, %s2818_s0  ;;  %2097 = vrot.lane.b32.xlu0 %v5229_v44, %s2817_s7 }
 0x526   :  { %2017 = vrot.lane.b32.xlu2 %v5235_v40, %s2820_s9 }
 0x52d   :  { %1945 = vrot.lane.b32.xlu1 %v5235_v40, %s2822_s29  ;;  %1985 = vrot.lane.b32.xlu0 %v5229_v44, %s2821_s10 }
 0x52e   :  { %2027 = vrot.lane.b32.xlu2 %v5249_v48, %s2820_s9 }
 0x535   :  { %2171 = vrot.lane.b32.xlu1 %v5279_v8, %s2815_s21  ;;  %2205 = vrot.lane.b32.xlu0 %v5229_v44, %s2818_s0 }
 0x536   :  { %2105 = vrot.lane.b32.xlu2 %v5281_v17, %s2817_s7 }
 0x538   :  { %v5289_v20 = vpop.permute.xlu2 %2167 }
 0x53d   :  { %2135 = vrot.lane.b32.xlu1 %v5279_v8, %s2816_s28  ;;  %1949 = vrot.lane.b32.xlu0 %v5229_v44, %s2822_s29 }
 0x53e   :  { %1993 = vrot.lane.b32.xlu2 %v5281_v17, %s2821_s10 }
 0x540   :  { %v5297_v57 = vpop.permute.xlu2 %2131 }
 0x545   :  { %2099 = vrot.lane.b32.xlu1 %v5279_v8, %s2817_s7  ;;  %2175 = vrot.lane.b32.xlu0 %v5249_v48, %s2815_s21 }
 0x546   :  { %2173 = vrot.lane.b32.xlu2 %v5299_v21, %s2815_s21 }
 0x548   :  { %v5307_v35 = vpop.permute.xlu2 %2095 }
 0x54d   :  { %2207 = vrot.lane.b32.xlu1 %v5279_v8, %s2818_s0  ;;  %2053 = vrot.lane.b32.xlu0 %v5235_v40, %s2819_s8 }
 0x54e   :  { %2137 = vrot.lane.b32.xlu2 %v5299_v21, %s2816_s28 }
 0x54f   :  { %v5315_v9 = vpop.permute.xlu0 %2019  ;;  %v5317_v32 = vpop.permute.xlu1 %2055 }
 0x550   :  { %6026 = vst [vmem:[#allocation42_spill] sm:$0xff] %v5315_v9  ;;  %v5319_v53 = vpop.permute.xlu2 %1983 }
 0x551   :  { %6027 = vst [vmem:[#allocation43_spill] sm:$0xff] %v5319_v53 }
 0x555   :  { %2177 = vrot.lane.b32.xlu1 %v5281_v17, %s2815_s21  ;;  %2063 = vrot.lane.b32.xlu0 %v5249_v48, %s2819_s8 }
 0x556   :  { %2101 = vrot.lane.b32.xlu2 %v5299_v21, %s2817_s7 }
 0x557   :  { %v2016_v27 = vpop.permute.xlu1 %2015  ;;  %v5327_v47 = vpop.permute.xlu0 %2163 }
 0x558   :  { %v5329_v50 = vpop.permute.xlu2 %2203  ;;  %v2035_v33 = vsel %vm136_vm5, %v2016_v27, %v5315_v9 }
 0x559   :  { %v2040_v23 = vmul.f32 %v6033_v26, %v2035_v33 }
 0x55d   :  { %2065 = vrot.lane.b32.xlu1 %v5281_v17, %s2819_s8  ;;  %2141 = vrot.lane.b32.xlu0 %v5281_v17, %s2816_s28 }
 0x55e   :  { %1957 = vrot.lane.b32.xlu2 %v5281_v17, %s2822_s29 }
 0x55f   :  { %v5337_v19 = vpop.permute.xlu1 %2021  ;;  %v5339_v13 = vpop.permute.xlu0 %2127 }
 0x560   :  { %6028 = vst [vmem:[#allocation44_spill] sm:$0xff] %v5337_v19  ;;  %v5341_v34 = vpop.permute.xlu2 %1947  ;;  %v6047_v19 = vld [vmem:[#allocation25_spill] sm:$0xff] }
 0x561   :  { %6029 = vst [vmem:[#allocation45_spill] sm:$0xff] %v5341_v34 }
 0x565   :  { %1955 = vrot.lane.b32.xlu1 %v5249_v48, %s2822_s29  ;;  %2029 = vrot.lane.b32.xlu0 %v5281_v17, %s2820_s9 }
 0x566   :  { %2209 = vrot.lane.b32.xlu2 %v5299_v21, %s2818_s0 }
 0x567   :  { %v5349_v2 = vpop.permute.xlu1 %2165  ;;  %v5351_v18 = vpop.permute.xlu0 %2091 }
 0x568   :  { %v5353_v36 = vpop.permute.xlu2 %2051 }
 0x56d   :  { %2061 = vrot.lane.b32.xlu1 %v5299_v21, %s2819_s8  ;;  %2059 = vrot.lane.b32.xlu0 %v5279_v8, %s2819_s8 }
 0x56e   :  { %2023 = vrot.lane.b32.xlu2 %v5279_v8, %s2820_s9 }
 0x56f   :  { %v5361_v1 = vpop.permute.xlu1 %2129  ;;  %v1980_v24 = vpop.permute.xlu0 %1979 }
 0x570   :  { %v5363_v54 = vpop.permute.xlu2 %2057  ;;  %v1999_v26 = vsel %vm90_vm7, %v1980_v24, %v5319_v53 }
 0x575   :  { %1987 = vrot.lane.b32.xlu1 %v5279_v8, %s2821_s10  ;;  %2025 = vrot.lane.b32.xlu0 %v5299_v21, %s2820_s9 }
 0x576   :  { %1989 = vrot.lane.b32.xlu2 %v5299_v21, %s2821_s10 }
 0x577   :  { %v5371_v38 = vpop.permute.xlu1 %2093  ;;  %v5373_v28 = vpop.permute.xlu0 %2199 }
 0x578   :  { %v5375_v22 = vpop.permute.xlu2 %2139 }
 0x579   :  { %v5381_v59 = vsel %vm278_vm1, %v5375_v22, %v5339_v13 }
 0x57d   :  { %1953 = vrot.lane.b32.xlu1 %v5299_v21, %s2822_s29  ;;  %1951 = vrot.lane.b32.xlu0 %v5279_v8, %s2822_s29  ;;  %v6040_v8 = vld [vmem:[#allocation11_spill] sm:$0xff]  ;;  %v6041_v21 = vld [vmem:[#allocation12_spill] sm:$0xff] }
 0x57e   :  { %2211 = vrot.lane.b32.xlu2 %v5249_v48, %s2818_s0 }
 0x57f   :  { %v5389_v49 = vpop.permute.xlu1 %2103  ;;  %v5391_v56 = vpop.permute.xlu0 %1943 }
 0x580   :  { %6030 = vst [vmem:[#allocation46_spill] sm:$0xff] %v5391_v56  ;;  %v5397_v41 = vsel %vm232_vm2, %v5389_v49, %v5351_v18  ;;  %v5399_v51 = vpop.permute.xlu2 %2017 }
 0x581   :  { %6031 = vst [vmem:[#allocation47_spill] sm:$0xff] %v5399_v51 }
 0x585   :  { %2423 = vperm.xlu1 %2709, %v2674_v45   ;;  %2213 = vrot.lane.b32.xlu0 %v5281_v17, %s2818_s0 }
 0x586   :  { %2428 = vperm.xlu2 %2710, %v2675_v11  }
 0x587   :  { %v1982_v10 = vpop.permute.xlu1 %1981  ;;  %v2170_v14 = vpop.permute.xlu0 %2169 }
 0x588   :  { %v5412_v4 = vpop.permute.xlu2 %2027 }
 0x589   :  { %6032 = vst [vmem:[#allocation48_spill] sm:$0xff] %v5412_v4  ;;  %v2037_v46 = vsel %vm136_vm5, %v5412_v4, %v2016_v27 }
 0x58a   :  { %v2039_v45 = vmul.f32 %v6034_v60, %v2037_v46  ;;  %v6037_v46 = vld [vmem:[#allocation9_spill] sm:$0xff] }
 0x58c   :  { %v5419_v0 = vpack.c.bf16 %v2040_v23, %v2039_v45  ;;  %v6038_v45 = vld [vmem:[#allocation10_spill] sm:$0xff] }
 0x58d   :  { %v2004_v4 = vmul.f32 %v6038_v45, %v1999_v26  ;;  %v2184_v26 = vsel %vm324_vm0, %v5349_v2, %v2170_v14 }
 0x58e   :  { %6035 = vst [vmem:[#allocation4_spill] sm:$0xff] %v5419_v0 }
 0x58f   :  { %v5421_v55 = vpop.permute.xlu1 %1991  ;;  %v2134_v11 = vpop.permute.xlu0 %2133 }
 0x590   :  { %6036 = vst [vmem:[#allocation17_spill] sm:$0xff] %v5421_v55  ;;  %v2106_v39 = vpop.permute.xlu2 %2105  ;;  %v2001_v60 = vsel %vm90_vm7, %v5421_v55, %v1980_v24 }
 0x591   :  { %v5426_v9 = vsel %vm232_vm2, %v2106_v39, %v5371_v38  ;;  %v2003_v33 = vmul.f32 %v6037_v46, %v2001_v60  ;;  %v6042_v46 = vld [vmem:[#allocation13_spill] sm:$0xff] }
 0x593   :  { %v2011_v56 = vpack.c.bf16 %v2004_v4, %v2003_v33 }
 0x595   :  { %v2259_v4 = vunpack.c.l.b16 %v2011_v56  ;;  %v2260_v53 = vunpack.c.h.b16 %v2011_v56 }
 0x597   :  { %v5428_v58 = vpop.permute.xlu1 %2201  ;;  %v5430_v34 = vpop.permute.xlu0 %2097 }
 0x598   :  { %v5432_v27 = vpop.permute.xlu2 %1993 }
 0x599   :  { %v2002_v23 = vsel %vm90_vm7, %v5432_v27, %v1982_v10 }
 0x59a   :  { %v2007_v17 = vmul.f32 %v6040_v8, %v2002_v23 }
 0x59f   :  { %v5445_v0 = vpop.permute.xlu1 %1945  ;;  %v5447_v63 = vpop.permute.xlu0 %1985 }
 0x5a0   :  { %6039 = vst [vmem:[#allocation9_spill] sm:$0xff] %v5445_v0  ;;  %v5449_v48 = vpop.permute.xlu2 %2173  ;;  %v2000_v55 = vsel %vm90_vm7, %v1982_v10, %v5447_v63  ;;  %v6043_v10 = vld [vmem:[#allocation14_spill] sm:$0xff] }
 0x5a1   :  { %v2008_v51 = vmul.f32 %v6041_v21, %v2000_v55  ;;  %v2182_v24 = vsel %vm324_vm0, %v2170_v14, %v5449_v48  ;;  %v2183_v55 = vsel %vm324_vm0, %v5327_v47, %v5289_v20  ;;  %v2191_v8 = vmul.f32 %v6043_v10, %v2184_v26 }
 0x5a2   :  { %v2192_v33 = vmul.f32 %v6042_v46, %v2182_v24  ;;  %v6046_v24 = vld [vmem:[#allocation24_spill] sm:$0xff] }
 0x5a3   :  { %v2013_v60 = vpack.c.bf16 %v2008_v51, %v2007_v17 }
 0x5a4   :  { %v2197_v46 = vpack.c.bf16 %v2192_v33, %v2191_v8 }
 0x5a5   :  { %v2263_v45 = vunpack.c.l.b16 %v2013_v60  ;;  %v2264_v0 = vunpack.c.h.b16 %v2013_v60  ;;  %v2187_v60 = vmul.f32 %v6046_v24, %v2183_v55 }
 0x5a7   :  { %v5468_v21 = vpop.permute.xlu1 %2171  ;;  %v5470_v51 = vpop.permute.xlu0 %2205  ;;  %v5472_v17 = vpack.c.b16 %v2263_v45, %v2259_v4  ;;  %v5474_v14 = vpack.c.b16 %v2264_v0, %v2260_v53  ;;  %v2148_v0 = vsel %vm278_vm1, %v5361_v1, %v2134_v11  ;;  %v2801_v4 = vld [vmem:[%s5839_s3 + $0x1a8] sm:$0xff]  ;;  %v2384_v45 = vunpack.c.h.b16 %v2197_v46 }
 0x5a8   :  { %v2181_v56 = vsel %vm324_vm0, %v5289_v20, %v5468_v21  ;;  %v5480_v23 = vpop.permute.xlu2 %2137  ;;  %v2147_v20 = vsel %vm278_vm1, %v5339_v13, %v5297_v57  ;;  %v2802_v13 = vld [vmem:[%s5839_s3 + $0x198] sm:$0xff] }
 0x5a9   :  { %6044 = vst [vmem:[#allocation10_spill] sm:$0xff] %v5472_v17  ;;  %v2188_v26 = vmul.f32 %v6047_v19, %v2181_v56  ;;  %v2146_v10 = vsel %vm278_vm1, %v2134_v11, %v5480_v23  ;;  %v2383_v19 = vunpack.c.l.b16 %v2197_v46  ;;  %v6048_v56 = vld [vmem:[#allocation18_spill] sm:$0xff]  ;;  %v2154_v62 = vmul.f32 %v2802_v13, %v5381_v59 }
 0x5aa   :  { %6045 = vst [vmem:[#allocation11_spill] sm:$0xff] %v5474_v14  ;;  %v2156_v33 = vmul.f32 %v2801_v4, %v2146_v10  ;;  %v2155_v24 = vmul.f32 %v6048_v56, %v2148_v0  ;;  %v2151_v14 = vmul.f32 %v4738_v61, %v2147_v20  ;;  %v2803_v20 = vld [vmem:[%s5839_s3 + $0x190] sm:$0xff] }
 0x5ab   :  { %v2195_v53 = vpack.c.bf16 %v2188_v26, %v2187_v60 }
 0x5ac   :  { %v2161_v10 = vpack.c.bf16 %v2156_v33, %v2155_v24 }
 0x5ad   :  { %v2379_v55 = vunpack.c.l.b16 %v2195_v53  ;;  %v2380_v8 = vunpack.c.h.b16 %v2195_v53 }
 0x5af   :  { %v2136_v11 = vpop.permute.xlu1 %2135  ;;  %v5499_v60 = vpop.permute.xlu0 %1949  ;;  %v2387_v26 = vpack.c.b16 %v2383_v19, %v2379_v55  ;;  %v2388_v17 = vpack.c.b16 %v2384_v45, %v2380_v8 }
 0x5b0   :  { %v2143_v46 = vsel %vm278_vm1, %v2136_v11, %v5375_v22  ;;  %v2145_v61 = vsel %vm278_vm1, %v5297_v57, %v2136_v11  ;;  %v2102_v0 = vpop.permute.xlu2 %2101  ;;  %v2804_v22 = vld [vmem:[%s5839_s3 + $0x178] sm:$0xff]  ;;  %v2363_v11 = vunpack.c.l.b16 %v2161_v10 }
 0x5b1   :  { %v2152_v53 = vmul.f32 %v4754_v30, %v2145_v61  ;;  %v2153_v4 = vmul.f32 %v2803_v20, %v2143_v46  ;;  %v2108_v59 = vsel %vm232_vm2, %v2102_v0, %v2106_v39  ;;  %v2110_v33 = vsel %vm232_vm2, %v5430_v34, %v2102_v0  ;;  %2443 = vmatpush.bf16.msra.mxu2 %v2387_v26  ;;  %v2805_v30 = vld [vmem:[%s5839_s3 + $0x170] sm:$0xff] }
 0x5b2   :  { %v2122_v57 = vmul.f32 %v2804_v22, %v5426_v9  ;;  %v2121_v19 = vmul.f32 %v2805_v30, %v2108_v59  ;;  %2471 = vmatpush.bf16.msra.mxu0 %v2388_v17  ;;  %v2112_v39 = vsel %vm232_vm2, %v5371_v38, %v5430_v34  ;;  %v2120_v8 = vmul.f32 %v4776_v42, %v2110_v33 }
 0x5b3   :  { %v2159_v45 = vpack.c.bf16 %v2152_v53, %v2151_v14  ;;  %v5531_v55 = vpack.c.bf16 %v2154_v62, %v2153_v4  ;;  %v2364_v26 = vunpack.c.h.b16 %v2161_v10  ;;  %v2111_v17 = vsel %vm232_vm2, %v5351_v18, %v5307_v35 }
 0x5b4   :  { %v2126_v56 = vpack.c.bf16 %v2122_v57, %v2121_v19  ;;  %v2119_v13 = vmul.f32 %v4786_v15, %v2112_v39  ;;  %v2115_v0 = vmul.f32 %v4800_v37, %v2111_v17  ;;  %v2806_v15 = vld [vmem:[%s5839_s3 + $0x158] sm:$0xff]  ;;  %v2219_v39 = vsel %vm370_vm3, %v5373_v28, %v5329_v50 }
 0x5b5   :  { %v2359_v24 = vunpack.c.l.b16 %v2159_v45  ;;  %v2360_v9 = vunpack.c.h.b16 %v2159_v45  ;;  %v2118_v18 = vmul.f32 %v2806_v15, %v5397_v41 }
 0x5b6   :  { %v2125_v62 = vpack.c.bf16 %v2120_v8, %v2119_v13  ;;  %v2345_v22 = vunpack.c.l.b16 %v2126_v56  ;;  %v2346_v57 = vunpack.c.h.b16 %v2126_v56 }
 0x5b7   :  { %v2100_v46 = vpop.permute.xlu1 %2099  ;;  %v2176_v61 = vpop.permute.xlu0 %2175  ;;  %v2367_v34 = vpack.c.b16 %v2363_v11, %v2359_v24  ;;  %v2368_v38 = vpack.c.b16 %v2364_v26, %v2360_v9 }
 0x5b8   :  { %v2107_v42 = vsel %vm232_vm2, %v2100_v46, %v5389_v49  ;;  %v2109_v14 = vsel %vm232_vm2, %v5307_v35, %v2100_v46  ;;  %v5545_v10 = vpop.permute.xlu2 %1957  ;;  %v2807_v49 = vld [vmem:[%s5839_s3 + $0x150] sm:$0xff]  ;;  %v2089_v35 = vpack.c.bf16 %v5229_v44, %v5235_v40  ;;  %v2343_v59 = vunpack.c.l.b16 %v2125_v62 }
 0x5b9   :  { %v2116_v53 = vmul.f32 %v4808_v43, %v2109_v14  ;;  %v2117_v20 = vmul.f32 %v2807_v49, %v2107_v42  ;;  %2444 = vmatpush.bf16.msra.mxu2 %v2367_v34  ;;  %2472 = vmatpush.bf16.msra.mxu0 %v2368_v38  ;;  %v2344_v33 = vunpack.c.h.b16 %v2125_v62  ;;  %v2220_v44 = vsel %vm370_vm3, %v5428_v58, %v5470_v51  ;;  %v2808_v34 = vld [vmem:[%s5839_s3 + $0x200] sm:$0xff]  ;;  %v2809_v62 = vld [vmem:[%s5839_s3 + $0x208] sm:$0xff] }
 0x5ba   :  { %v2323_v40 = vunpack.c.l.b16 %v2089_v35  ;;  %v2324_v45 = vunpack.c.h.b16 %v2089_v35  ;;  %v2319_v46 = vunpack.c.l.b16 %v5224_v5  ;;  %v2223_v38 = vmul.f32 %v2808_v34, %v2219_v39 }
 0x5bb   :  { %v2123_v4 = vpack.c.bf16 %v2116_v53, %v2115_v0  ;;  %v2124_v37 = vpack.c.bf16 %v2118_v18, %v2117_v20  ;;  %v2810_v0 = vld [vmem:[%s5839_s3 + $0x220] sm:$0xff]  ;;  %v2179_v18 = vsel %vm324_vm0, %v5468_v21, %v2176_v61  ;;  %v2185_v53 = vsel %vm324_vm0, %v2176_v61, %v5327_v47 }
 0x5bc   :  { %v2227_v15 = vmul.f32 %v2810_v0, %v2220_v44  ;;  %v2813_v44 = vld [vmem:[%s5839_s3 + $0x1f8] sm:$0xff] }
 0x5bd   :  { %v2339_v30 = vunpack.c.l.b16 %v2123_v4  ;;  %v2340_v41 = vunpack.c.h.b16 %v2123_v4  ;;  %v2341_v19 = vunpack.c.l.b16 %v2124_v37  ;;  %v2342_v43 = vunpack.c.h.b16 %v2124_v37 }
 0x5be   :  { %v2189_v37 = vmul.f32 %v4855_v25, %v2179_v18 }
 0x5bf   :  { %v5566_v8 = vpop.permute.xlu1 %2207  ;;  %v5568_v24 = vpop.permute.xlu0 %2053  ;;  %v2347_v56 = vpack.c.b16 %v2343_v59, %v2339_v30  ;;  %v2348_v11 = vpack.c.b16 %v2344_v33, %v2340_v41  ;;  %v5570_v9 = vpack.c.b16 %v2345_v22, %v2341_v19  ;;  %v5572_v26 = vpack.c.b16 %v2346_v57, %v2342_v43  ;;  %v2812_v43 = vld [vmem:[%s5839_s3 + $0x1f0] sm:$0xff] }
 0x5c0   :  { %v2217_v17 = vsel %vm370_vm3, %v5329_v50, %v5566_v8  ;;  %v5578_v13 = vpop.permute.xlu2 %2209  ;;  %v2320_v50 = vunpack.c.h.b16 %v5224_v5  ;;  %v2327_v5 = vpack.c.b16 %v2323_v40, %v2319_v46  ;;  %v2190_v59 = vmul.f32 %v4861_v3, %v2185_v53 }
 0x5c1   :  { %v2224_v42 = vmul.f32 %v2809_v62, %v2217_v17  ;;  %v2218_v14 = vsel %vm370_vm3, %v5470_v51, %v5578_v13  ;;  %2445 = vmatpush.bf16.msra.mxu2 %v2347_v56  ;;  %2473 = vmatpush.bf16.msra.mxu0 %v2348_v11  ;;  %v2811_v51 = vld [vmem:[%s5839_s3 + $0x228] sm:$0xff]  ;;  %v2680_v56 = vld [vmem:[%s5840_s1 + $0x38] sm:$0xf0]  ;;  %v2071_v11 = vsel %vm182_vm4, %v5353_v36, %v5317_v32 }
 0x5c2   :  { %v2228_v49 = vmul.f32 %v2811_v51, %v2218_v14  ;;  %v2328_v35 = vpack.c.b16 %v2324_v45, %v2320_v50  ;;  %v2196_v19 = vpack.c.bf16 %v2190_v59, %v2189_v37  ;;  %v2698_v45 = vld [vmem:[%s5840_s1 + $0x34] sm:$0xf]  ;;  %v2072_v34 = vsel %vm182_vm4, %v5568_v24, %v5363_v54  ;;  %v6049_v59 = vld [vmem:[#allocation19_spill] sm:$0xff] }
 0x5c3   :  { %v2231_v20 = vpack.c.bf16 %v2224_v42, %v2223_v38  ;;  %v5636_v46 = vor.u32 %v2698_v45, %v2680_v56  ;;  %v2080_v0 = vmul.f32 %v4913_v7, %v2072_v34  ;;  %v6055_v34 = vld [vmem:[#allocation39_spill] sm:$0xff] }
 0x5c4   :  { %v2233_v4 = vpack.c.bf16 %v2228_v49, %v2227_v15  ;;  %v2381_v62 = vunpack.c.l.b16 %v2196_v19  ;;  %v2382_v42 = vunpack.c.h.b16 %v2196_v19 }
 0x5c5   :  { %v2399_v33 = vunpack.c.l.b16 %v2231_v20  ;;  %2446 = vmatpush.bf16.msra.mxu2 %v2327_v5  ;;  %2474 = vmatpush.bf16.msra.mxu0 %v2328_v35  ;;  %v2400_v21 = vunpack.c.h.b16 %v2231_v20  ;;  %v2814_v5 = vld [vmem:[%s5839_s3 + $0xe0] sm:$0xff] }
 0x5c6   :  { %v2403_v22 = vunpack.c.l.b16 %v2233_v4  ;;  %v2404_v57 = vunpack.c.h.b16 %v2233_v4 }
 0x5c7   :  { %v2178_v47 = vpop.permute.xlu1 %2177  ;;  %v5606_v61 = vpop.permute.xlu0 %2063 }
 0x5c8   :  { %v2180_v30 = vsel %vm324_vm0, %v5449_v48, %v2178_v47  ;;  %v2186_v41 = vsel %vm324_vm0, %v2178_v47, %v5349_v2  ;;  %v5614_v25 = vpop.permute.xlu2 %2023  ;;  %v2407_v3 = vpack.c.b16 %v2403_v22, %v2399_v33  ;;  %v2073_v48 = vsel %vm182_vm4, %v5606_v61, %v5353_v36  ;;  %v6050_v22 = vld [vmem:[#allocation44_spill] sm:$0xff] }
 0x5c9   :  { %v2193_v39 = vmul.f32 %v2812_v43, %v2180_v30  ;;  %v2194_v40 = vmul.f32 %v2813_v44, %v2186_v41  ;;  %v2408_v2 = vpack.c.b16 %v2404_v57, %v2400_v21  ;;  %v2075_v38 = vmul.f32 %v4899_v29, %v2073_v48  ;;  %v6051_v57 = vld [vmem:[#allocation47_spill] sm:$0xff]  ;;  %v6053_v41 = vld [vmem:[#allocation40_spill] sm:$0xff]  ;;  %v6054_v48 = vld [vmem:[#allocation9_spill] sm:$0xff] }
 0x5ca   :  { %2464 = vmatpush.bf16.msra.mxu3 %v2407_v3  ;;  %v2076_v36 = vmul.f32 %v4907_v6, %v2071_v11  ;;  %v2362_v44 = vunpack.c.h.b16 %v5531_v55 }
 0x5cb   :  { %v2198_v17 = vpack.c.bf16 %v2194_v40, %v2193_v39  ;;  %2492 = vmatpush.bf16.msra.mxu1 %v2408_v2  ;;  %v1966_v2 = vsel %vm45_vm8, %v5545_v10, %v6054_v48 }
 0x5cc   :  { %v2083_v29 = vpack.c.bf16 %v2076_v36, %v2075_v38  ;;  %v6056_v38 = vld [vmem:[#allocation38_spill] sm:$0xff] }
 0x5cd   :  { %v2385_v14 = vunpack.c.l.b16 %v2198_v17  ;;  %v2386_v50 = vunpack.c.h.b16 %v2198_v17  ;;  %2684 = vmatmul.msk.bf16.vlgmr.msra.gmra.mxu3 %vm603_vm6, %v5636_v46 }
 0x5ce   :  { %2685 = vmatmul.msk.bf16.vlgmr.msra.gmra.mxu1 %vm603_vm6, %v5636_v46  ;;  %v2299_v3 = vunpack.c.l.b16 %v2083_v29 }
 0x5cf   :  { %v5647_v15 = vpop.permute.xlu1 %2065  ;;  %v2142_v18 = vpop.permute.xlu0 %2141  ;;  %v2389_v53 = vpack.c.b16 %v2385_v14, %v2381_v62  ;;  %v2390_v51 = vpack.c.b16 %v2386_v50, %v2382_v42  ;;  %v2088_v62 = vpack.c.bf16 %v6056_v38, %v6055_v34  ;;  %v6057_v42 = vld [vmem:[#allocation46_spill] sm:$0xff] }
 0x5d0   :  { %v2074_v49 = vsel %vm182_vm4, %v5647_v15, %v5568_v24  ;;  %v1990_v20 = vpop.permute.xlu2 %1989  ;;  %v2144_v6 = vsel %vm278_vm1, %v5480_v23, %v2142_v18  ;;  %v2150_v7 = vsel %vm278_vm1, %v2142_v18, %v5361_v1 }
 0x5d1   :  { %v2079_v35 = vmul.f32 %v2814_v5, %v2074_v49  ;;  %v1996_v4 = vsel %vm90_vm7, %v1990_v20, %v5432_v27  ;;  %v1998_v24 = vsel %vm90_vm7, %v5447_v63, %v1990_v20  ;;  %v2157_v37 = vmul.f32 %v4940_v52, %v2144_v6  ;;  %2499 = vmatpush.bf16.msrb.mxu3 %v2389_v53  ;;  %v6052_v63 = vld [vmem:[#allocation41_spill] sm:$0xff]  ;;  %v6060_v49 = vld [vmem:[#allocation20_spill] sm:$0xff]  ;;  %v6061_v6 = vld [vmem:[#allocation22_spill] sm:$0xff] }
 0x5d2   :  { %v2009_v23 = vmul.f32 %v4946_v31, %v1998_v24  ;;  %v2010_v1 = vmul.f32 %v4952_v16, %v1996_v4  ;;  %v2158_v33 = vmul.f32 %v6049_v59, %v2150_v7  ;;  %2527 = vmatpush.bf16.msrb.mxu1 %v2390_v51  ;;  %v2036_v27 = vsel %vm136_vm5, %v6051_v57, %v6050_v22  ;;  %v6059_v53 = vld [vmem:[#allocation45_spill] sm:$0xff]  ;;  %v6062_v4 = vld [vmem:[#allocation23_spill] sm:$0xff]  ;;  %v6064_v59 = vld [vmem:[#allocation26_spill] sm:$0xff] }
 0x5d3   :  { %v2085_v21 = vpack.c.bf16 %v2080_v0, %v2079_v35  ;;  %v2090_v52 = vpack.c.bf16 %v6053_v41, %v6052_v63  ;;  %v2300_v31 = vunpack.c.h.b16 %v2083_v29  ;;  %v2361_v16 = vunpack.c.l.b16 %v5531_v55  ;;  %v6058_v0 = vld [vmem:[#allocation21_spill] sm:$0xff] }
 0x5d4   :  { %v5678_v47 = vpack.c.bf16 %v2010_v1, %v2009_v23  ;;  %v2162_v30 = vpack.c.bf16 %v2158_v33, %v2157_v37  ;;  %v2044_v18 = vmul.f32 %v6058_v0, %v2036_v27  ;;  %v1963_v51 = vsel %vm45_vm8, %v6057_v42, %v6059_v53  ;;  %v6063_v23 = vld [vmem:[#allocation7_spill] sm:$0xff]  ;;  %v6065_v27 = vld [vmem:[#allocation4_spill] sm:$0xff] }
 0x5d5   :  { %v2303_v19 = vunpack.c.l.b16 %v2085_v21  ;;  %v2304_v43 = vunpack.c.h.b16 %v2085_v21  ;;  %v1964_v29 = vsel %vm45_vm8, %v6054_v48, %v5499_v60  ;;  %v1971_v7 = vmul.f32 %v6061_v6, %v1966_v2  ;;  %v6072_v0 = vld [vmem:[#allocation28_spill] sm:$0xff]  ;;  %v2699_v6 = vld [vmem:[%s5840_s1 + $0x34] sm:$0xf0] }
 0x5d6   :  { %v2365_v39 = vunpack.c.l.b16 %v2162_v30  ;;  %v2366_v40 = vunpack.c.h.b16 %v2162_v30  ;;  %v2325_v5 = vunpack.c.l.b16 %v2090_v52  ;;  %v2326_v35 = vunpack.c.h.b16 %v2090_v52 }
 0x5d7   :  { %v5688_v45 = vpop.permute.xlu1 %1955  ;;  %v5690_v56 = vpop.permute.xlu0 %2029  ;;  %v2307_v11 = vpack.c.b16 %v2303_v19, %v2299_v3  ;;  %v2308_v17 = vpack.c.b16 %v2304_v43, %v2300_v31  ;;  %v1968_v1 = vmul.f32 %v6063_v23, %v1963_v51  ;;  %v1972_v33 = vmul.f32 %v6064_v59, %v1964_v29  ;;  %v6066_v31 = vld [vmem:[#allocation48_spill] sm:$0xff]  ;;  %v6075_v59 = vld [vmem:[#allocation11_spill] sm:$0xff] }
 0x5d8   :  { %v1965_v55 = vsel %vm45_vm8, %v5688_v45, %v6057_v42  ;;  %v2038_v14 = vsel %vm136_vm5, %v5690_v56, %v6051_v57  ;;  %v2369_v50 = vpack.c.b16 %v2365_v39, %v2361_v16  ;;  %v2370_v36 = vpack.c.b16 %v2366_v40, %v2362_v44  ;;  %v6067_v39 = vld [vmem:[#allocation42_spill] sm:$0xff]  ;;  %v6069_v42 = vld [vmem:[#allocation3_spill] sm:$0xff] }
 0x5d9   :  { %v2043_v20 = vmul.f32 %v6060_v49, %v2038_v14  ;;  %2447 = vmatpush.bf16.msra.mxu2 %v2307_v11  ;;  %2475 = vmatpush.bf16.msra.mxu0 %v2308_v17  ;;  %v1967_v24 = vmul.f32 %v6062_v4, %v1965_v55  ;;  %v2321_v21 = vunpack.c.l.b16 %v2088_v62  ;;  %v2322_v57 = vunpack.c.h.b16 %v2088_v62  ;;  %v6070_v14 = vld [vmem:[#allocation2_spill] sm:$0xff] }
 0x5da   :  { %2500 = vmatpush.bf16.msrb.mxu3 %v2369_v50  ;;  %2528 = vmatpush.bf16.msrb.mxu1 %v2370_v36  ;;  %v2279_v30 = vunpack.c.l.b16 %v6065_v27  ;;  %v2280_v41 = vunpack.c.h.b16 %v6065_v27  ;;  %v1977_v19 = vpack.c.bf16 %v1972_v33, %v1971_v7  ;;  %v2031_v52 = vsel %vm136_vm5, %v5614_v25, %v6066_v31  ;;  %v6071_v36 = vld [vmem:[#allocation27_spill] sm:$0xff] }
 0x5db   :  { %v2049_v37 = vpack.c.bf16 %v2044_v18, %v2043_v20  ;;  %v2329_v43 = vpack.c.b16 %v2325_v5, %v2321_v21  ;;  %v2330_v16 = vpack.c.b16 %v2326_v35, %v2322_v57  ;;  %v2033_v44 = vsel %vm136_vm5, %v6067_v39, %v5614_v25  ;;  %v6068_v25 = vld [vmem:[#allocation5_spill] sm:$0xff]  ;;  %v2678_v20 = vld [vmem:[%s5840_s1 + $0x30] sm:$0xf]  ;;  %v6074_v35 = vld [vmem:[#allocation10_spill] sm:$0xff] }
 0x5dc   :  { %v1975_v40 = vpack.c.bf16 %v1968_v1, %v1967_v24  ;;  %v2041_v18 = vmul.f32 %v6072_v0, %v2033_v44  ;;  %v2243_v7 = vunpack.c.l.b16 %v1977_v19  ;;  %v2244_v5 = vunpack.c.h.b16 %v1977_v19  ;;  %v6077_v31 = vld [vmem:[#allocation43_spill] sm:$0xff] }
 0x5dd   :  { %v2283_v63 = vunpack.c.l.b16 %v2049_v37  ;;  %v2284_v3 = vunpack.c.h.b16 %v2049_v37  ;;  %v5754_v33 = vor.u32 %v2699_v6, %v2678_v20  ;;  %v6078_v39 = vld [vmem:[#allocation15_spill] sm:$0xff]  ;;  %v6084_v6 = vld [vmem:[#allocation32_spill] sm:$0xff] }
 0x5de   :  { %2501 = vmatpush.bf16.msrb.mxu3 %v5570_v9  ;;  %2529 = vmatpush.bf16.msrb.mxu1 %v5572_v26  ;;  %v2239_v49 = vunpack.c.l.b16 %v1975_v40 }
 0x5df   :  { %v2062_v48 = vpop.permute.xlu1 %2061  ;;  %v2060_v2 = vpop.permute.xlu0 %2059  ;;  %v2287_v11 = vpack.c.b16 %v2283_v63, %v2279_v30  ;;  %v2288_v17 = vpack.c.b16 %v2284_v3, %v2280_v41  ;;  %v6076_v3 = vld [vmem:[#allocation17_spill] sm:$0xff] }
 0x5e0   :  { %v2068_v34 = vsel %vm182_vm4, %v2062_v48, %v5647_v15  ;;  %v2070_v9 = vsel %vm182_vm4, %v5363_v54, %v2062_v48  ;;  %v2067_v38 = vsel %vm182_vm4, %v2060_v2, %v5606_v61  ;;  %v2069_v26 = vsel %vm182_vm4, %v5317_v32, %v2060_v2  ;;  %v6073_v54 = vld [vmem:[#allocation29_spill] sm:$0xff]  ;;  %v6080_v2 = vld [vmem:[#allocation6_spill] sm:$0xff] }
 0x5e1   :  { %v2081_v62 = vmul.f32 %v6068_v25, %v2070_v9  ;;  %v2082_v55 = vmul.f32 %v6069_v42, %v2068_v34  ;;  %v2077_v50 = vmul.f32 %v6070_v14, %v2069_v26  ;;  %v2078_v15 = vmul.f32 %v6071_v36, %v2067_v38  ;;  %2448 = vmatpush.bf16.msra.mxu2 %v2287_v11  ;;  %v2212_v9 = vpop.permute.xlu2 %2211 }
 0x5e2   :  { %v2042_v51 = vmul.f32 %v6073_v54, %v2031_v52  ;;  %2476 = vmatpush.bf16.msra.mxu0 %v2288_v17  ;;  %2502 = vmatpush.bf16.msrb.mxu3 %v2329_v43  ;;  %v2240_v32 = vunpack.c.h.b16 %v1975_v40  ;;  %v2247_v27 = vpack.c.b16 %v2243_v7, %v2239_v49  ;;  %v6079_v40 = vld [vmem:[#allocation16_spill] sm:$0xff]  ;;  %v2215_v42 = vsel %vm370_vm3, %v5566_v8, %v2212_v9 }
 0x5e3   :  { %v2086_v61 = vpack.c.bf16 %v2082_v55, %v2081_v62  ;;  %v2084_v29 = vpack.c.bf16 %v2078_v15, %v2077_v50  ;;  %2530 = vmatpush.bf16.msrb.mxu1 %v2330_v16  ;;  %v6081_v17 = vld [vmem:[#allocation8_spill] sm:$0xff]  ;;  %v2221_v55 = vsel %vm370_vm3, %v2212_v9, %v5373_v28  ;;  %v2265_v14 = vunpack.c.l.b16 %v5678_v47 }
 0x5e4   :  { %v2048_v1 = vpack.c.bf16 %v2042_v51, %v2041_v18  ;;  %v2248_v30 = vpack.c.b16 %v2244_v5, %v2240_v32  ;;  %v6083_v32 = vld [vmem:[#allocation31_spill] sm:$0xff]  ;;  %v6085_v5 = vld [vmem:[#allocation33_spill] sm:$0xff] }
 0x5e5   :  { %2449 = vmatpush.bf16.msra.mxu2 %v6074_v35  ;;  %v2301_v4 = vunpack.c.l.b16 %v2084_v29  ;;  %v2305_v24 = vunpack.c.l.b16 %v2086_v61  ;;  %v2302_v37 = vunpack.c.h.b16 %v2084_v29  ;;  %v2306_v23 = vunpack.c.h.b16 %v2086_v61  ;;  %v6082_v29 = vld [vmem:[#allocation30_spill] sm:$0xff] }
 0x5e6   :  { %2477 = vmatpush.bf16.msra.mxu0 %v6075_v59  ;;  %v2282_v25 = vunpack.c.h.b16 %v2048_v1 }
 0x5e7   :  { %v1988_v21 = vpop.permute.xlu1 %1987  ;;  %v2026_v57 = vpop.permute.xlu0 %2025  ;;  %v2309_v63 = vpack.c.b16 %v2305_v24, %v2301_v4  ;;  %v2310_v41 = vpack.c.b16 %v2306_v23, %v2302_v37  ;;  %v6087_v23 = vld [vmem:[#allocation35_spill] sm:$0xff] }
 0x5e8   :  { %v1995_v19 = vsel %vm90_vm7, %v1988_v21, %v6076_v3  ;;  %v1997_v52 = vsel %vm90_vm7, %v6077_v31, %v1988_v21  ;;  %v2032_v43 = vsel %vm136_vm5, %v2026_v57, %v5690_v56  ;;  %v2034_v16 = vsel %vm136_vm5, %v6050_v22, %v2026_v57  ;;  %v6088_v31 = vld [vmem:[#allocation36_spill] sm:$0xff] }
 0x5e9   :  { %v2005_v44 = vmul.f32 %v6078_v39, %v1997_v52  ;;  %v2006_v48 = vmul.f32 %v6079_v40, %v1995_v19  ;;  %v2045_v11 = vmul.f32 %v6080_v2, %v2034_v16  ;;  %v2046_v34 = vmul.f32 %v6081_v17, %v2032_v43  ;;  %2450 = vmatpush.bf16.msra.mxu2 %v2247_v27  ;;  %v6089_v43 = vld [vmem:[#allocation37_spill] sm:$0xff] }
 0x5ea   :  { %2478 = vmatpush.bf16.msra.mxu0 %v2248_v30  ;;  %2503 = vmatpush.bf16.msrb.mxu3 %v2309_v63  ;;  %v2281_v22 = vunpack.c.l.b16 %v2048_v1  ;;  %v2226_v1 = vmul.f32 %v6087_v23, %v2221_v55 }
 0x5eb   :  { %v2012_v38 = vpack.c.bf16 %v2006_v48, %v2005_v44  ;;  %v2050_v26 = vpack.c.bf16 %v2046_v34, %v2045_v11  ;;  %2531 = vmatpush.bf16.msrb.mxu1 %v2310_v41 }
 0x5ec   :  { %2451 = vmatmul.bf16.vlgmr.msra.gmra.mxu2 %v5754_v33 }
 0x5ed   :  { %2479 = vmatmul.bf16.vlgmr.msra.gmra.mxu0 %v5754_v33  ;;  %v2285_v56 = vunpack.c.l.b16 %v2050_v26  ;;  %v2286_v62 = vunpack.c.h.b16 %v2050_v26  ;;  %v2261_v18 = vunpack.c.l.b16 %v2012_v38  ;;  %v2262_v54 = vunpack.c.h.b16 %v2012_v38 }
 0x5ef   :  { %v1954_v50 = vpop.permute.xlu1 %1953  ;;  %v1952_v36 = vpop.permute.xlu0 %1951  ;;  %v2289_v15 = vpack.c.b16 %v2285_v56, %v2281_v22  ;;  %v2290_v0 = vpack.c.b16 %v2286_v62, %v2282_v25  ;;  %v2269_v24 = vpack.c.b16 %v2265_v14, %v2261_v18 }
 0x5f0   :  { %v1960_v51 = vsel %vm45_vm8, %v1954_v50, %v5545_v10  ;;  %v1962_v8 = vsel %vm45_vm8, %v5499_v60, %v1954_v50  ;;  %v1959_v28 = vsel %vm45_vm8, %v1952_v36, %v5688_v45  ;;  %v1961_v61 = vsel %vm45_vm8, %v6059_v53, %v1952_v36  ;;  %v6086_v45 = vld [vmem:[#allocation34_spill] sm:$0xff]  ;;  %v2429_v56 = vpop.permute.xlu2 %2428 }
 0x5f1   :  { %v1973_v49 = vmul.f32 %v6082_v29, %v1962_v8  ;;  %v1974_v20 = vmul.f32 %v6083_v32, %v1960_v51  ;;  %v1969_v7 = vmul.f32 %v6084_v6, %v1961_v61  ;;  %v1970_v10 = vmul.f32 %v6085_v5, %v1959_v28  ;;  %2504 = vmatpush.bf16.msrb.mxu3 %v2289_v15 }
 0x5f2   :  { %2532 = vmatpush.bf16.msrb.mxu1 %v2290_v0  ;;  %v2266_v60 = vunpack.c.h.b16 %v5678_v47  ;;  %v2225_v37 = vmul.f32 %v6086_v45, %v2215_v42 }
 0x5f3   :  { %v1978_v35 = vpack.c.bf16 %v1974_v20, %v1973_v49  ;;  %v1976_v4 = vpack.c.bf16 %v1970_v10, %v1969_v7 }
 0x5f4   :  { %v2270_v53 = vpack.c.b16 %v2266_v60, %v2262_v54  ;;  %v2232_v19 = vpack.c.bf16 %v2226_v1, %v2225_v37 }
 0x5f5   :  { %2505 = vmatpush.bf16.msrb.mxu3 %v2269_v24  ;;  %v2241_v59 = vunpack.c.l.b16 %v1976_v4  ;;  %v2245_v21 = vunpack.c.l.b16 %v1978_v35  ;;  %v2242_v57 = vunpack.c.h.b16 %v1976_v4  ;;  %v2246_v27 = vunpack.c.h.b16 %v1978_v35 }
 0x5f6   :  { %2533 = vmatpush.bf16.msrb.mxu1 %v2270_v53  ;;  %v2401_v44 = vunpack.c.l.b16 %v2232_v19  ;;  %v2402_v40 = vunpack.c.h.b16 %v2232_v19 }
 0x5f7   :  { %v2214_v30 = vpop.permute.xlu0 %2213  ;;  %v2249_v63 = vpack.c.b16 %v2245_v21, %v2241_v59  ;;  %v2250_v41 = vpack.c.b16 %v2246_v27, %v2242_v57 }
 0x5f8   :  { %v2216_v47 = vsel %vm370_vm3, %v5578_v13, %v2214_v30  ;;  %v2222_v3 = vsel %vm370_vm3, %v2214_v30, %v5428_v58  ;;  %v2424_v58 = vpop.permute.xlu1 %2423 }
 0x5f9   :  { %v2229_v52 = vmul.f32 %v6088_v31, %v2216_v47  ;;  %v2230_v16 = vmul.f32 %v6089_v43, %v2222_v3  ;;  %2506 = vmatpush.bf16.msrb.mxu3 %v2249_v63 }
 0x5fa   :  { %2534 = vmatpush.bf16.msrb.mxu1 %v2250_v41 }
 0x5fb   :  { %v2234_v39 = vpack.c.bf16 %v2230_v16, %v2229_v52 }
 0x5fc   :  { %2507 = vmatmul.bf16.vlgmr.msrb.gmra.mxu3 %v5754_v33 }
 0x5fd   :  { %v2405_v48 = vunpack.c.l.b16 %v2234_v39  ;;  %v2406_v2 = vunpack.c.h.b16 %v2234_v39  ;;  %2535 = vmatmul.bf16.vlgmr.msrb.gmra.mxu1 %v5754_v33 }
 0x5ff   :  { %v2409_v13 = vpack.c.b16 %v2405_v48, %v2401_v44  ;;  %v2410_v11 = vpack.c.b16 %v2406_v2, %v2402_v40 }
 0x601   :  { %2520 = vmatpush.bf16.msrb.mxu2 %v2409_v13  ;;  %2548 = vmatpush.bf16.msrb.mxu0 %v2410_v11 }
 0x604   :  { %2686 = vmatmul.msk.bf16.vlgmr.msrb.gmra.mxu2 %vm603_vm6, %v5636_v46  ;;  %2687 = vmatmul.msk.bf16.vlgmr.msrb.gmra.mxu0 %vm603_vm6, %v5636_v46 }
 0x64b   :  { %v2494_v12 = vpop.f32.mrf.mxu1 }
 0x650   :  { %v2466_v38 = vpop.f32.mrf.mxu3 }
 0x653   :  { %v2496_v22 = vpop.f32.mrf.mxu1 }
 0x658   :  { %v2468_v50 = vpop.f32.mrf.mxu3 }
 0x66a   :  { %v2480_v17 = vpop.f32.mrf.mxu0 }
 0x66b   :  { %v2481_v34 = vadd.f32 %v2480_v17, %v2424_v58 }
 0x66d   :  { %v2495_v9 = vadd.f32 %v2494_v12, %v2481_v34 }
 0x66f   :  { %2556 = vst [vmem:[%s5842_s4 + $0x8] sm:$0xff] %v2495_v9  ;;  %v2452_v33 = vpop.f32.mrf.mxu2 }
 0x670   :  { %v2453_v26 = vadd.f32 %v2452_v33, %v2424_v58 }
 0x672   :  { %v2467_v25 = vadd.f32 %v2466_v38, %v2453_v26  ;;  %v2482_v62 = vpop.f32.mrf.mxu0 }
 0x673   :  { %v2483_v42 = vadd.f32 %v2482_v62, %v2429_v56 }
 0x674   :  { %2555 = vst [vmem:[%s5842_s4] sm:$0xff] %v2467_v25 }
 0x675   :  { %v2497_v46 = vadd.f32 %v2496_v22, %v2483_v42 }
 0x677   :  { %2558 = vst [vmem:[%s5842_s4 + $0x18] sm:$0xff] %v2497_v46  ;;  %v2454_v55 = vpop.f32.mrf.mxu2 }
 0x678   :  { %v2455_v14 = vadd.f32 %v2454_v55, %v2429_v56 }
 0x67a   :  { %v2469_v36 = vadd.f32 %v2468_v50, %v2455_v14  ;;  %v2536_v15 = vpop.f32.mrf.mxu1 }
 0x67b   :  { %v2537_v0 = vadd.f32 %v2536_v15, %v2424_v58 }
 0x67c   :  { %2557 = vst [vmem:[%s5842_s4 + $0x10] sm:$0xff] %v2469_v36 }
 0x67f   :  { %v2508_v18 = vpop.f32.mrf.mxu3 }
 0x680   :  { %v2509_v28 = vadd.f32 %v2508_v18, %v2424_v58 }
 0x681   :  { %v2550_v54 = vpop.f32.mrf.mxu0 }
 0x682   :  { %v2551_v51 = vadd.f32 %v2550_v54, %v2537_v0  ;;  %v2538_v8 = vpop.f32.mrf.mxu1 }
 0x683   :  { %v2539_v29 = vadd.f32 %v2538_v8, %v2429_v56 }
 0x684   :  { %2689 = vst [vmem:[%s5842_s4 + $0x28] sm:$0xff] %v2551_v51 }
 0x687   :  { %v2522_v61 = vpop.f32.mrf.mxu2  ;;  %v2510_v6 = vpop.f32.mrf.mxu3 }
 0x688   :  { %v2523_v49 = vadd.f32 %v2522_v61, %v2509_v28  ;;  %v2511_v7 = vadd.f32 %v2510_v6, %v2429_v56 }
 0x689   :  { %v2552_v32 = vpop.f32.mrf.mxu0 }
 0x68a   :  { %2688 = vst [vmem:[%s5842_s4 + $0x20] sm:$0xff] %v2523_v49  ;;  %v2553_v20 = vadd.f32 %v2552_v32, %v2539_v29 }
 0x68c   :  { %2691 = vst [vmem:[%s5842_s4 + $0x38] sm:$0xff] %v2553_v20 }
 0x68f   :  { %v2524_v5 = vpop.f32.mrf.mxu2 }
 0x690   :  { %v2525_v10 = vadd.f32 %v2524_v5, %v2511_v7 }
 0x692   :  { %2690 = vst [vmem:[%s5842_s4 + $0x30] sm:$0xff] %v2525_v10 }

</bundles_post_ra>
